<compile_context>
chip_gen: v5e
topology: v5e:2x2
jax: 0.10.0
libtpu: 0.0.40
codegen_flags: <defaults>
</compile_context>

<pallas_src>
import functools
import math

import jax
import jax.numpy as jnp
from jax.experimental import pallas as pl
from jax.experimental.pallas import tpu as pltpu


def _round_up(x, m):
    return ((x + m - 1) // m) * m


def _clustered_attn_kernel(q_ref, st_ref, val_ref, labq_ref, labk_ref, o_ref,
                           m_sc, l_sc, acc_sc,
                           *, num_heads, head_dim, seq_len):
    # Block shapes (leading batch dim of 1 squeezed by indexing [0]):
    #   q_ref   : (1, v, tq, s) bf16   query tile, heads on a leading (sublane-side) axis
    #   st_ref  : (1, s, tk)    bf16   (scale * sum_of_keys)^T, key chunk
    #   val_ref : (1, tk, v*s)  bf16   value key chunk, heads packed on lanes
    #   labq_ref: (1, tq, 1)    i32    labels of the query rows in this tile
    #   labk_ref: (1, 1, tk)    i32    labels of this key chunk
    #   o_ref   : (1, tq, v*s)  f32    written once, at the last key block
    # Scratch (persists across the key-block axis):
    #   m_sc    : (v, tq, 1) f32  running max
    #   l_sc    : (v, tq, 1) f32  running denominator
    #   acc_sc  : (v, tq, s) f32  running numerator
    ik = pl.program_id(2)
    n_k = pl.num_programs(2)
    tk = labk_ref.shape[-1]

    @pl.when(ik == 0)
    def _():
        m_sc[...] = jnp.full_like(m_sc, -1e30)
        l_sc[...] = jnp.zeros_like(l_sc)
        acc_sc[...] = jnp.zeros_like(acc_sc)

    # Cluster mask for this (query tile, key chunk); shared by all heads. Padded key
    # positions (global index >= seq_len) are masked out explicitly.
    lab_q = labq_ref[0]                                        # (tq, 1)
    lab_k = labk_ref[0]                                        # (1, tk)
    k_idx = jax.lax.broadcasted_iota(jnp.int32, (1, tk), 1) + ik * tk
    mask = (lab_q == lab_k) & (k_idx < seq_len)                # (tq, tk)

    # Head-stacked score matmul: one (v*tq, s) @ (s, tk) MXU op covering all heads.
    q_all = q_ref[0].reshape(-1, head_dim)                     # (v*tq, s) bf16
    scores = jnp.dot(q_all, st_ref[0],
                     preferred_element_type=jnp.float32)       # (v*tq, tk) f32
    tq = q_ref.shape[2]
    scores = scores.reshape(num_heads, tq, tk)                 # free leading-axis split

    neg = jnp.float32(-1e30)
    masked = jnp.where(mask[None], scores, neg)                # (v, tq, tk)

    # Online (flash-style) softmax across key chunks; statistics kept in f32.
    m_prev = m_sc[...]
    m_new = jnp.maximum(m_prev, jnp.max(masked, axis=-1, keepdims=True))   # (v, tq, 1)
    alpha = jnp.exp(m_prev - m_new)
    # Fully-masked chunks must contribute exactly 0 (the where handles the degenerate
    # case where the chunk max equals the -1e30 sentinel).
    e = jnp.where(mask[None], jnp.exp(masked - m_new), 0.0)    # (v, tq, tk) f32
    l_sc[...] = alpha * l_sc[...] + jnp.sum(e, axis=-1, keepdims=True)
    m_sc[...] = m_new

    # PV accumulation per head (contraction dim = tk, so the MXU depth is well filled);
    # results go straight into the per-head accumulator — no deferred concatenate.
    e_b = e.astype(jnp.bfloat16)
    for h in range(num_heads):
        lo = h * head_dim
        v_h = val_ref[0, :, lo:lo + head_dim]                  # (tk, s) bf16
        pv = jnp.dot(e_b[h], v_h, preferred_element_type=jnp.float32)
        acc_sc[h] = alpha[h] * acc_sc[h] + pv

    @pl.when(ik == n_k - 1)
    def _():
        # Deferred softmax normalization: EUP reciprocal + tq*s multiplies per head,
        # stored directly into the lane-dense (tq, v*s) output block.
        inv = pl.reciprocal(l_sc[...], approx=True)            # (v, tq, 1)
        for h in range(num_heads):
            lo = h * head_dim
            o_ref[0, :, lo:lo + head_dim] = (acc_sc[h] * inv[h]).astype(o_ref.dtype)


def _tpu_defaults():
    """(vmem_limit_bytes, block_q, block_k) tuned per TPU generation."""
    try:
        vmem_cap = pltpu.get_tpu_info().vmem_capacity_bytes
    except Exception:
        vmem_cap = 0
    if vmem_cap > 64 * 1024 * 1024:            # v5e / v6e: 128 MiB physical VMEM
        return 100 * 1024 * 1024, 256, 512
    return 48 * 1024 * 1024, 128, 512          # v7x-class (64 MiB / TC) or unknown


def clustered_attention(query, key, value, label_arr, scale=None,
                        block_q=None, block_k=None):
    """query/key/value: (b, l, v, s); label_arr: (b, l) int. Returns (V, None)."""
    b, l, v, s = query.shape
    scale = float(scale) if scale is not None else 1.0 / math.sqrt(s)

    vmem_limit, def_bq, def_bk = _tpu_defaults()
    block_q = def_bq if block_q is None else block_q
    block_k = def_bk if block_k is None else block_k

    # Tile sizes / padded extents: tq multiple of 8, tk multiple of 128; any l works.
    tq = min(block_q, _round_up(l, 8))
    lq_pad = _round_up(l, tq)
    tk = min(block_k, _round_up(l, 128))
    lk_pad = _round_up(l, tk)

    bf16, f32 = jnp.bfloat16, jnp.float32

    # Matmul operands DMA'd as bf16 (half HBM traffic / VMEM); stats & output stay f32.
    # scale is folded into the sum+transpose pass producing sum_tot^T.
    q_t = jnp.swapaxes(query, 1, 2).astype(bf16)                          # (b, v, l, s)
    st_t = (jnp.swapaxes(key.astype(f32).sum(axis=2), 1, 2) * scale).astype(bf16)  # (b, s, l)
    val2 = value.astype(bf16).reshape(b, l, v * s)                        # free reshape
    lab = label_arr.astype(jnp.int32)

    if lq_pad != l:
        q_t = jnp.pad(q_t, ((0, 0), (0, 0), (0, lq_pad - l), (0, 0)))
    if lk_pad != l:
        st_t = jnp.pad(st_t, ((0, 0), (0, 0), (0, lk_pad - l)))
        val2 = jnp.pad(val2, ((0, 0), (0, lk_pad - l), (0, 0)))
    lab_q = jnp.pad(lab, ((0, 0), (0, lq_pad - l))).reshape(b, lq_pad, 1)
    lab_k = jnp.pad(lab, ((0, 0), (0, lk_pad - l))).reshape(b, 1, lk_pad)

    grid = (b, lq_pad // tq, lk_pad // tk)
    kernel = functools.partial(_clustered_attn_kernel,
                               num_heads=v, head_dim=s, seq_len=l)

    out = pl.pallas_call(
        kernel,
        out_shape=jax.ShapeDtypeStruct((b, lq_pad, v * s), f32),
        grid=grid,
        in_specs=[
            pl.BlockSpec((1, v, tq, s),  lambda ib, iq, ik: (ib, 0, iq, 0)),  # query tile
            pl.BlockSpec((1, s, tk),     lambda ib, iq, ik: (ib, 0, ik)),     # scale*sum_tot^T
            pl.BlockSpec((1, tk, v * s), lambda ib, iq, ik: (ib, ik, 0)),     # values
            pl.BlockSpec((1, tq, 1),     lambda ib, iq, ik: (ib, iq, 0)),     # query labels
            pl.BlockSpec((1, 1, tk),     lambda ib, iq, ik: (ib, 0, ik)),     # key labels
        ],
        out_specs=pl.BlockSpec((1, tq, v * s), lambda ib, iq, ik: (ib, iq, 0)),
        scratch_shapes=[
            pltpu.VMEM((v, tq, 1), f32),   # running max
            pltpu.VMEM((v, tq, 1), f32),   # running denominator
            pltpu.VMEM((v, tq, s), f32),   # running numerator
        ],
        compiler_params=pltpu.CompilerParams(
            dimension_semantics=("parallel", "parallel", "arbitrary"),
            vmem_limit_bytes=vmem_limit,
        ),
    )(q_t, st_t, val2, lab_q, lab_k)

    V = out[:, :l].reshape(b, l, v, s)     # drop query padding, free reshape back
    return V, None


def _reference(query, key, value, label_arr, scale):
    # Pure-JAX f32 reference mirroring the PyTorch forward.
    sum_tot = key.sum(axis=2)                                       # (b, l, s)
    scores = jnp.einsum('bivs,bjs->bivj', query, sum_tot)           # (b, l, v, l)
    mask = label_arr[:, :, None] == label_arr[:, None, :]           # (b, l, l)
    scores = jnp.where(mask[:, :, None, :], scale * scores, -jnp.inf)
    A = jax.nn.softmax(scores, axis=-1)
    V = jnp.einsum('bivj,bjvs->bivs', A, value)                     # (b, l, v, s)
    return V


if __name__ == "__main__":
    b, l, vh, s = 2, 256, 4, 32
    root = jax.random.PRNGKey(0)
    kq, kk, kv, kl = jax.random.split(root, 4)
    query = jax.random.normal(kq, (b, l, vh, s), dtype=jnp.float32)
    key = jax.random.normal(kk, (b, l, vh, s), dtype=jnp.float32)
    value = jax.random.normal(kv, (b, l, vh, s), dtype=jnp.float32)
    label_arr = jax.random.randint(kl, (b, l), 0, 4).astype(jnp.int32)

    # Small tiles so both the multi-tile query grid and the online-softmax key-block
    # loop are exercised at small shapes: grid = (2, 4, 2).
    V, A = clustered_attention(query, key, value, label_arr, block_q=64, block_k=128)
    V = jax.block_until_ready(V)

    V_ref = _reference(query, key, value, label_arr, 1.0 / math.sqrt(s))
    assert V.shape == (b, l, vh, s)
    err = jnp.max(jnp.abs(V - V_ref))
    # bf16 matmul operands + approximate reciprocal -> loosened tolerance vs f32 reference.
    assert jnp.allclose(V, V_ref, rtol=5e-2, atol=5e-2), f"mismatch vs reference (max err {err})"

    print("KERNEL_OK")
</pallas_src>

<mosaic_0001>
module attributes {stable_mosaic.version = 11 : i64} {
  func.func @_clustered_attn_kernel(%arg0: i32, %arg1: i32, %arg2: i32, %arg3: memref<1x4x64x32xbf16, #tpu.memory_space<vmem>>, %arg4: memref<1x32x128xbf16, #tpu.memory_space<vmem>>, %arg5: memref<1x128x128xbf16, #tpu.memory_space<vmem>>, %arg6: memref<1x64x1xi32, #tpu.memory_space<vmem>>, %arg7: memref<1x1x128xi32, #tpu.memory_space<vmem>>, %arg8: memref<1x64x128xf32, #tpu.memory_space<vmem>>, %arg9: memref<4x64x1xf32, #tpu.memory_space<vmem>>, %arg10: memref<4x64x1xf32, #tpu.memory_space<vmem>>, %arg11: memref<4x64x32xf32, #tpu.memory_space<vmem>>) attributes {dimension_semantics = [#tpu.dimension_semantics<parallel>, #tpu.dimension_semantics<parallel>, #tpu.dimension_semantics<arbitrary>], iteration_bounds = array<i64: 2, 4, 2>, scalar_prefetch = 0 : i64, scratch_operands = 3 : i64, tpu.core_type = #tpu.core_type<tc>, window_params = [{transform_indices = @transform_0, window_bounds = array<i64: 1, 4, 64, 32>}, {transform_indices = @transform_1, window_bounds = array<i64: 1, 32, 128>}, {transform_indices = @transform_2, window_bounds = array<i64: 1, 128, 128>}, {transform_indices = @transform_3, window_bounds = array<i64: 1, 64, 1>}, {transform_indices = @transform_4, window_bounds = array<i64: 1, 1, 128>}, {transform_indices = @transform_5, window_bounds = array<i64: 1, 64, 128>}]} {
    %c0_i32 = arith.constant 0 : i32
    %0 = arith.cmpi eq, %arg2, %c0_i32 : i32
    %1 = arith.extui %0 : i1 to i32
    %c0_i32_0 = arith.constant 0 : i32
    %2 = arith.cmpi ne, %1, %c0_i32_0 : i32
    scf.if %2 {
      %cst_64 = arith.constant -1.000000e+30 : f32
      %115 = vector.broadcast %cst_64 : f32 to vector<4x64x1xf32>
      %c0_65 = arith.constant 0 : index
      %c0_66 = arith.constant 0 : index
      %c0_67 = arith.constant 0 : index
      %116 = vector.load %arg9[%c0_65, %c0_66, %c0_67] : memref<4x64x1xf32, #tpu.memory_space<vmem>>, vector<4x64x1xf32>
      tpu.vector_store %arg9[%c0_65, %c0_66, %c0_67], %115 {strides = array<i32>} : memref<4x64x1xf32, #tpu.memory_space<vmem>>, vector<4x64x1xf32>,
      %cst_68 = arith.constant 0.000000e+00 : f32
      %117 = vector.broadcast %cst_68 : f32 to vector<4x64x1xf32>
      %c0_69 = arith.constant 0 : index
      %c0_70 = arith.constant 0 : index
      %c0_71 = arith.constant 0 : index
      %118 = vector.load %arg10[%c0_69, %c0_70, %c0_71] : memref<4x64x1xf32, #tpu.memory_space<vmem>>, vector<4x64x1xf32>
      tpu.vector_store %arg10[%c0_69, %c0_70, %c0_71], %117 {strides = array<i32>} : memref<4x64x1xf32, #tpu.memory_space<vmem>>, vector<4x64x1xf32>,
      %cst_72 = arith.constant 0.000000e+00 : f32
      %119 = vector.broadcast %cst_72 : f32 to vector<4x64x32xf32>
      %c0_73 = arith.constant 0 : index
      %c0_74 = arith.constant 0 : index
      %c0_75 = arith.constant 0 : index
      %120 = vector.load %arg11[%c0_73, %c0_74, %c0_75] : memref<4x64x32xf32, #tpu.memory_space<vmem>>, vector<4x64x32xf32>
      tpu.vector_store %arg11[%c0_73, %c0_74, %c0_75], %119 {strides = array<i32>} : memref<4x64x32xf32, #tpu.memory_space<vmem>>, vector<4x64x32xf32>,
    } else {
    }
    %c0 = arith.constant 0 : index
    %c0_1 = arith.constant 0 : index
    %c0_2 = arith.constant 0 : index
    %3 = vector.load %arg6[%c0, %c0_1, %c0_2] : memref<1x64x1xi32, #tpu.memory_space<vmem>>, vector<1x64x1xi32>
    %4 = vector.shape_cast %3 : vector<1x64x1xi32> to vector<64x1xi32>
    %c0_3 = arith.constant 0 : index
    %c0_4 = arith.constant 0 : index
    %c0_5 = arith.constant 0 : index
    %5 = vector.load %arg7[%c0_3, %c0_4, %c0_5] : memref<1x1x128xi32, #tpu.memory_space<vmem>>, vector<1x1x128xi32>
    %6 = vector.shape_cast %5 : vector<1x1x128xi32> to vector<1x128xi32>
    %7 = tpu.iota {dimensions = array<i32: 1>} : vector<1x128xi32>
    %c128_i32 = arith.constant 128 : i32
    %8 = arith.muli %arg2, %c128_i32 : i32
    %9 = vector.broadcast %8 : i32 to vector<1x128xi32>
    %10 = arith.addi %7, %9 : vector<1x128xi32>
    %11 = vector.broadcast %4 : vector<64x1xi32> to vector<64x128xi32>
    %12 = vector.broadcast %6 : vector<1x128xi32> to vector<64x128xi32>
    %13 = arith.cmpi eq, %11, %12 : vector<64x128xi32>
    %c256_i32 = arith.constant 256 : i32
    %14 = vector.broadcast %c256_i32 : i32 to vector<1x128xi32>
    %15 = arith.cmpi slt, %10, %14 : vector<1x128xi32>
    %16 = vector.broadcast %15 : vector<1x128xi1> to vector<64x128xi1>
    %17 = arith.andi %13, %16 : vector<64x128xi1>
    %c0_6 = arith.constant 0 : index
    %c0_7 = arith.constant 0 : index
    %c0_8 = arith.constant 0 : index
    %c0_9 = arith.constant 0 : index
    %18 = vector.load %arg3[%c0_6, %c0_7, %c0_8, %c0_9] : memref<1x4x64x32xbf16, #tpu.memory_space<vmem>>, vector<1x4x64x32xbf16>
    %19 = vector.shape_cast %18 : vector<1x4x64x32xbf16> to vector<4x64x32xbf16>
    %20 = vector.shape_cast %19 : vector<4x64x32xbf16> to vector<256x32xbf16>
    %c0_10 = arith.constant 0 : index
    %c0_11 = arith.constant 0 : index
    %c0_12 = arith.constant 0 : index
    %21 = vector.load %arg4[%c0_10, %c0_11, %c0_12] : memref<1x32x128xbf16, #tpu.memory_space<vmem>>, vector<1x32x128xbf16>
    %22 = vector.shape_cast %21 : vector<1x32x128xbf16> to vector<32x128xbf16>
    %cst = arith.constant dense<0.000000e+00> : vector<256x128xf32>
    %23 = tpu.matmul %20, %22, %cst {dimension_numbers = #tpu.dot_dimension_numbers<[1], [0], [0], [1], [0, 0, 1, 1], [], []>} : vector<256x32xbf16>, vector<32x128xbf16>, vector<256x128xf32> -> vector<256x128xf32>
    %24 = vector.shape_cast %23 : vector<256x128xf32> to vector<4x64x128xf32>
    %25 = vector.shape_cast %17 : vector<64x128xi1> to vector<1x64x128xi1>
    %cst_13 = arith.constant -1.000000e+30 : f32
    %26 = vector.shape_cast %25 : vector<1x64x128xi1> to vector<1x64x128xi1>
    %27 = vector.broadcast %26 : vector<1x64x128xi1> to vector<4x64x128xi1>
    %28 = vector.broadcast %cst_13 : f32 to vector<4x64x128xf32>
    %29 = arith.select %27, %24, %28 : vector<4x64x128xi1>, vector<4x64x128xf32>
    %c0_14 = arith.constant 0 : index
    %c0_15 = arith.constant 0 : index
    %c0_16 = arith.constant 0 : index
    %30 = vector.load %arg9[%c0_14, %c0_15, %c0_16] : memref<4x64x1xf32, #tpu.memory_space<vmem>>, vector<4x64x1xf32>
    %cst_17 = arith.constant dense<0xFF800000> : vector<4x64xf32>
    %31 = vector.multi_reduction <maximumf>, %29, %cst_17 [2] : vector<4x64x128xf32> to vector<4x64xf32>
    %32 = vector.shape_cast %31 : vector<4x64xf32> to vector<4x64x1xf32>
    %33 = arith.maximumf %30, %32 : vector<4x64x1xf32>
    %34 = arith.subf %30, %33 : vector<4x64x1xf32>
    %35 = math.exp %34 : vector<4x64x1xf32>
    %36 = vector.shape_cast %17 : vector<64x128xi1> to vector<1x64x128xi1>
    %37 = vector.broadcast %33 : vector<4x64x1xf32> to vector<4x64x128xf32>
    %38 = arith.subf %29, %37 : vector<4x64x128xf32>
    %39 = math.exp %38 : vector<4x64x128xf32>
    %cst_18 = arith.constant 0.000000e+00 : f32
    %40 = vector.shape_cast %36 : vector<1x64x128xi1> to vector<1x64x128xi1>
    %41 = vector.broadcast %40 : vector<1x64x128xi1> to vector<4x64x128xi1>
    %42 = vector.broadcast %cst_18 : f32 to vector<4x64x128xf32>
    %43 = arith.select %41, %39, %42 : vector<4x64x128xi1>, vector<4x64x128xf32>
    %c0_19 = arith.constant 0 : index
    %c0_20 = arith.constant 0 : index
    %c0_21 = arith.constant 0 : index
    %44 = vector.load %arg10[%c0_19, %c0_20, %c0_21] : memref<4x64x1xf32, #tpu.memory_space<vmem>>, vector<4x64x1xf32>
    %45 = arith.mulf %35, %44 : vector<4x64x1xf32>
    %cst_22 = arith.constant dense<0.000000e+00> : vector<4x64xf32>
    %46 = vector.multi_reduction <add>, %43, %cst_22 [2] : vector<4x64x128xf32> to vector<4x64xf32>
    %47 = vector.shape_cast %46 : vector<4x64xf32> to vector<4x64x1xf32>
    %48 = arith.addf %45, %47 : vector<4x64x1xf32>
    %c0_23 = arith.constant 0 : index
    %c0_24 = arith.constant 0 : index
    %c0_25 = arith.constant 0 : index
    %49 = vector.load %arg10[%c0_23, %c0_24, %c0_25] : memref<4x64x1xf32, #tpu.memory_space<vmem>>, vector<4x64x1xf32>
    tpu.vector_store %arg10[%c0_23, %c0_24, %c0_25], %48 {strides = array<i32>} : memref<4x64x1xf32, #tpu.memory_space<vmem>>, vector<4x64x1xf32>,
    %c0_26 = arith.constant 0 : index
    %c0_27 = arith.constant 0 : index
    %c0_28 = arith.constant 0 : index
    %50 = vector.load %arg9[%c0_26, %c0_27, %c0_28] : memref<4x64x1xf32, #tpu.memory_space<vmem>>, vector<4x64x1xf32>
    tpu.vector_store %arg9[%c0_26, %c0_27, %c0_28], %33 {strides = array<i32>} : memref<4x64x1xf32, #tpu.memory_space<vmem>>, vector<4x64x1xf32>,
    %51 = arith.truncf %43 : vector<4x64x128xf32> to vector<4x64x128xbf16>
    %c0_29 = arith.constant 0 : index
    %c0_30 = arith.constant 0 : index
    %c0_31 = arith.constant 0 : index
    %52 = vector.load %arg5[%c0_29, %c0_30, %c0_31] : memref<1x128x128xbf16, #tpu.memory_space<vmem>>, vector<1x128x32xbf16>
    %53 = vector.shape_cast %52 : vector<1x128x32xbf16> to vector<128x32xbf16>
    %54 = vector.extract_strided_slice %51 {offsets = [0, 0, 0], sizes = [1, 64, 128], strides = [1, 1, 1]} : vector<4x64x128xbf16> to vector<1x64x128xbf16>
    %55 = vector.shape_cast %54 : vector<1x64x128xbf16> to vector<64x128xbf16>
    %cst_32 = arith.constant dense<0.000000e+00> : vector<64x32xf32>
    %56 = tpu.matmul %55, %53, %cst_32 {dimension_numbers = #tpu.dot_dimension_numbers<[1], [0], [0], [1], [0, 0, 1, 1], [], []>} : vector<64x128xbf16>, vector<128x32xbf16>, vector<64x32xf32> -> vector<64x32xf32>
    %57 = vector.extract_strided_slice %35 {offsets = [0, 0, 0], sizes = [1, 64, 1], strides = [1, 1, 1]} : vector<4x64x1xf32> to vector<1x64x1xf32>
    %58 = vector.shape_cast %57 : vector<1x64x1xf32> to vector<64x1xf32>
    %c0_33 = arith.constant 0 : index
    %c0_34 = arith.constant 0 : index
    %c0_35 = arith.constant 0 : index
    %59 = vector.load %arg11[%c0_33, %c0_34, %c0_35] : memref<4x64x32xf32, #tpu.memory_space<vmem>>, vector<1x64x32xf32>
    %60 = vector.shape_cast %59 : vector<1x64x32xf32> to vector<64x32xf32>
    %61 = vector.broadcast %58 : vector<64x1xf32> to vector<64x32xf32>
    %62 = arith.mulf %61, %60 : vector<64x32xf32>
    %63 = arith.addf %62, %56 : vector<64x32xf32>
    %c0_36 = arith.constant 0 : index
    %c0_37 = arith.constant 0 : index
    %c0_38 = arith.constant 0 : index
    %64 = vector.load %arg11[%c0_36, %c0_37, %c0_38] : memref<4x64x32xf32, #tpu.memory_space<vmem>>, vector<1x64x32xf32>
    %65 = vector.shape_cast %64 : vector<1x64x32xf32> to vector<64x32xf32>
    %66 = vector.shape_cast %63 : vector<64x32xf32> to vector<1x64x32xf32>
    tpu.vector_store %arg11[%c0_36, %c0_37, %c0_38], %66 {strides = array<i32>} : memref<4x64x32xf32, #tpu.memory_space<vmem>>, vector<1x64x32xf32>,
    %c0_39 = arith.constant 0 : index
    %c0_40 = arith.constant 0 : index
    %c32 = arith.constant 32 : index
    %67 = vector.load %arg5[%c0_39, %c0_40, %c32] : memref<1x128x128xbf16, #tpu.memory_space<vmem>>, vector<1x128x32xbf16>
    %68 = vector.shape_cast %67 : vector<1x128x32xbf16> to vector<128x32xbf16>
    %69 = vector.extract_strided_slice %51 {offsets = [1, 0, 0], sizes = [1, 64, 128], strides = [1, 1, 1]} : vector<4x64x128xbf16> to vector<1x64x128xbf16>
    %70 = vector.shape_cast %69 : vector<1x64x128xbf16> to vector<64x128xbf16>
    %cst_41 = arith.constant dense<0.000000e+00> : vector<64x32xf32>
    %71 = tpu.matmul %70, %68, %cst_41 {dimension_numbers = #tpu.dot_dimension_numbers<[1], [0], [0], [1], [0, 0, 1, 1], [], []>} : vector<64x128xbf16>, vector<128x32xbf16>, vector<64x32xf32> -> vector<64x32xf32>
    %72 = vector.extract_strided_slice %35 {offsets = [1, 0, 0], sizes = [1, 64, 1], strides = [1, 1, 1]} : vector<4x64x1xf32> to vector<1x64x1xf32>
    %73 = vector.shape_cast %72 : vector<1x64x1xf32> to vector<64x1xf32>
    %c1 = arith.constant 1 : index
    %c0_42 = arith.constant 0 : index
    %c0_43 = arith.constant 0 : index
    %74 = vector.load %arg11[%c1, %c0_42, %c0_43] : memref<4x64x32xf32, #tpu.memory_space<vmem>>, vector<1x64x32xf32>
    %75 = vector.shape_cast %74 : vector<1x64x32xf32> to vector<64x32xf32>
    %76 = vector.broadcast %73 : vector<64x1xf32> to vector<64x32xf32>
    %77 = arith.mulf %76, %75 : vector<64x32xf32>
    %78 = arith.addf %77, %71 : vector<64x32xf32>
    %c1_44 = arith.constant 1 : index
    %c0_45 = arith.constant 0 : index
    %c0_46 = arith.constant 0 : index
    %79 = vector.load %arg11[%c1_44, %c0_45, %c0_46] : memref<4x64x32xf32, #tpu.memory_space<vmem>>, vector<1x64x32xf32>
    %80 = vector.shape_cast %79 : vector<1x64x32xf32> to vector<64x32xf32>
    %81 = vector.shape_cast %78 : vector<64x32xf32> to vector<1x64x32xf32>
    tpu.vector_store %arg11[%c1_44, %c0_45, %c0_46], %81 {strides = array<i32>} : memref<4x64x32xf32, #tpu.memory_space<vmem>>, vector<1x64x32xf32>,
    %c0_47 = arith.constant 0 : index
    %c0_48 = arith.constant 0 : index
    %c64 = arith.constant 64 : index
    %82 = vector.load %arg5[%c0_47, %c0_48, %c64] : memref<1x128x128xbf16, #tpu.memory_space<vmem>>, vector<1x128x32xbf16>
    %83 = vector.shape_cast %82 : vector<1x128x32xbf16> to vector<128x32xbf16>
    %84 = vector.extract_strided_slice %51 {offsets = [2, 0, 0], sizes = [1, 64, 128], strides = [1, 1, 1]} : vector<4x64x128xbf16> to vector<1x64x128xbf16>
    %85 = vector.shape_cast %84 : vector<1x64x128xbf16> to vector<64x128xbf16>
    %cst_49 = arith.constant dense<0.000000e+00> : vector<64x32xf32>
    %86 = tpu.matmul %85, %83, %cst_49 {dimension_numbers = #tpu.dot_dimension_numbers<[1], [0], [0], [1], [0, 0, 1, 1], [], []>} : vector<64x128xbf16>, vector<128x32xbf16>, vector<64x32xf32> -> vector<64x32xf32>
    %87 = vector.extract_strided_slice %35 {offsets = [2, 0, 0], sizes = [1, 64, 1], strides = [1, 1, 1]} : vector<4x64x1xf32> to vector<1x64x1xf32>
    %88 = vector.shape_cast %87 : vector<1x64x1xf32> to vector<64x1xf32>
    %c2 = arith.constant 2 : index
    %c0_50 = arith.constant 0 : index
    %c0_51 = arith.constant 0 : index
    %89 = vector.load %arg11[%c2, %c0_50, %c0_51] : memref<4x64x32xf32, #tpu.memory_space<vmem>>, vector<1x64x32xf32>
    %90 = vector.shape_cast %89 : vector<1x64x32xf32> to vector<64x32xf32>
    %91 = vector.broadcast %88 : vector<64x1xf32> to vector<64x32xf32>
    %92 = arith.mulf %91, %90 : vector<64x32xf32>
    %93 = arith.addf %92, %86 : vector<64x32xf32>
    %c2_52 = arith.constant 2 : index
    %c0_53 = arith.constant 0 : index
    %c0_54 = arith.constant 0 : index
    %94 = vector.load %arg11[%c2_52, %c0_53, %c0_54] : memref<4x64x32xf32, #tpu.memory_space<vmem>>, vector<1x64x32xf32>
    %95 = vector.shape_cast %94 : vector<1x64x32xf32> to vector<64x32xf32>
    %96 = vector.shape_cast %93 : vector<64x32xf32> to vector<1x64x32xf32>
    tpu.vector_store %arg11[%c2_52, %c0_53, %c0_54], %96 {strides = array<i32>} : memref<4x64x32xf32, #tpu.memory_space<vmem>>, vector<1x64x32xf32>,
    %c0_55 = arith.constant 0 : index
    %c0_56 = arith.constant 0 : index
    %c96 = arith.constant 96 : index
    %97 = vector.load %arg5[%c0_55, %c0_56, %c96] : memref<1x128x128xbf16, #tpu.memory_space<vmem>>, vector<1x128x32xbf16>
    %98 = vector.shape_cast %97 : vector<1x128x32xbf16> to vector<128x32xbf16>
    %99 = vector.extract_strided_slice %51 {offsets = [3, 0, 0], sizes = [1, 64, 128], strides = [1, 1, 1]} : vector<4x64x128xbf16> to vector<1x64x128xbf16>
    %100 = vector.shape_cast %99 : vector<1x64x128xbf16> to vector<64x128xbf16>
    %cst_57 = arith.constant dense<0.000000e+00> : vector<64x32xf32>
    %101 = tpu.matmul %100, %98, %cst_57 {dimension_numbers = #tpu.dot_dimension_numbers<[1], [0], [0], [1], [0, 0, 1, 1], [], []>} : vector<64x128xbf16>, vector<128x32xbf16>, vector<64x32xf32> -> vector<64x32xf32>
    %102 = vector.extract_strided_slice %35 {offsets = [3, 0, 0], sizes = [1, 64, 1], strides = [1, 1, 1]} : vector<4x64x1xf32> to vector<1x64x1xf32>
    %103 = vector.shape_cast %102 : vector<1x64x1xf32> to vector<64x1xf32>
    %c3 = arith.constant 3 : index
    %c0_58 = arith.constant 0 : index
    %c0_59 = arith.constant 0 : index
    %104 = vector.load %arg11[%c3, %c0_58, %c0_59] : memref<4x64x32xf32, #tpu.memory_space<vmem>>, vector<1x64x32xf32>
    %105 = vector.shape_cast %104 : vector<1x64x32xf32> to vector<64x32xf32>
    %106 = vector.broadcast %103 : vector<64x1xf32> to vector<64x32xf32>
    %107 = arith.mulf %106, %105 : vector<64x32xf32>
    %108 = arith.addf %107, %101 : vector<64x32xf32>
    %c3_60 = arith.constant 3 : index
    %c0_61 = arith.constant 0 : index
    %c0_62 = arith.constant 0 : index
    %109 = vector.load %arg11[%c3_60, %c0_61, %c0_62] : memref<4x64x32xf32, #tpu.memory_space<vmem>>, vector<1x64x32xf32>
    %110 = vector.shape_cast %109 : vector<1x64x32xf32> to vector<64x32xf32>
    %111 = vector.shape_cast %108 : vector<64x32xf32> to vector<1x64x32xf32>
    tpu.vector_store %arg11[%c3_60, %c0_61, %c0_62], %111 {strides = array<i32>} : memref<4x64x32xf32, #tpu.memory_space<vmem>>, vector<1x64x32xf32>,
    %c1_i32 = arith.constant 1 : i32
    %112 = arith.cmpi eq, %arg2, %c1_i32 : i32
    %113 = arith.extui %112 : i1 to i32
    %c0_i32_63 = arith.constant 0 : i32
    %114 = arith.cmpi ne, %113, %c0_i32_63 : i32
    scf.if %114 {
      %c0_64 = arith.constant 0 : index
      %c0_65 = arith.constant 0 : index
      %c0_66 = arith.constant 0 : index
      %115 = vector.load %arg10[%c0_64, %c0_65, %c0_66] : memref<4x64x1xf32, #tpu.memory_space<vmem>>, vector<4x64x1xf32>
      %116 = tpu.reciprocal %115 {approx = true} : vector<4x64x1xf32> -> vector<4x64x1xf32>
      %c0_67 = arith.constant 0 : index
      %c0_68 = arith.constant 0 : index
      %c0_69 = arith.constant 0 : index
      %117 = vector.load %arg11[%c0_67, %c0_68, %c0_69] : memref<4x64x32xf32, #tpu.memory_space<vmem>>, vector<1x64x32xf32>
      %118 = vector.shape_cast %117 : vector<1x64x32xf32> to vector<64x32xf32>
      %119 = vector.extract_strided_slice %116 {offsets = [0, 0, 0], sizes = [1, 64, 1], strides = [1, 1, 1]} : vector<4x64x1xf32> to vector<1x64x1xf32>
      %120 = vector.shape_cast %119 : vector<1x64x1xf32> to vector<64x1xf32>
      %121 = vector.broadcast %120 : vector<64x1xf32> to vector<64x32xf32>
      %122 = arith.mulf %118, %121 : vector<64x32xf32>
      %c0_70 = arith.constant 0 : index
      %c0_71 = arith.constant 0 : index
      %c0_72 = arith.constant 0 : index
      %123 = vector.load %arg8[%c0_70, %c0_71, %c0_72] : memref<1x64x128xf32, #tpu.memory_space<vmem>>, vector<1x64x32xf32>
      %124 = vector.shape_cast %123 : vector<1x64x32xf32> to vector<64x32xf32>
      %125 = vector.shape_cast %122 : vector<64x32xf32> to vector<1x64x32xf32>
      tpu.vector_store %arg8[%c0_70, %c0_71, %c0_72], %125 {strides = array<i32>} : memref<1x64x128xf32, #tpu.memory_space<vmem>>, vector<1x64x32xf32>,
      %c1_73 = arith.constant 1 : index
      %c0_74 = arith.constant 0 : index
      %c0_75 = arith.constant 0 : index
      %126 = vector.load %arg11[%c1_73, %c0_74, %c0_75] : memref<4x64x32xf32, #tpu.memory_space<vmem>>, vector<1x64x32xf32>
      %127 = vector.shape_cast %126 : vector<1x64x32xf32> to vector<64x32xf32>
      %128 = vector.extract_strided_slice %116 {offsets = [1, 0, 0], sizes = [1, 64, 1], strides = [1, 1, 1]} : vector<4x64x1xf32> to vector<1x64x1xf32>
      %129 = vector.shape_cast %128 : vector<1x64x1xf32> to vector<64x1xf32>
      %130 = vector.broadcast %129 : vector<64x1xf32> to vector<64x32xf32>
      %131 = arith.mulf %127, %130 : vector<64x32xf32>
      %c0_76 = arith.constant 0 : index
      %c0_77 = arith.constant 0 : index
      %c32_78 = arith.constant 32 : index
      %132 = vector.load %arg8[%c0_76, %c0_77, %c32_78] : memref<1x64x128xf32, #tpu.memory_space<vmem>>, vector<1x64x32xf32>
      %133 = vector.shape_cast %132 : vector<1x64x32xf32> to vector<64x32xf32>
      %134 = vector.shape_cast %131 : vector<64x32xf32> to vector<1x64x32xf32>
      tpu.vector_store %arg8[%c0_76, %c0_77, %c32_78], %134 {strides = array<i32>} : memref<1x64x128xf32, #tpu.memory_space<vmem>>, vector<1x64x32xf32>,
      %c2_79 = arith.constant 2 : index
      %c0_80 = arith.constant 0 : index
      %c0_81 = arith.constant 0 : index
      %135 = vector.load %arg11[%c2_79, %c0_80, %c0_81] : memref<4x64x32xf32, #tpu.memory_space<vmem>>, vector<1x64x32xf32>
      %136 = vector.shape_cast %135 : vector<1x64x32xf32> to vector<64x32xf32>
      %137 = vector.extract_strided_slice %116 {offsets = [2, 0, 0], sizes = [1, 64, 1], strides = [1, 1, 1]} : vector<4x64x1xf32> to vector<1x64x1xf32>
      %138 = vector.shape_cast %137 : vector<1x64x1xf32> to vector<64x1xf32>
      %139 = vector.broadcast %138 : vector<64x1xf32> to vector<64x32xf32>
      %140 = arith.mulf %136, %139 : vector<64x32xf32>
      %c0_82 = arith.constant 0 : index
      %c0_83 = arith.constant 0 : index
      %c64_84 = arith.constant 64 : index
      %141 = vector.load %arg8[%c0_82, %c0_83, %c64_84] : memref<1x64x128xf32, #tpu.memory_space<vmem>>, vector<1x64x32xf32>
      %142 = vector.shape_cast %141 : vector<1x64x32xf32> to vector<64x32xf32>
      %143 = vector.shape_cast %140 : vector<64x32xf32> to vector<1x64x32xf32>
      tpu.vector_store %arg8[%c0_82, %c0_83, %c64_84], %143 {strides = array<i32>} : memref<1x64x128xf32, #tpu.memory_space<vmem>>, vector<1x64x32xf32>,
      %c3_85 = arith.constant 3 : index
      %c0_86 = arith.constant 0 : index
      %c0_87 = arith.constant 0 : index
      %144 = vector.load %arg11[%c3_85, %c0_86, %c0_87] : memref<4x64x32xf32, #tpu.memory_space<vmem>>, vector<1x64x32xf32>
      %145 = vector.shape_cast %144 : vector<1x64x32xf32> to vector<64x32xf32>
      %146 = vector.extract_strided_slice %116 {offsets = [3, 0, 0], sizes = [1, 64, 1], strides = [1, 1, 1]} : vector<4x64x1xf32> to vector<1x64x1xf32>
      %147 = vector.shape_cast %146 : vector<1x64x1xf32> to vector<64x1xf32>
      %148 = vector.broadcast %147 : vector<64x1xf32> to vector<64x32xf32>
      %149 = arith.mulf %145, %148 : vector<64x32xf32>
      %c0_88 = arith.constant 0 : index
      %c0_89 = arith.constant 0 : index
      %c96_90 = arith.constant 96 : index
      %150 = vector.load %arg8[%c0_88, %c0_89, %c96_90] : memref<1x64x128xf32, #tpu.memory_space<vmem>>, vector<1x64x32xf32>
      %151 = vector.shape_cast %150 : vector<1x64x32xf32> to vector<64x32xf32>
      %152 = vector.shape_cast %149 : vector<64x32xf32> to vector<1x64x32xf32>
      tpu.vector_store %arg8[%c0_88, %c0_89, %c96_90], %152 {strides = array<i32>} : memref<1x64x128xf32, #tpu.memory_space<vmem>>, vector<1x64x32xf32>,
    } else {
    }
    return
  }
  func.func @transform_0(%arg0: i32, %arg1: i32, %arg2: i32) -> (i32, i32, i32, i32) {
    %c0_i32 = arith.constant 0 : i32
    %c0_i32_0 = arith.constant 0 : i32
    %c0_i32_1 = arith.constant 0 : i32
    return %arg0, %c0_i32, %arg1, %c0_i32_0 : i32, i32, i32, i32
  }
  func.func @transform_1(%arg0: i32, %arg1: i32, %arg2: i32) -> (i32, i32, i32) {
    %c0_i32 = arith.constant 0 : i32
    %c0_i32_0 = arith.constant 0 : i32
    return %arg0, %c0_i32, %arg2 : i32, i32, i32
  }
  func.func @transform_2(%arg0: i32, %arg1: i32, %arg2: i32) -> (i32, i32, i32) {
    %c0_i32 = arith.constant 0 : i32
    %c0_i32_0 = arith.constant 0 : i32
    return %arg0, %arg2, %c0_i32 : i32, i32, i32
  }
  func.func @transform_3(%arg0: i32, %arg1: i32, %arg2: i32) -> (i32, i32, i32) {
    %c0_i32 = arith.constant 0 : i32
    %c0_i32_0 = arith.constant 0 : i32
    return %arg0, %arg1, %c0_i32 : i32, i32, i32
  }
  func.func @transform_4(%arg0: i32, %arg1: i32, %arg2: i32) -> (i32, i32, i32) {
    %c0_i32 = arith.constant 0 : i32
    %c0_i32_0 = arith.constant 0 : i32
    return %arg0, %c0_i32, %arg2 : i32, i32, i32
  }
  func.func @transform_5(%arg0: i32, %arg1: i32, %arg2: i32) -> (i32, i32, i32) {
    %c0_i32 = arith.constant 0 : i32
    %c0_i32_0 = arith.constant 0 : i32
    return %arg0, %arg1, %c0_i32 : i32, i32, i32
  }
}

</mosaic_0001>

<bundles_post_ra>
// kernel: tpu_custom_call.1
= control target key start
LH: loop header
LB: loop body
LE: loop exit
PB: predicated region body
PF: predicated region fallthrough
CT: control target
= control target key end

     0   :  { %s5747_s0 = inlined_call_operand.vmem [shape: bf16[2,4,256,32], index: 0, kind: input, shape index: {}]   ;;  %s5748_s1 = inlined_call_operand.vmem [shape: bf16[2,32,256], index: 1, kind: input, shape index: {}]   ;;  %s5749_s2 = inlined_call_operand.vmem [shape: bf16[2,256,128], index: 2, kind: input, shape index: {}]   ;;  %s5750_s3 = inlined_call_operand.vmem [shape: s32[2,256,1], index: 3, kind: input, shape index: {}]   ;;  %s5751_s4 = inlined_call_operand.vmem [shape: s32[2,1,256], index: 4, kind: input, shape index: {}]   ;;  %s5752_s5 = inlined_call_operand.hbm [shape: f32[2,256,128], index: 5, kind: output, shape index: {}]  }
   0x1   :  { %5825 = sst [smem:[#allocation83_spill]] %s5747_s0 }
   0x2   :  { %5826 = sst [smem:[#allocation84_spill]] %s5748_s1 }
   0x3   :  { %5827 = sst [smem:[#allocation85_spill]] %s5752_s5 }
   0x4   :  { %10 = vsyncpa [#allocation8], 0 }
   0x5   :  { %12 = vsyncpa [#allocation8 + $0x1], 0  ;;  %s4042_s18 = smov 0   ;;  %s4044_s19 = smov 0  }
   0x6   :  { %s4046_s20 = smov 0   ;;  %s4048_s21 = smov 0  }
   0x7   :  { %s4050_s22 = smov 0   ;;  %s4052_s23 = smov 0  }
   0x8   :  { %s4054_s24 = smov 0   ;;  %s4056_s25 = smov 0  }
   0x9   :  { %s4058_s26 = smov 0   ;;  %s4060_s27 = smov 0  }
   0xa   :  { %s4062_s28 = smov 0   ;;  %s4064_s29 = smov 0  }
   0xb LB: > { %5828 = sst [smem:[#allocation10_spill]] %s3954_s18  ;;  %s3251_s30 = sadd.s32 4294967295, %s3998_s29   ;;  %s3998_s29 = sphi %s4064_s29, %s18_s29   ;;  %s3994_s28 = sphi %s4062_s28, %s6015_s28   ;;  %s3990_s27 = sphi %s4060_s27, %s6014_s27   ;;  %s3986_s26 = sphi %s4058_s26, %s6013_s26   ;;  %s3982_s25 = sphi %s4056_s25, %s6012_s25   ;;  %s3978_s24 = sphi %s4054_s24, %s6011_s24   ;;  %s3974_s23 = sphi %s4052_s23, %s6010_s23   ;;  %s3970_s22 = sphi %s4050_s22, %s6009_s22   ;;  %s3966_s21 = sphi %s4048_s21, %s6017_s21   ;;  %s3962_s20 = sphi %s4046_s20, %s6007_s20   ;;  %s3958_s19 = sphi %s4044_s19, %s6006_s19   ;;  %s3954_s18 = sphi %s4042_s18, %s6016_s18  }
   0xc   : > { %5829 = sst [smem:[#allocation11_spill]] %s3962_s20  ;;  %s3252_s6 = sadd.s32 4294967294, %s3998_s29  }
   0xd   : > { %5830 = sst [smem:[#allocation12_spill]] %s3970_s22  ;;  %s30_s7 = sadd.s32 1, %s3986_s26 }
   0xe   : > { %5831 = sst [smem:[#allocation13_spill]] %s3986_s26  ;;  %p31_p0 = scmp.ge.s32.totalorder %s30_s7, 2 }
   0xf   : > { %5832 = sst [smem:[#allocation14_spill]] %s3990_s27  ;;  %s33_s8 = sadd.s32 1, %s3990_s27 }
  0x10   : > { %5833 = sst [smem:[#allocation15_spill]] %s3994_s28  ;;  %s37_s9 = sadd.s32 1, %s3994_s28 }
  0x11   : > { %p53_p1 = scmp.ne.s32.totalorder %s3970_s22, %s3966_s21  ;;  %s6019_s7 = smov (%p31_p0, %s30_s7), 0 }
  0x12   : > { %5834 = sst [smem:[#allocation16_spill]] %s6019_s7  ;;  %s6021_s8 = smov (!%p31_p0, %s33_s8), %s3990_s27 }
  0x13   : > { %s46_s10 = sadd.s32 1, %s3970_s22  ;;  %p54_p2 = scmp.eq.s32.totalorder %s3998_s29, 0 }
  0x14   : > { %p35_p3 = scmp.ge.s32.totalorder %s6021_s8, 4  ;;  %s70_s11 = ssub.s32 %s3986_s26, %s6019_s7 }
  0x15   : > { %p4119_p4 = por %p54_p2, %p53_p1  ;;  %p81_p5 = scmp.ne.s32.totalorder %s3962_s20, %s3958_s19 }
  0x16   : > { %s6023_s8 = smov (%p35_p3, %s6021_s8), 0  ;;  %s6025_s9 = smov (!%p35_p3, %s37_s9), %s3994_s28 }
  0x17   : > { %5836 = sst [smem:[#allocation17_spill]] %s6023_s8  ;;  %s42_s13 = ssub.s32 %s3990_s27, %s6023_s8 }
  0x18   : > { %p4130_p6 = por %p81_p5, %p54_p2  ;;  %p39_p7 = scmp.ge.s32.totalorder %s6025_s9, 2 }
  0x19   : > { %p197_p8 = scmp.eq.s32.totalorder %s3251_s30, 15  ;;  %p202_p9 = scmp.ne.s32.totalorder %s3966_s21, %s3954_s18 }
  0x1a   : > { %p203_p10 = scmp.eq.s32.totalorder %s3252_s6, 15  ;;  %s6027_s9 = smov (%p39_p7, %s6025_s9), 0 }
  0x1b   : > { %5838 = sst [smem:[#allocation18_spill]] %s6027_s9  ;;  %p4141_p11 = por %p197_p8, %p53_p1 }
  0x1c   : > { %p4145_p12 = por %p203_p10, %p202_p9  ;;  %s41_s17 = ssub.s32 %s3994_s28, %s6027_s9 }
  0x1d   : > { %s74_s8 = sadd.s32 1, %s3962_s20  ;;  %s43_s7 = sor.u32 %s42_s13, %s41_s17 }
  0x1e   : > { %s5840_s16 = scalar_select %p4145_p12, 1, 0 }
  0x1f   : > { %s71_s5 = sor.u32 %s70_s11, %s41_s17  ;;  %p44_p13 = scmp.eq.s32.totalorder %s43_s7, 0 }
  0x20   : > { %5841 = sst [smem:[#allocation19_spill]] %s5840_s16  ;;  %p72_p0 = scmp.eq.s32.totalorder %s71_s5, 0 }
  0x21   : > { %s4153_s30 = scalar_select %p44_p13, %s3970_s22, %s46_s10  }
  0x22   : > { %s4156_s6 = scalar_select %p72_p0, %s3962_s20, %s74_s8  }
  0x23   : > { %5842 = sst [smem:[#allocation20_spill]] %s4153_s30  ;;  %p3254_p2 = scmp.ge.s32.totalorder %s3998_s29, 16 }
  0x24   : > { %5843 = sst [smem:[#allocation21_spill]] %s4156_s6 }
  0x25   : > { %219 = sbr.rel (%p3254_p2) target bundleno = 82 (0x52), region = 16 }
  0x2a   : > { %222 = sbr.rel (!%p4119_p4) target bundleno = 68 (0x44), region = 20  ;;  %s224_s16 = sand.u32 (%p4119_p4), 1, %s3970_s22  }
  0x2b   : > { %s3256_s9 = sshll.u32 (%p4119_p4), %s3990_s27, 3  ;;  %s3255_s18 = sshll.u32 (%p4119_p4), %s224_s16, 7 }
  0x2c   : > { %s3257_s13 = sshll.u32 (%p4119_p4), %s3994_s28, 7  ;;  %s5844_s0 = sld [smem:[#allocation83_spill]] (%p4119_p4) }
  0x2d   : > { %s229_s11 = sadd.s32 (%p4119_p4), %s3257_s13, %s3256_s9  ;;  %s226_s9 = scalar_lea.vmem (%p4119_p4), [#allocation5], %s3255_s18 }
  0x2e   : > { %s3258_s7 = sshll.u32 (%p4119_p4), %s229_s11, 2 }
  0x32   : > { %s4167_s8 = scalar_lea.vmem %s5844_s0, %s3258_s7 }
  0x33   : > { %v248_v0 = vld [vmem:[%s4167_s8] sm:$0xff]   ;;  %v252_v1 = vld [vmem:[%s4167_s8 + $0x8] sm:$0xff]   ;;  %v256_v2 = vld [vmem:[%s4167_s8 + $0x10] sm:$0xff]  }
  0x34   : > { %249 = vst [vmem:[%s226_s9] sm:$0xff] %v248_v0   ;;  %v260_v3 = vld [vmem:[%s4167_s8 + $0x18] sm:$0xff]   ;;  %v264_v4 = vld [vmem:[%s4167_s8 + $0x80] sm:$0xff]   ;;  %v268_v5 = vld [vmem:[%s4167_s8 + $0x88] sm:$0xff]  }
  0x35   : > { %253 = vst [vmem:[%s226_s9 + $0x8] sm:$0xff] %v252_v1   ;;  %v272_v6 = vld [vmem:[%s4167_s8 + $0x90] sm:$0xff]   ;;  %v276_v7 = vld [vmem:[%s4167_s8 + $0x98] sm:$0xff]   ;;  %v280_v8 = vld [vmem:[%s4167_s8 + $0x100] sm:$0xff]  }
  0x36   : > { %257 = vst [vmem:[%s226_s9 + $0x10] sm:$0xff] %v256_v2   ;;  %v284_v9 = vld [vmem:[%s4167_s8 + $0x108] sm:$0xff]   ;;  %v288_v10 = vld [vmem:[%s4167_s8 + $0x110] sm:$0xff]   ;;  %v292_v11 = vld [vmem:[%s4167_s8 + $0x118] sm:$0xff]  }
  0x37   : > { %261 = vst [vmem:[%s226_s9 + $0x18] sm:$0xff] %v260_v3   ;;  %v296_v12 = vld [vmem:[%s4167_s8 + $0x180] sm:$0xff]   ;;  %v300_v13 = vld [vmem:[%s4167_s8 + $0x188] sm:$0xff]   ;;  %v304_v14 = vld [vmem:[%s4167_s8 + $0x190] sm:$0xff]  }
  0x38   : > { %265 = vst [vmem:[%s226_s9 + $0x20] sm:$0xff] %v264_v4   ;;  %v308_v15 = vld [vmem:[%s4167_s8 + $0x198] sm:$0xff]  }
  0x39   : > { %269 = vst [vmem:[%s226_s9 + $0x28] sm:$0xff] %v268_v5  }
  0x3a   : > { %273 = vst [vmem:[%s226_s9 + $0x30] sm:$0xff] %v272_v6  }
  0x3b   : > { %277 = vst [vmem:[%s226_s9 + $0x38] sm:$0xff] %v276_v7  }
  0x3c   : > { %281 = vst [vmem:[%s226_s9 + $0x40] sm:$0xff] %v280_v8  }
  0x3d   : > { %285 = vst [vmem:[%s226_s9 + $0x48] sm:$0xff] %v284_v9  }
  0x3e   : > { %289 = vst [vmem:[%s226_s9 + $0x50] sm:$0xff] %v288_v10  }
  0x3f   : > { %293 = vst [vmem:[%s226_s9 + $0x58] sm:$0xff] %v292_v11  }
  0x40   : > { %297 = vst [vmem:[%s226_s9 + $0x60] sm:$0xff] %v296_v12  }
  0x41   : > { %301 = vst [vmem:[%s226_s9 + $0x68] sm:$0xff] %v300_v13  }
  0x42   : > { %305 = vst [vmem:[%s226_s9 + $0x70] sm:$0xff] %v304_v14  }
  0x43   : > { %309 = vst [vmem:[%s226_s9 + $0x78] sm:$0xff] %v308_v15  }
  0x44 PF: > { %399 = sbr.rel (!%p4130_p6) target bundleno = 82 (0x52), region = 61  ;;  %s401_s18 = sand.u32 (%p4130_p6), 1, %s3962_s20  }
  0x45   : > { %s3260_s12 = sshll.u32 (%p4130_p6), %s3994_s28, 3  ;;  %s3259_s16 = sshll.u32 (%p4130_p6), %s401_s18, 4 }
  0x46   : > { %s405_s17 = sadd.s32 (%p4130_p6), %s3986_s26, %s3260_s12  ;;  %s5845_s1 = sld [smem:[#allocation84_spill]] (%p4130_p6) }
  0x47   : > { %s3261_s13 = sshll.u32 (%p4130_p6), %s405_s17, 2  ;;  %s403_s10 = scalar_lea.vmem (%p4130_p6), [#allocation6], %s3259_s16 }
  0x4c   : > { %s407_s5 = scalar_lea.vmem %s5845_s1, %s3261_s13 }
  0x4d   : > { %v424_v16 = vld [vmem:[%s407_s5] sm:$0xf]  ;;  %v426_v17 = vld [vmem:[%s407_s5 + $0x8] sm:$0xf]  ;;  %v428_v18 = vld [vmem:[%s407_s5 + $0x10] sm:$0xf] }
  0x4e   : > { %425 = vst [vmem:[%s403_s10] sm:$0xf] %v424_v16  ;;  %v430_v19 = vld [vmem:[%s407_s5 + $0x18] sm:$0xf] }
  0x4f   : > { %427 = vst [vmem:[%s403_s10 + $0x4] sm:$0xf] %v426_v17 }
  0x50   : > { %429 = vst [vmem:[%s403_s10 + $0x8] sm:$0xf] %v428_v18 }
  0x51   : > { %431 = vst [vmem:[%s403_s10 + $0xc] sm:$0xf] %v430_v19 }
  0x52 PF: > { %p3262_p1 = scmp.ge.s32.totalorder %s3998_s29, 1  ;;  %p498_p3 = scmp.lt.s32.totalorder %s3998_s29, 17 }
  0x54   : > { %p499_p4 = pnand %p3262_p1, %p498_p3 }
  0x56   : > { %502 = sbr.rel (%p499_p4) target bundleno = 1492 (0x5d4), region = 114 }
  0x5b   : > { %s4196_s14 = sand.u32 1, %s3966_s21   ;;  %s512_s8 = sand.u32 1, %s3958_s19  }
  0x5c   : > { %s3263_s9 = sshll.u32 %s4196_s14, 7  ;;  %s4200_s18 = sshll.u32 %s512_s8, 4 }
  0x5d   : > { %s3265_s12 = sshll.u32 %s4196_s14, 6  ;;  %s3266_s16 = sshll.u32 %s3974_s23, 4 }
  0x5e   : > { %p570_p5 = scmp.lt.s32.totalorder %s3982_s25, 1  ;;  %p572_p6 = scmp.lt.s32.totalorder %s3266_s16, 31 }
  0x5f   : > { %s4206_s17 = sshll.u32 %s3978_s24, 3  ;;  %p591_p8 = scmp.lt.s32.totalorder %s3974_s23, 1 }
  0x60   : > { %s571_s13 = scalar_select %p570_p5, %s3982_s25, 1 }
  0x61   : > { %s6029_s16 = smov (!%p572_p6, %s3266_s16), 31  ;;  %p582_p7 = scmp.lt.s32.totalorder %s4206_s17, 31 }
  0x62   : > { %s3267_s11 = sshll.u32 %s571_s13, 5  ;;  %s3272_s0 = sshll.u32 %s571_s13, 1 }
  0x63   : > { %s575_s7 = sadd.s32 %s3267_s11, %s6029_s16  ;;  %s4229_s5 = scalar_lea.vmem [#allocation5], %s3263_s9 }
  0x64   : > { %s3268_s19 = sshll.u32 %s575_s7, 2  ;;  %s4232_s13 = scalar_lea.vmem [#allocation7], %s3265_s12 }
  0x65   : > { %s4214_s8 = scalar_lea.vmem %s5749_s2, %s3268_s19  ;;  %s514_s19 = scalar_lea.vmem [#allocation6], %s4200_s18 }
  0x66   : > { %s583_s1 = scalar_select %p582_p7, %s4206_s17, 31 }
  0x67   : > { %s592_s28 = scalar_select %p591_p8, %s3974_s23, 1 }
  0x68   : > { %s585_s24 = sadd.s32 %s3267_s11, %s583_s1  ;;  %p3273_p9 = scmp.ne.s32.totalorder %s3974_s23, 0 }
  0x69   : > { %s3271_s27 = sshll.u32 %s585_s24, 3  ;;  %s4218_s26 = sadd.s32 %s3272_s0, %s592_s28 }
  0x6a   : > { %s4223_s6 = scalar_lea.vmem %s5750_s3, %s3271_s27  ;;  %s595_s20 = scalar_lea.vmem %s5751_s4, %s4218_s26 }
  0x6b   : > { %601 = sbr.rel (%p3273_p9) target bundleno = 209 (0xd1), region = 126 }
  0x70   : > { %vm602_vm0 = vcmask 7168   ;;  %v4000_v20 = vmov -1e+30   ;;  %v4001_v21 = vmov 0.0   ;;  %vm667_vm1 = vcmask 261120  }
  0x71   : > { %603 = vst.msk [vmem:[#allocation2] sm:$0xff] %vm602_vm0, %v4000_v20 }
  0x72   : > { %604 = vst.msk [vmem:[#allocation2 + $0x8] sm:$0xff] %vm602_vm0, %v4000_v20 }
  0x73   : > { %605 = vst.msk [vmem:[#allocation2 + $0x10] sm:$0xff] %vm602_vm0, %v4000_v20 }
  0x74   : > { %606 = vst.msk [vmem:[#allocation2 + $0x18] sm:$0xff] %vm602_vm0, %v4000_v20 }
  0x75   : > { %607 = vst.msk [vmem:[#allocation2 + $0x20] sm:$0xff] %vm602_vm0, %v4000_v20 }
  0x76   : > { %608 = vst.msk [vmem:[#allocation2 + $0x28] sm:$0xff] %vm602_vm0, %v4000_v20 }
  0x77   : > { %609 = vst.msk [vmem:[#allocation2 + $0x30] sm:$0xff] %vm602_vm0, %v4000_v20 }
  0x78   : > { %610 = vst.msk [vmem:[#allocation2 + $0x38] sm:$0xff] %vm602_vm0, %v4000_v20 }
  0x79   : > { %611 = vst.msk [vmem:[#allocation2 + $0x40] sm:$0xff] %vm602_vm0, %v4000_v20 }
  0x7a   : > { %612 = vst.msk [vmem:[#allocation2 + $0x48] sm:$0xff] %vm602_vm0, %v4000_v20 }
  0x7b   : > { %613 = vst.msk [vmem:[#allocation2 + $0x50] sm:$0xff] %vm602_vm0, %v4000_v20 }
  0x7c   : > { %614 = vst.msk [vmem:[#allocation2 + $0x58] sm:$0xff] %vm602_vm0, %v4000_v20 }
  0x7d   : > { %615 = vst.msk [vmem:[#allocation2 + $0x60] sm:$0xff] %vm602_vm0, %v4000_v20 }
  0x7e   : > { %616 = vst.msk [vmem:[#allocation2 + $0x68] sm:$0xff] %vm602_vm0, %v4000_v20 }
  0x7f   : > { %617 = vst.msk [vmem:[#allocation2 + $0x70] sm:$0xff] %vm602_vm0, %v4000_v20 }
  0x80   : > { %618 = vst.msk [vmem:[#allocation2 + $0x78] sm:$0xff] %vm602_vm0, %v4000_v20 }
  0x81   : > { %619 = vst.msk [vmem:[#allocation2 + $0x80] sm:$0xff] %vm602_vm0, %v4000_v20 }
  0x82   : > { %620 = vst.msk [vmem:[#allocation2 + $0x88] sm:$0xff] %vm602_vm0, %v4000_v20 }
  0x83   : > { %621 = vst.msk [vmem:[#allocation2 + $0x90] sm:$0xff] %vm602_vm0, %v4000_v20 }
  0x84   : > { %622 = vst.msk [vmem:[#allocation2 + $0x98] sm:$0xff] %vm602_vm0, %v4000_v20 }
  0x85   : > { %623 = vst.msk [vmem:[#allocation2 + $0xa0] sm:$0xff] %vm602_vm0, %v4000_v20 }
  0x86   : > { %624 = vst.msk [vmem:[#allocation2 + $0xa8] sm:$0xff] %vm602_vm0, %v4000_v20 }
  0x87   : > { %625 = vst.msk [vmem:[#allocation2 + $0xb0] sm:$0xff] %vm602_vm0, %v4000_v20 }
  0x88   : > { %626 = vst.msk [vmem:[#allocation2 + $0xb8] sm:$0xff] %vm602_vm0, %v4000_v20 }
  0x89   : > { %627 = vst.msk [vmem:[#allocation2 + $0xc0] sm:$0xff] %vm602_vm0, %v4000_v20 }
  0x8a   : > { %628 = vst.msk [vmem:[#allocation2 + $0xc8] sm:$0xff] %vm602_vm0, %v4000_v20 }
  0x8b   : > { %629 = vst.msk [vmem:[#allocation2 + $0xd0] sm:$0xff] %vm602_vm0, %v4000_v20 }
  0x8c   : > { %630 = vst.msk [vmem:[#allocation2 + $0xd8] sm:$0xff] %vm602_vm0, %v4000_v20 }
  0x8d   : > { %631 = vst.msk [vmem:[#allocation2 + $0xe0] sm:$0xff] %vm602_vm0, %v4000_v20 }
  0x8e   : > { %632 = vst.msk [vmem:[#allocation2 + $0xe8] sm:$0xff] %vm602_vm0, %v4000_v20 }
  0x8f   : > { %633 = vst.msk [vmem:[#allocation2 + $0xf0] sm:$0xff] %vm602_vm0, %v4000_v20 }
  0x90   : > { %634 = vst.msk [vmem:[#allocation2 + $0xf8] sm:$0xff] %vm602_vm0, %v4000_v20 }
  0x91   : > { %635 = vst.msk [vmem:[#allocation3] sm:$0xff] %vm602_vm0, %v4001_v21 }
  0x92   : > { %636 = vst.msk [vmem:[#allocation3 + $0x8] sm:$0xff] %vm602_vm0, %v4001_v21 }
  0x93   : > { %637 = vst.msk [vmem:[#allocation3 + $0x10] sm:$0xff] %vm602_vm0, %v4001_v21 }
  0x94   : > { %638 = vst.msk [vmem:[#allocation3 + $0x18] sm:$0xff] %vm602_vm0, %v4001_v21 }
  0x95   : > { %639 = vst.msk [vmem:[#allocation3 + $0x20] sm:$0xff] %vm602_vm0, %v4001_v21 }
  0x96   : > { %640 = vst.msk [vmem:[#allocation3 + $0x28] sm:$0xff] %vm602_vm0, %v4001_v21 }
  0x97   : > { %641 = vst.msk [vmem:[#allocation3 + $0x30] sm:$0xff] %vm602_vm0, %v4001_v21 }
  0x98   : > { %642 = vst.msk [vmem:[#allocation3 + $0x38] sm:$0xff] %vm602_vm0, %v4001_v21 }
  0x99   : > { %643 = vst.msk [vmem:[#allocation3 + $0x40] sm:$0xff] %vm602_vm0, %v4001_v21 }
  0x9a   : > { %644 = vst.msk [vmem:[#allocation3 + $0x48] sm:$0xff] %vm602_vm0, %v4001_v21 }
  0x9b   : > { %645 = vst.msk [vmem:[#allocation3 + $0x50] sm:$0xff] %vm602_vm0, %v4001_v21 }
  0x9c   : > { %646 = vst.msk [vmem:[#allocation3 + $0x58] sm:$0xff] %vm602_vm0, %v4001_v21 }
  0x9d   : > { %647 = vst.msk [vmem:[#allocation3 + $0x60] sm:$0xff] %vm602_vm0, %v4001_v21 }
  0x9e   : > { %648 = vst.msk [vmem:[#allocation3 + $0x68] sm:$0xff] %vm602_vm0, %v4001_v21 }
  0x9f   : > { %649 = vst.msk [vmem:[#allocation3 + $0x70] sm:$0xff] %vm602_vm0, %v4001_v21 }
  0xa0   : > { %650 = vst.msk [vmem:[#allocation3 + $0x78] sm:$0xff] %vm602_vm0, %v4001_v21 }
  0xa1   : > { %651 = vst.msk [vmem:[#allocation3 + $0x80] sm:$0xff] %vm602_vm0, %v4001_v21 }
  0xa2   : > { %652 = vst.msk [vmem:[#allocation3 + $0x88] sm:$0xff] %vm602_vm0, %v4001_v21 }
  0xa3   : > { %653 = vst.msk [vmem:[#allocation3 + $0x90] sm:$0xff] %vm602_vm0, %v4001_v21 }
  0xa4   : > { %654 = vst.msk [vmem:[#allocation3 + $0x98] sm:$0xff] %vm602_vm0, %v4001_v21 }
  0xa5   : > { %655 = vst.msk [vmem:[#allocation3 + $0xa0] sm:$0xff] %vm602_vm0, %v4001_v21 }
  0xa6   : > { %656 = vst.msk [vmem:[#allocation3 + $0xa8] sm:$0xff] %vm602_vm0, %v4001_v21 }
  0xa7   : > { %657 = vst.msk [vmem:[#allocation3 + $0xb0] sm:$0xff] %vm602_vm0, %v4001_v21 }
  0xa8   : > { %658 = vst.msk [vmem:[#allocation3 + $0xb8] sm:$0xff] %vm602_vm0, %v4001_v21 }
  0xa9   : > { %659 = vst.msk [vmem:[#allocation3 + $0xc0] sm:$0xff] %vm602_vm0, %v4001_v21 }
  0xaa   : > { %660 = vst.msk [vmem:[#allocation3 + $0xc8] sm:$0xff] %vm602_vm0, %v4001_v21 }
  0xab   : > { %661 = vst.msk [vmem:[#allocation3 + $0xd0] sm:$0xff] %vm602_vm0, %v4001_v21 }
  0xac   : > { %662 = vst.msk [vmem:[#allocation3 + $0xd8] sm:$0xff] %vm602_vm0, %v4001_v21 }
  0xad   : > { %663 = vst.msk [vmem:[#allocation3 + $0xe0] sm:$0xff] %vm602_vm0, %v4001_v21 }
  0xae   : > { %664 = vst.msk [vmem:[#allocation3 + $0xe8] sm:$0xff] %vm602_vm0, %v4001_v21 }
  0xaf   : > { %665 = vst.msk [vmem:[#allocation3 + $0xf0] sm:$0xff] %vm602_vm0, %v4001_v21 }
  0xb0   : > { %666 = vst.msk [vmem:[#allocation3 + $0xf8] sm:$0xff] %vm602_vm0, %v4001_v21 }
  0xb1   : > { %668 = vst.msk [vmem:[#allocation4] sm:$0xff] %vm667_vm1, %v4001_v21 }
  0xb2   : > { %669 = vst.msk [vmem:[#allocation4 + $0x8] sm:$0xff] %vm667_vm1, %v4001_v21 }
  0xb3   : > { %670 = vst.msk [vmem:[#allocation4 + $0x10] sm:$0xff] %vm667_vm1, %v4001_v21 }
  0xb4   : > { %671 = vst.msk [vmem:[#allocation4 + $0x18] sm:$0xff] %vm667_vm1, %v4001_v21 }
  0xb5   : > { %672 = vst.msk [vmem:[#allocation4 + $0x20] sm:$0xff] %vm667_vm1, %v4001_v21 }
  0xb6   : > { %673 = vst.msk [vmem:[#allocation4 + $0x28] sm:$0xff] %vm667_vm1, %v4001_v21 }
  0xb7   : > { %674 = vst.msk [vmem:[#allocation4 + $0x30] sm:$0xff] %vm667_vm1, %v4001_v21 }
  0xb8   : > { %675 = vst.msk [vmem:[#allocation4 + $0x38] sm:$0xff] %vm667_vm1, %v4001_v21 }
  0xb9   : > { %676 = vst.msk [vmem:[#allocation4 + $0x40] sm:$0xff] %vm667_vm1, %v4001_v21 }
  0xba   : > { %677 = vst.msk [vmem:[#allocation4 + $0x48] sm:$0xff] %vm667_vm1, %v4001_v21 }
  0xbb   : > { %678 = vst.msk [vmem:[#allocation4 + $0x50] sm:$0xff] %vm667_vm1, %v4001_v21 }
  0xbc   : > { %679 = vst.msk [vmem:[#allocation4 + $0x58] sm:$0xff] %vm667_vm1, %v4001_v21 }
  0xbd   : > { %680 = vst.msk [vmem:[#allocation4 + $0x60] sm:$0xff] %vm667_vm1, %v4001_v21 }
  0xbe   : > { %681 = vst.msk [vmem:[#allocation4 + $0x68] sm:$0xff] %vm667_vm1, %v4001_v21 }
  0xbf   : > { %682 = vst.msk [vmem:[#allocation4 + $0x70] sm:$0xff] %vm667_vm1, %v4001_v21 }
  0xc0   : > { %683 = vst.msk [vmem:[#allocation4 + $0x78] sm:$0xff] %vm667_vm1, %v4001_v21 }
  0xc1   : > { %684 = vst.msk [vmem:[#allocation4 + $0x80] sm:$0xff] %vm667_vm1, %v4001_v21 }
  0xc2   : > { %685 = vst.msk [vmem:[#allocation4 + $0x88] sm:$0xff] %vm667_vm1, %v4001_v21 }
  0xc3   : > { %686 = vst.msk [vmem:[#allocation4 + $0x90] sm:$0xff] %vm667_vm1, %v4001_v21 }
  0xc4   : > { %687 = vst.msk [vmem:[#allocation4 + $0x98] sm:$0xff] %vm667_vm1, %v4001_v21 }
  0xc5   : > { %688 = vst.msk [vmem:[#allocation4 + $0xa0] sm:$0xff] %vm667_vm1, %v4001_v21 }
  0xc6   : > { %689 = vst.msk [vmem:[#allocation4 + $0xa8] sm:$0xff] %vm667_vm1, %v4001_v21 }
  0xc7   : > { %690 = vst.msk [vmem:[#allocation4 + $0xb0] sm:$0xff] %vm667_vm1, %v4001_v21 }
  0xc8   : > { %691 = vst.msk [vmem:[#allocation4 + $0xb8] sm:$0xff] %vm667_vm1, %v4001_v21 }
  0xc9   : > { %692 = vst.msk [vmem:[#allocation4 + $0xc0] sm:$0xff] %vm667_vm1, %v4001_v21 }
  0xca   : > { %693 = vst.msk [vmem:[#allocation4 + $0xc8] sm:$0xff] %vm667_vm1, %v4001_v21 }
  0xcb   : > { %694 = vst.msk [vmem:[#allocation4 + $0xd0] sm:$0xff] %vm667_vm1, %v4001_v21 }
  0xcc   : > { %695 = vst.msk [vmem:[#allocation4 + $0xd8] sm:$0xff] %vm667_vm1, %v4001_v21 }
  0xcd   : > { %696 = vst.msk [vmem:[#allocation4 + $0xe0] sm:$0xff] %vm667_vm1, %v4001_v21 }
  0xce   : > { %697 = vst.msk [vmem:[#allocation4 + $0xe8] sm:$0xff] %vm667_vm1, %v4001_v21 }
  0xcf   : > { %698 = vst.msk [vmem:[#allocation4 + $0xf0] sm:$0xff] %vm667_vm1, %v4001_v21 }
  0xd0   : > { %699 = vst.msk [vmem:[#allocation4 + $0xf8] sm:$0xff] %vm667_vm1, %v4001_v21 }
  0xd1 PF: > { %v700_v22 = vld [vmem:[%s4223_s6] sm:$0xff]  ;;  %v3515_v23 = vld [vmem:[%s514_s19 + $0x8] sm:$0xff]  ;;  %v4002_v24 = vmov 0   ;;  %v702_v26 = vld [vmem:[%s4223_s6 + $0x10] sm:$0xff]  ;;  %vm886_vm2 = vcmask 261120   ;;  %s4003_s0 = smov 96   ;;  %v709_v60 = vlaneseq }
  0xd2   : > { %3673 = vset.pattern.permute.xlu0 %v4002_v24  ;;  %3674 = vset.pattern.permute.xlu1 %v4002_v24  ;;  %v3514_v25 = vld [vmem:[%s514_s19] sm:$0xff]  ;;  %v3507_v28 = vld [vmem:[%s4229_s5 + $0x48] sm:$0xff]  ;;  %v703_v30 = vld [vmem:[%s4223_s6 + $0x18] sm:$0xff]  ;;  %s4004_s1 = smov 64   ;;  %s4005_s22 = smov 32  }
  0xd3   : > { %715 = vperm.xlu0 %3673, %v700_v22   ;;  %941 = vmatpush.bf16.msra.mxu0 %v3515_v23  ;;  %v3498_v27 = vld [vmem:[%s4229_s5] sm:$0xff]  ;;  %v701_v29 = vld [vmem:[%s4223_s6 + $0x8] sm:$0xff]  ;;  %v706_v32 = vld [vmem:[%s4223_s6 + $0x30] sm:$0xff]  ;;  %s3274_s27 = sshll.u32 %s3974_s23, 7  ;;  %v710_v63 = vand.u32 127, %v709_v60  ;;  %p3491_p10 = scmp.ne.s32.totalorder %s3974_s23, 1 }
  0xd4   : > { %3548 = vmatpush.bf16.msra.mxu2 %v3515_v23  ;;  %721 = vperm.xlu1 %3674, %v702_v26   ;;  %v704_v31 = vld [vmem:[%s4223_s6 + $0x20] sm:$0xff]  ;;  %v707_v33 = vld [vmem:[%s4223_s6 + $0x38] sm:$0xff]  ;;  %v3499_v34 = vld [vmem:[%s4229_s5 + $0x8] sm:$0xff]  ;;  %v712_v0 = vstv %s3274_s27  ;;  %s4008_s23 = smov (!%p3491_p10), 64   ;;  %s4009_s26 = smov (!%p3491_p10), 96  }
  0xd5   : > { %3675 = vset.pattern.permute.xlu2 %v4002_v24  ;;  %v3508_v35 = vld [vmem:[%s4229_s5 + $0x50] sm:$0xff]  ;;  %v3531_v37 = vld [vmem:[%s4214_s8 + $0x38] sm:$0xff]  ;;  %v705_v38 = vld [vmem:[%s4223_s6 + $0x28] sm:$0xff]  ;;  %v4458_v1 = vadd.s32 %v712_v0, %v710_v63 }
  0xd6   : > { %727 = vperm.xlu2 %3675, %v704_v31   ;;  %v3530_v36 = vld [vmem:[%s4214_s8 + $0x30] sm:$0xff]  ;;  %v3528_v39 = vld [vmem:[%s4214_s8 + $0x20] sm:$0xff]  ;;  %v3527_v40 = vld [vmem:[%s4214_s8 + $0x18] sm:$0xff] }
  0xd7   : > { %942 = vmatpush.bf16.msra.mxu0 %v3514_v25  ;;  %v3529_v41 = vld [vmem:[%s4214_s8 + $0x28] sm:$0xff]  ;;  %v3500_v42 = vld [vmem:[%s4229_s5 + $0x10] sm:$0xff]  ;;  %v3509_v43 = vld [vmem:[%s4229_s5 + $0x58] sm:$0xff]  ;;  %vm747_vm3 = vcmp.lt.s32.totalorder %v4458_v1, 256 }
  0xd8   : > { %3549 = vmatpush.bf16.msra.mxu2 %v3514_v25  ;;  %v3526_v44 = vld [vmem:[%s4214_s8 + $0x10] sm:$0xff]  ;;  %v3525_v45 = vld [vmem:[%s4214_s8 + $0x8] sm:$0xff]  ;;  %v3524_v46 = vld [vmem:[%s4214_s8] sm:$0xff] }
  0xd9   : > { %v3501_v47 = vld [vmem:[%s4229_s5 + $0x18] sm:$0xff]  ;;  %v3510_v48 = vld [vmem:[%s4229_s5 + $0x60] sm:$0xff]  ;;  %v3537_v50 = vld [vmem:[%s4214_s8 + $0x28] sm:$0xff] }
  0xda   : > { %3347 = vmatmul.msk.bf16.vlgmr.msra.gmra.mxu0 %vm886_vm2, %v3498_v27  ;;  %v3539_v49 = vld [vmem:[%s4214_s8 + $0x38] sm:$0xff]  ;;  %v3538_v51 = vld [vmem:[%s4214_s8 + $0x30] sm:$0xff]  ;;  %v3502_v52 = vld [vmem:[%s4229_s5 + $0x20] sm:$0xff] }
  0xdb   : > { %3356 = vmatmul.msk.bf16.vlgmr.msra.gmra.mxu2 %vm886_vm2, %v3507_v28  ;;  %718 = vperm.xlu0 %3673, %v701_v29   ;;  %v3511_v53 = vld [vmem:[%s4229_s5 + $0x68] sm:$0xff]  ;;  %v3547_v54 = vld [vmem:[%s4214_s8 + $0x38] sm:$0xff]  ;;  %v3546_v55 = vld [vmem:[%s4214_s8 + $0x30] sm:$0xff] }
  0xdc   : > { %724 = vperm.xlu1 %3674, %v703_v30   ;;  %v3503_v56 = vld [vmem:[%s4229_s5 + $0x28] sm:$0xff]  ;;  %v3512_v58 = vld [vmem:[%s4229_s5 + $0x70] sm:$0xff]  ;;  %v3536_v59 = vld [vmem:[%s4214_s8 + $0x20] sm:$0xff] }
  0xdd   : > { %v3545_v57 = vld [vmem:[%s4214_s8 + $0x28] sm:$0xff]  ;;  %v3504_v61 = vld [vmem:[%s4229_s5 + $0x30] sm:$0xff]  ;;  %v3513_v62 = vld [vmem:[%s4229_s5 + $0x78] sm:$0xff] }
  0xde   : > { %730 = vperm.xlu2 %3675, %v705_v38   ;;  %v4465_v2 = vld [vmem:[%s595_s20] ss:$0 sm:$0xff]  ;;  %v3505_v6 = vld [vmem:[%s4229_s5 + $0x38] sm:$0xff]  ;;  %v3522_v27 = vld [vmem:[%s4214_s8 + $0x30] sm:$0xff]  ;;  %s4007_s20 = smov (!%p3491_p10), 32  }
  0xdf   : > { %v3506_v12 = vld [vmem:[%s4229_s5 + $0x40] sm:$0xff]  ;;  %v3523_v20 = vld [vmem:[%s4214_s8 + $0x38] sm:$0xff]  ;;  %v3521_v30 = vld [vmem:[%s4214_s8 + $0x28] sm:$0xff] }
  0xe0   : > { %1929 = vmatpush.bf16.msra.mxu1 %v3523_v20  ;;  %v3544_v38 = vld [vmem:[%s4214_s8 + $0x20] sm:$0xff]  ;;  %v3543_v20 = vld [vmem:[%s4214_s8 + $0x18] sm:$0xff]  ;;  %v1606_v24 = vld [vmem:[#allocation3 + $0xb0] sm:$0xff] }
  0xe3   : > { %733 = vperm.xlu0 %3673, %v706_v32  }
  0xe4   : > { %736 = vperm.xlu1 %3674, %v707_v33   ;;  %1930 = vmatpush.bf16.msra.mxu1 %v3522_v27 }
  0xe6   : > { %2120 = vrot.lane.b32.xlu2 %v3529_v41, %s4003_s0 }
  0xe8   : > { %1931 = vmatpush.bf16.msra.mxu1 %v3521_v30 }
  0xea   : > { %3348 = vmatmul.msk.bf16.gmra.mxu0 %vm886_vm2, %v3499_v34  ;;  %v3520_v34 = vld [vmem:[%s4214_s8 + $0x20] sm:$0xff] }
  0xeb   : > { %3357 = vmatmul.msk.bf16.gmra.mxu2 %vm886_vm2, %v3508_v35  ;;  %2122 = vrot.lane.b32.xlu0 %v3530_v36, %s4003_s0 }
  0xec   : > { %2124 = vrot.lane.b32.xlu1 %v3531_v37, %s4003_s0  ;;  %1932 = vmatpush.bf16.msra.mxu1 %v3520_v34  ;;  %v3519_v37 = vld [vmem:[%s4214_s8 + $0x18] sm:$0xff]  ;;  %v4645_v34 = vld [vmem:[#allocation2] sm:$0xff] }
  0xed   : > { %5862 = vst [vmem:[#allocation22_spill] sm:$0xff] %v4645_v34 }
  0xee   : > { %2326 = vrot.lane.b32.xlu2 %v3537_v50, %s4004_s1 }
  0xf0   : > { %1933 = vmatpush.bf16.msra.mxu1 %v3519_v37 }
  0xf3   : > { %2118 = vrot.lane.b32.xlu0 %v3528_v39, %s4003_s0 }
  0xf4   : > { %2116 = vrot.lane.b32.xlu1 %v3527_v40, %s4003_s0 }
  0xfa   : > { %3349 = vmatmul.msk.bf16.gmra.mxu0 %vm886_vm2, %v3500_v42  ;;  %v3518_v42 = vld [vmem:[%s4214_s8 + $0x10] sm:$0xff] }
  0xfb   : > { %3358 = vmatmul.msk.bf16.gmra.mxu2 %vm886_vm2, %v3509_v43  ;;  %2114 = vrot.lane.b32.xlu0 %v3526_v44, %s4003_s0  ;;  %v3535_v43 = vld [vmem:[%s4214_s8 + $0x18] sm:$0xff] }
  0xfc   : > { %2112 = vrot.lane.b32.xlu1 %v3525_v45, %s4003_s0  ;;  %1934 = vmatpush.bf16.msra.mxu1 %v3518_v42  ;;  %v4659_v42 = vld [vmem:[#allocation2 + $0x8] sm:$0xff] }
 0x103   : > { %2110 = vrot.lane.b32.xlu0 %v3524_v46, %s4003_s0  ;;  %v3517_v46 = vld [vmem:[%s4214_s8 + $0x8] sm:$0xff] }
 0x104   : > { %2532 = vrot.lane.b32.xlu1 %v3545_v57, %s4005_s22  ;;  %1935 = vmatpush.bf16.msra.mxu1 %v3517_v46  ;;  %v5926_v57 = vld [vmem:[#allocation22_spill] sm:$0xff] }
 0x10a   : > { %3350 = vmatmul.msk.bf16.gmra.mxu0 %vm886_vm2, %v3501_v47 }
 0x10b   : > { %3359 = vmatmul.msk.bf16.gmra.mxu2 %vm886_vm2, %v3510_v48  ;;  %2330 = vrot.lane.b32.xlu0 %v3539_v49, %s4004_s1 }
 0x113   : > { %2328 = vrot.lane.b32.xlu0 %v3538_v51, %s4004_s1  ;;  %v3516_v51 = vld [vmem:[%s4214_s8] sm:$0xff] }
 0x114   : > { %1936 = vmatpush.bf16.msra.mxu1 %v3516_v51 }
 0x11a   : > { %3351 = vmatmul.msk.bf16.gmra.mxu0 %vm886_vm2, %v3502_v52 }
 0x11b   : > { %3360 = vmatmul.msk.bf16.gmra.mxu2 %vm886_vm2, %v3511_v53  ;;  %2536 = vrot.lane.b32.xlu0 %v3547_v54, %s4005_s22 }
 0x123   : > { %2534 = vrot.lane.b32.xlu0 %v3546_v55, %s4005_s22 }
 0x12a   : > { %3352 = vmatmul.msk.bf16.gmra.mxu0 %vm886_vm2, %v3503_v56 }
 0x12b   : > { %3361 = vmatmul.msk.bf16.gmra.mxu2 %vm886_vm2, %v3512_v58  ;;  %2324 = vrot.lane.b32.xlu0 %v3536_v59, %s4004_s1 }
 0x130   : > { %v728_v3 = vpop.permute.xlu2 %727 }
 0x131   : > { %vm743_vm4 = vcmp.eq.s32.totalorder %v728_v3, %v4465_v2 }
 0x132   : > { %vm4471_vm5 = vmand %vm743_vm4, %vm747_vm3 }
 0x138   : > { %v731_v18 = vpop.permute.xlu2 %730 }
 0x139   : > { %vm744_vm0 = vcmp.eq.s32.totalorder %v731_v18, %v4465_v2 }
 0x13a   : > { %3353 = vmatmul.msk.bf16.gmra.mxu0 %vm886_vm2, %v3504_v61  ;;  %vm4552_vm1 = vmand %vm744_vm0, %vm747_vm3 }
 0x13b   : > { %3362 = vmatmul.msk.bf16.gmra.mxu2 %vm886_vm2, %v3513_v62 }
 0x140   : > { %v2121_v29 = vpop.permute.xlu2 %2120 }
 0x145   : > { %v716_v5 = vpop.permute.xlu0 %715 }
 0x146   : > { %v722_v7 = vpop.permute.xlu1 %721  ;;  %vm739_vm8 = vcmp.eq.s32.totalorder %v716_v5, %v4465_v2 }
 0x147   : > { %vm4490_vm9 = vmand %vm739_vm8, %vm747_vm3  ;;  %vm741_vm12 = vcmp.eq.s32.totalorder %v722_v7, %v4465_v2 }
 0x148   : > { %vm4511_vm14 = vmand %vm741_vm12, %vm747_vm3  ;;  %v2327_v59 = vpop.permute.xlu2 %2326 }
 0x14a   : > { %3354 = vmatmul.msk.bf16.gmra.mxu0 %vm886_vm2, %v3505_v6 }
 0x14d   : > { %v719_v8 = vpop.permute.xlu0 %718 }
 0x14e   : > { %v725_v9 = vpop.permute.xlu1 %724  ;;  %vm740_vm13 = vcmp.eq.s32.totalorder %v719_v8, %v4465_v2 }
 0x14f   : > { %vm742_vm6 = vcmp.eq.s32.totalorder %v725_v9, %v4465_v2  ;;  %vm4518_vm15 = vmand %vm740_vm13, %vm747_vm3 }
 0x150   : > { %vm4480_vm7 = vmand %vm742_vm6, %vm747_vm3 }
 0x155   : > { %v4485_v11 = vpop.permute.xlu0 %733 }
 0x156   : > { %v737_v13 = vpop.permute.xlu1 %736  ;;  %vm745_vm4 = vcmp.eq.s32.totalorder %v4485_v11, %v4465_v2 }
 0x157   : > { %v944_v15 = vpop.f32.mrf.mxu0  ;;  %vm746_vm10 = vcmp.eq.s32.totalorder %v737_v13, %v4465_v2  ;;  %vm4576_vm6 = vmand %vm745_vm4, %vm747_vm3 }
 0x158   : > { %v4497_v16 = vsel %vm4490_vm9, %v944_v15, -1e+30  ;;  %vm4501_vm11 = vmand %vm746_vm10, %vm747_vm3  ;;  %vm1744_vm3 = vcmask 7168  }
 0x159   : > { %1104 = vmax.xlane.f32.xlu2 %v4497_v16 }
 0x15a   : > { %3355 = vmatmul.msk.bf16.gmra.mxu0 %vm886_vm2, %v3506_v12 }
 0x15d   : > { %v2123_v21 = vpop.permute.xlu0 %2122 }
 0x15e   : > { %v989_v22 = vpop.f32.mrf.mxu2  ;;  %v2125_v23 = vpop.permute.xlu1 %2124 }
 0x15f   : > { %v946_v25 = vpop.f32.mrf.mxu0  ;;  %2134 = vmatpush.bf16.msrb.mxu2 %v2125_v23  ;;  %3550 = vmatpush.bf16.msra.mxu3 %v2125_v23  ;;  %v4524_v26 = vsel %vm4511_vm14, %v989_v22, -1e+30  ;;  %v3534_v22 = vld [vmem:[%s4214_s8 + $0x10] sm:$0xff] }
 0x160   : > { %v4529_v28 = vsel %vm4518_vm15, %v946_v25, -1e+30  ;;  %1140 = vmax.xlane.f32.xlu1 %v4524_v26 }
 0x161   : > { %1106 = vmax.xlane.f32.xlu0 %v4529_v28 }
 0x163   : > { %2135 = vmatpush.bf16.msrb.mxu2 %v2123_v21  ;;  %3551 = vmatpush.bf16.msra.mxu3 %v2123_v21 }
 0x165   : > { %v2119_v31 = vpop.permute.xlu0 %2118 }
 0x166   : > { %v4534_v32 = vpop.f32.mrf.mxu2  ;;  %v2117_v36 = vpop.permute.xlu1 %2116 }
 0x167   : > { %v949_v33 = vpop.f32.mrf.mxu0  ;;  %2136 = vmatpush.bf16.msrb.mxu2 %v2121_v29  ;;  %3552 = vmatpush.bf16.msra.mxu3 %v2121_v29  ;;  %v4599_v5 = vsel %vm4480_vm7, %v4534_v32, -1e+30 }
 0x168   : > { %v4539_v35 = vsel %vm4511_vm14, %v949_v33, -1e+30 }
 0x169   : > { %1108 = vmax.xlane.f32.xlu1 %v4539_v35 }
 0x16b   : > { %2137 = vmatpush.bf16.msrb.mxu2 %v2119_v31  ;;  %3553 = vmatpush.bf16.msra.mxu3 %v2119_v31 }
 0x16d   : > { %v2115_v39 = vpop.permute.xlu0 %2114 }
 0x16e   : > { %v994_v40 = vpop.f32.mrf.mxu2  ;;  %v2113_v45 = vpop.permute.xlu1 %2112 }
 0x16f   : > { %v4544_v41 = vpop.f32.mrf.mxu0  ;;  %2138 = vmatpush.bf16.msrb.mxu2 %v2117_v36  ;;  %3554 = vmatpush.bf16.msra.mxu3 %v2117_v36  ;;  %v4604_v6 = vsel %vm4471_vm5, %v994_v40, -1e+30  ;;  %v4657_v40 = vld [vmem:[#allocation2 + $0x90] sm:$0xff] }
 0x170   : > { %5863 = vst [vmem:[#allocation23_spill] sm:$0xff] %v4657_v40  ;;  %v4676_v51 = vsel %vm4480_vm7, %v4544_v41, -1e+30 }
 0x171   : > { %2530 = vrot.lane.b32.xlu2 %v3544_v38, %s4005_s22 }
 0x173   : > { %2139 = vmatpush.bf16.msrb.mxu2 %v2115_v39  ;;  %3555 = vmatpush.bf16.msra.mxu3 %v2115_v39 }
 0x175   : > { %2322 = vrot.lane.b32.xlu0 %v3535_v43, %s4004_s1  ;;  %v2111_v47 = vpop.permute.xlu0 %2110 }
 0x176   : > { %v996_v48 = vpop.f32.mrf.mxu2  ;;  %v2533_v29 = vpop.permute.xlu1 %2532 }
 0x177   : > { %v4558_v49 = vpop.f32.mrf.mxu0  ;;  %2140 = vmatpush.bf16.msrb.mxu2 %v2113_v45  ;;  %3556 = vmatpush.bf16.msra.mxu3 %v2113_v45  ;;  %v4562_v50 = vsel %vm4552_vm1, %v996_v48, -1e+30 }
 0x178   : > { %1146 = vmax.xlane.f32.xlu1 %v4562_v50  ;;  %v4695_v41 = vsel %vm4471_vm5, %v4558_v49, -1e+30 }
 0x17b   : > { %2141 = vmatpush.bf16.msrb.mxu2 %v2111_v47  ;;  %3557 = vmatpush.bf16.msra.mxu3 %v2111_v47 }
 0x17d   : > { %v2331_v52 = vpop.permute.xlu0 %2330 }
 0x17e   : > { %v4566_v53 = vpop.f32.mrf.mxu2 }
 0x17f   : > { %2340 = vmatpush.bf16.msrb.mxu3 %v2331_v52  ;;  %v4568_v54 = vpop.f32.mrf.mxu0  ;;  %v4678_v52 = vld [vmem:[#allocation2 + $0x10] sm:$0xff]  ;;  %v4710_v49 = vsel %vm4576_vm6, %v4566_v53, -1e+30 }
 0x180   : > { %5865 = vst [vmem:[#allocation25_spill] sm:$0xff] %v4678_v52 }
 0x185   : > { %v2329_v55 = vpop.permute.xlu0 %2328 }
 0x186   : > { %v4572_v56 = vpop.f32.mrf.mxu2  ;;  %2341 = vmatpush.bf16.msrb.mxu3 %v2329_v55  ;;  %v4684_v55 = vsel %vm4552_vm1, %v4568_v54, -1e+30 }
 0x187   : > { %v959_v58 = vpop.f32.mrf.mxu0  ;;  %v4701_v54 = vsel %vm4501_vm11, %v4572_v56, -1e+30 }
 0x188   : > { %v4582_v60 = vsel %vm4576_vm6, %v959_v58, -1e+30 }
 0x189   : > { %1116 = vmax.xlane.f32.xlu1 %v4582_v60 }
 0x18a   : > { %2342 = vmatpush.bf16.msrb.mxu3 %v2327_v59 }
 0x18d   : > { %v2537_v61 = vpop.permute.xlu0 %2536 }
 0x18e   : > { %v1004_v62 = vpop.f32.mrf.mxu2  ;;  %2546 = vmatpush.bf16.msrb.mxu1 %v2537_v61 }
 0x18f   : > { %v4585_v63 = vpop.f32.mrf.mxu0  ;;  %v4589_v0 = vsel %vm4490_vm9, %v1004_v62, -1e+30 }
 0x191   : > { %1152 = vmax.xlane.f32.xlu1 %v4589_v0 }
 0x195   : > { %v2535_v1 = vpop.permute.xlu0 %2534 }
 0x196   : > { %v4592_v2 = vpop.f32.mrf.mxu2  ;;  %2547 = vmatpush.bf16.msrb.mxu1 %v2535_v1  ;;  %v4704_v1 = vld [vmem:[#allocation2 + $0xa8] sm:$0xff] }
 0x197   : > { %v4594_v3 = vpop.f32.mrf.mxu0  ;;  %5866 = vst [vmem:[#allocation26_spill] sm:$0xff] %v4704_v1  ;;  %v4729_v53 = vsel %vm4518_vm15, %v4592_v2, -1e+30 }
 0x19a   : > { %1142 = vmax.xlane.f32.xlu2 %v4599_v5  ;;  %2548 = vmatpush.bf16.msrb.mxu1 %v2533_v29  ;;  %v4744_v29 = vld [vmem:[#allocation2 + $0xc0] sm:$0xff] }
 0x19b   : > { %5870 = vst [vmem:[#allocation30_spill] sm:$0xff] %v4744_v29 }
 0x19d   : > { %v2325_v7 = vpop.permute.xlu0 %2324 }
 0x19e   : > { %v4606_v8 = vpop.f32.mrf.mxu2  ;;  %2343 = vmatpush.bf16.msrb.mxu3 %v2325_v7 }
 0x19f   : > { %v966_v9 = vpop.f32.mrf.mxu0  ;;  %1144 = vmax.xlane.f32.xlu0 %v4604_v6 }
 0x1a0   : > { %v4611_v11 = vsel %vm4518_vm15, %v966_v9, -1e+30  ;;  %v4721_v9 = vsel %vm4501_vm11, %v4585_v63, -1e+30 }
 0x1a1   : > { %1122 = vmax.xlane.f32.xlu1 %v4611_v11 }
 0x1a6   : > { %v1011_v12 = vpop.f32.mrf.mxu2 }
 0x1a7   : > { %v4614_v13 = vpop.f32.mrf.mxu0  ;;  %v4618_v15 = vsel %vm4480_vm7, %v1011_v12, -1e+30  ;;  %v3533_v12 = vld [vmem:[%s4214_s8 + $0x8] sm:$0xff] }
 0x1a8   : > { %v4742_v63 = vsel %vm4511_vm14, %v4614_v13, -1e+30  ;;  %v4758_v13 = vld [vmem:[#allocation2 + $0x98] sm:$0xff] }
 0x1a9   : > { %1158 = vmax.xlane.f32.xlu1 %v4618_v15 }
 0x1ae   : > { %v4621_v18 = vpop.f32.mrf.mxu2 }
 0x1af   : > { %v4624_v21 = vpop.f32.mrf.mxu0 }
 0x1b2   : > { %2528 = vrot.lane.b32.xlu2 %v3543_v20, %s4005_s22  ;;  %v4731_v20 = vld [vmem:[#allocation2 + $0x30] sm:$0xff] }
 0x1b3   : > { %2320 = vrot.lane.b32.xlu0 %v3534_v22, %s4004_s1  ;;  %5868 = vst [vmem:[#allocation28_spill] sm:$0xff] %v4731_v20 }
 0x1b6   : > { %v4629_v23 = vpop.f32.mrf.mxu2 }
 0x1b7   : > { %v974_v25 = vpop.f32.mrf.mxu0 }
 0x1b8   : > { %v4633_v27 = vsel %vm4471_vm5, %v974_v25, -1e+30 }
 0x1b9   : > { %1128 = vmax.xlane.f32.xlu1 %v4633_v27 }
 0x1be   : > { %v1019_v30 = vpop.f32.mrf.mxu2 }
 0x1bf   : > { %v4636_v31 = vpop.f32.mrf.mxu0  ;;  %v4640_v32 = vsel %vm4576_vm6, %v1019_v30, -1e+30 }
 0x1c1   : > { %1164 = vmax.xlane.f32.xlu1 %v4640_v32 }
 0x1c7   : > { %v4643_v33 = vpop.f32.mrf.mxu0 }
 0x1cc   : > { %v1105_v36 = vpop.xlane.xlu2 %1104 }
 0x1cd   : > { %v4648_v37 = vmax.f32 %v4645_v34, %v1105_v36  ;;  %v4755_v36 = vsel %vm4471_vm5, %v4621_v18, -1e+30  ;;  %v4920_v34 = vld [vmem:[#allocation2 + $0x50] sm:$0xff] }
 0x1ce   : > { %5899 = vst [vmem:[#allocation59_spill] sm:$0xff] %v4920_v34 }
 0x1cf   : > { %1777 = vst.msk [vmem:[#allocation2] sm:$0xff] %vm1744_vm3, %v4648_v37  ;;  %v981_v38 = vpop.f32.mrf.mxu0 }
 0x1d0   : > { %v4654_v39 = vsel %vm4501_vm11, %v981_v38, -1e+30 }
 0x1d1   : > { %1134 = vmax.xlane.f32.xlu1 %v4654_v39 }
 0x1d3   : > { %v1141_v43 = vpop.xlane.xlu1 %1140 }
 0x1d4   : > { %v1107_v45 = vpop.xlane.xlu0 %1106  ;;  %v4662_v46 = vmax.f32 %v4657_v40, %v1141_v43  ;;  %v2531_v61 = vpop.permute.xlu2 %2530  ;;  %v4868_v40 = vld [vmem:[#allocation2 + $0xb8] sm:$0xff] }
 0x1d5   : > { %v4665_v47 = vmax.f32 %v4659_v42, %v1107_v45  ;;  %2549 = vmatpush.bf16.msrb.mxu1 %v2531_v61  ;;  %v4773_v61 = vsel %vm4552_vm1, %v4636_v31, -1e+30  ;;  %5890 = vst [vmem:[#allocation50_spill] sm:$0xff] %v4868_v40 }
 0x1d6   : > { %5864 = vst [vmem:[#allocation24_spill] sm:$0xff] %v4662_v46 }
 0x1d7   : > { %1795 = vst.msk [vmem:[#allocation2 + $0x90] sm:$0xff] %vm1744_vm3, %v4662_v46 }
 0x1d8   : > { %1778 = vst.msk [vmem:[#allocation2 + $0x8] sm:$0xff] %vm1744_vm3, %v4665_v47 }
 0x1db   : > { %1110 = vmax.xlane.f32.xlu2 %v4676_v51 }
 0x1dc   : > { %v1109_v58 = vpop.xlane.xlu1 %1108 }
 0x1dd   : > { %1114 = vmax.xlane.f32.xlu0 %v4684_v55  ;;  %v4688_v59 = vmax.f32 %v4678_v52, %v1109_v58  ;;  %v4768_v58 = vld [vmem:[#allocation2 + $0xa0] sm:$0xff] }
 0x1de   : > { %5872 = vst [vmem:[#allocation32_spill] sm:$0xff] %v4768_v58 }
 0x1df   : > { %1779 = vst.msk [vmem:[#allocation2 + $0x10] sm:$0xff] %vm1744_vm3, %v4688_v59 }
 0x1e3   : > { %1112 = vmax.xlane.f32.xlu2 %v4695_v41 }
 0x1e5   : > { %1150 = vmax.xlane.f32.xlu0 %v4701_v54 }
 0x1e7   : > { %v2323_v62 = vpop.permute.xlu0 %2322 }
 0x1e8   : > { %2344 = vmatpush.bf16.msrb.mxu3 %v2323_v62  ;;  %v4775_v62 = vld [vmem:[#allocation2 + $0x48] sm:$0xff] }
 0x1e9   : > { %5873 = vst [vmem:[#allocation33_spill] sm:$0xff] %v4775_v62 }
 0x1ea   : > { %1303 = vperm.xlu1 %3674, %v4665_v47  }
 0x1eb   : > { %1148 = vmax.xlane.f32.xlu2 %v4710_v49  ;;  %v1147_v7 = vpop.xlane.xlu1 %1146 }
 0x1ec   : > { %v4714_v56 = vmax.f32 %v4704_v1, %v1147_v7 }
 0x1ee   : > { %5867 = vst [vmem:[#allocation27_spill] sm:$0xff] %v4714_v56 }
 0x1ef   : > { %1798 = vst.msk [vmem:[#allocation2 + $0xa8] sm:$0xff] %vm1744_vm3, %v4714_v56 }
 0x1f3   : > { %1118 = vmax.xlane.f32.xlu2 %v4721_v9 }
 0x1f9   : > { %2318 = vrot.lane.b32.xlu0 %v3533_v12, %s4004_s1 }
 0x1fb   : > { %1154 = vmax.xlane.f32.xlu2 %v4729_v53 }
 0x1fc   : > { %v1117_v22 = vpop.xlane.xlu1 %1116 }
 0x1fd   : > { %v4735_v25 = vmax.f32 %v4731_v20, %v1117_v22  ;;  %v4854_v20 = vld [vmem:[#allocation2 + $0x28] sm:$0xff] }
 0x1fe   : > { %5886 = vst [vmem:[#allocation46_spill] sm:$0xff] %v4854_v20 }
 0x1ff   : > { %5869 = vst [vmem:[#allocation29_spill] sm:$0xff] %v4735_v25 }
 0x200   : > { %1783 = vst.msk [vmem:[#allocation2 + $0x30] sm:$0xff] %vm1744_vm3, %v4735_v25 }
 0x203   : > { %1124 = vmax.xlane.f32.xlu2 %v4742_v63 }
 0x204   : > { %v1153_v2 = vpop.xlane.xlu1 %1152 }
 0x205   : > { %v4748_v30 = vmax.f32 %v4744_v29, %v1153_v2  ;;  %v1021_v2 = vpop.f32.mrf.mxu2  ;;  %v4809_v29 = vsel %vm4511_vm14, %v4606_v8, -1e+30 }
 0x206   : > { %v4790_v31 = vsel %vm4501_vm11, %v1021_v2, -1e+30 }
 0x207   : > { %5871 = vst [vmem:[#allocation31_spill] sm:$0xff] %v4748_v30 }
 0x208   : > { %1801 = vst.msk [vmem:[#allocation2 + $0xc0] sm:$0xff] %vm1744_vm3, %v4748_v30 }
 0x20b   : > { %1160 = vmax.xlane.f32.xlu2 %v4755_v36 }
 0x20d   : > { %v1143_v38 = vpop.xlane.xlu2 %1142 }
 0x20e   : > { %v4761_v43 = vmax.f32 %v4758_v13, %v1143_v38  ;;  %v4792_v38 = vld [vmem:[#allocation2 + $0xd8] sm:$0xff] }
 0x20f   : > { %5876 = vst [vmem:[#allocation36_spill] sm:$0xff] %v4792_v38 }
 0x210   : > { %1796 = vst.msk [vmem:[#allocation2 + $0x98] sm:$0xff] %vm1744_vm3, %v4761_v43  ;;  %1393 = vperm.xlu1 %3674, %v4761_v43  }
 0x212   : > { %v1145_v18 = vpop.xlane.xlu0 %1144 }
 0x213   : > { %v4778_v7 = vmax.f32 %v4768_v58, %v1145_v18  ;;  %1130 = vmax.xlane.f32.xlu2 %v4773_v61 }
 0x214   : > { %v1123_v12 = vpop.xlane.xlu1 %1122 }
 0x215   : > { %5874 = vst [vmem:[#allocation34_spill] sm:$0xff] %v4778_v7  ;;  %v4784_v22 = vmax.f32 %v4775_v62, %v1123_v12  ;;  %v4803_v12 = vsel %vm4490_vm9, %v4594_v3, -1e+30  ;;  %v2529_v2 = vpop.permute.xlu2 %2528  ;;  %v4822_v3 = vsel %vm4480_vm7, %v4624_v21, -1e+30 }
 0x216   : > { %1797 = vst.msk [vmem:[#allocation2 + $0xa0] sm:$0xff] %vm1744_vm3, %v4778_v7  ;;  %2550 = vmatpush.bf16.msrb.mxu1 %v2529_v2  ;;  %v4842_v21 = vsel %vm4576_vm6, %v4643_v33, -1e+30 }
 0x217   : > { %5875 = vst [vmem:[#allocation35_spill] sm:$0xff] %v4784_v22 }
 0x218   : > { %1786 = vst.msk [vmem:[#allocation2 + $0x48] sm:$0xff] %vm1744_vm3, %v4784_v22 }
 0x21b   : > { %1166 = vmax.xlane.f32.xlu2 %v4790_v31 }
 0x21c   : > { %v1159_v18 = vpop.xlane.xlu1 %1158 }
 0x21d   : > { %v4796_v45 = vmax.f32 %v4792_v38, %v1159_v18  ;;  %v4811_v18 = vld [vmem:[#allocation2 + $0x60] sm:$0xff] }
 0x21e   : > { %5878 = vst [vmem:[#allocation38_spill] sm:$0xff] %v4811_v18 }
 0x21f   : > { %5877 = vst [vmem:[#allocation37_spill] sm:$0xff] %v4796_v45 }
 0x220   : > { %1804 = vst.msk [vmem:[#allocation2 + $0xd8] sm:$0xff] %vm1744_vm3, %v4796_v45 }
 0x223   : > { %1120 = vmax.xlane.f32.xlu0 %v4803_v12 }
 0x225   : > { %v2321_v48 = vpop.permute.xlu0 %2320 }
 0x226   : > { %2345 = vmatpush.bf16.msrb.mxu3 %v2321_v48  ;;  %v4824_v48 = vld [vmem:[#allocation2 + $0xf0] sm:$0xff] }
 0x227   : > { %5880 = vst [vmem:[#allocation40_spill] sm:$0xff] %v4824_v48 }
 0x22b   : > { %1156 = vmax.xlane.f32.xlu0 %v4809_v29 }
 0x22c   : > { %v1129_v38 = vpop.xlane.xlu1 %1128 }
 0x22d   : > { %v4815_v62 = vmax.f32 %v4811_v18, %v1129_v38  ;;  %v4836_v38 = vsel %vm4552_vm1, %v4629_v23, -1e+30  ;;  %v4844_v18 = vld [vmem:[#allocation2 + $0x78] sm:$0xff] }
 0x22e   : > { %5882 = vst [vmem:[#allocation42_spill] sm:$0xff] %v4836_v38  ;;  %v4852_v23 = vld [vmem:[#allocation2 + $0x18] sm:$0xff] }
 0x22f   : > { %5879 = vst [vmem:[#allocation39_spill] sm:$0xff] %v4815_v62 }
 0x230   : > { %1789 = vst.msk [vmem:[#allocation2 + $0x60] sm:$0xff] %vm1744_vm3, %v4815_v62 }
 0x231   : > { %5883 = vst [vmem:[#allocation43_spill] sm:$0xff] %v4844_v18 }
 0x232   : > { %5885 = vst [vmem:[#allocation45_spill] sm:$0xff] %v4852_v23 }
 0x233   : > { %1126 = vmax.xlane.f32.xlu0 %v4822_v3  ;;  %1388 = vperm.xlu2 %3675, %v4662_v46  }
 0x234   : > { %v1165_v8 = vpop.xlane.xlu1 %1164 }
 0x235   : > { %v4829_v2 = vmax.f32 %v4824_v48, %v1165_v8 }
 0x237   : > { %5881 = vst [vmem:[#allocation41_spill] sm:$0xff] %v4829_v2 }
 0x238   : > { %1807 = vst.msk [vmem:[#allocation2 + $0xf0] sm:$0xff] %vm1744_vm3, %v4829_v2 }
 0x23b   : > { %1162 = vmax.xlane.f32.xlu0 %v4836_v38 }
 0x243   : > { %1132 = vmax.xlane.f32.xlu0 %v4842_v21 }
 0x244   : > { %v1135_v8 = vpop.xlane.xlu1 %1134 }
 0x245   : > { %v4848_v48 = vmax.f32 %v4844_v18, %v1135_v8  ;;  %v4866_v8 = vld [vmem:[#allocation2 + $0x20] sm:$0xff] }
 0x246   : > { %5889 = vst [vmem:[#allocation49_spill] sm:$0xff] %v4866_v8 }
 0x247   : > { %5884 = vst [vmem:[#allocation44_spill] sm:$0xff] %v4848_v48 }
 0x248   : > { %1792 = vst.msk [vmem:[#allocation2 + $0x78] sm:$0xff] %vm1744_vm3, %v4848_v48 }
 0x24e   : > { %v1111_v58 = vpop.xlane.xlu2 %1110 }
 0x24f   : > { %v4857_v1 = vmax.f32 %v4852_v23, %v1111_v58  ;;  %v984_v58 = vpop.f32.mrf.mxu0 }
 0x250   : > { %v1115_v33 = vpop.xlane.xlu0 %1114 }
 0x251   : > { %5887 = vst [vmem:[#allocation47_spill] sm:$0xff] %v4857_v1  ;;  %v4862_v38 = vmax.f32 %v4854_v20, %v1115_v33  ;;  %v4889_v20 = vld [vmem:[#allocation2 + $0xb0] sm:$0xff] }
 0x252   : > { %1780 = vst.msk [vmem:[#allocation2 + $0x18] sm:$0xff] %vm1744_vm3, %v4857_v1 }
 0x253   : > { %5888 = vst [vmem:[#allocation48_spill] sm:$0xff] %v4862_v38 }
 0x254   : > { %1782 = vst.msk [vmem:[#allocation2 + $0x28] sm:$0xff] %vm1744_vm3, %v4862_v38 }
 0x255   : > { %5893 = vst [vmem:[#allocation53_spill] sm:$0xff] %v4889_v20 }
 0x256   : > { %v1113_v18 = vpop.xlane.xlu2 %1112 }
 0x257   : > { %v4871_v46 = vmax.f32 %v4866_v8, %v1113_v18  ;;  %1298 = vperm.xlu0 %3673, %v4648_v37   ;;  %v4886_v18 = vsel %vm4490_vm9, %v984_v58, -1e+30 }
 0x258   : > { %v1151_v23 = vpop.xlane.xlu0 %1150 }
 0x259   : > { %5891 = vst [vmem:[#allocation51_spill] sm:$0xff] %v4871_v46  ;;  %v4879_v33 = vmax.f32 %v4868_v40, %v1151_v23  ;;  %1318 = vperm.xlu1 %3674, %v4871_v46   ;;  %v4899_v40 = vld [vmem:[#allocation2 + $0x38] sm:$0xff]  ;;  %v4909_v23 = vld [vmem:[#allocation2 + $0xc8] sm:$0xff] }
 0x25a   : > { %1781 = vst.msk [vmem:[#allocation2 + $0x20] sm:$0xff] %vm1744_vm3, %v4871_v46 }
 0x25b   : > { %5892 = vst [vmem:[#allocation52_spill] sm:$0xff] %v4879_v33 }
 0x25c   : > { %1800 = vst.msk [vmem:[#allocation2 + $0xb8] sm:$0xff] %vm1744_vm3, %v4879_v33  ;;  %1136 = vmax.xlane.f32.xlu2 %v4886_v18 }
 0x25d   : > { %5895 = vst [vmem:[#allocation55_spill] sm:$0xff] %v4899_v40 }
 0x25e   : > { %v1149_v52 = vpop.xlane.xlu2 %1148  ;;  %5897 = vst [vmem:[#allocation57_spill] sm:$0xff] %v4909_v23 }
 0x25f   : > { %v4892_v8 = vmax.f32 %v4889_v20, %v1149_v52 }
 0x260   : > { %v5942_v44 = vld [vmem:[#allocation51_spill] sm:$0xff] }
 0x261   : > { %5894 = vst [vmem:[#allocation54_spill] sm:$0xff] %v4892_v8  ;;  %1408 = vperm.xlu1 %3674, %v4892_v8  }
 0x262   : > { %1799 = vst.msk [vmem:[#allocation2 + $0xb0] sm:$0xff] %vm1744_vm3, %v4892_v8 }
 0x266   : > { %v1119_v58 = vpop.xlane.xlu2 %1118 }
 0x267   : > { %v4902_v46 = vmax.f32 %v4899_v40, %v1119_v58  ;;  %v4931_v58 = vld [vmem:[#allocation2 + $0xe0] sm:$0xff] }
 0x268   : > { %5901 = vst [vmem:[#allocation61_spill] sm:$0xff] %v4931_v58 }
 0x269   : > { %5896 = vst [vmem:[#allocation56_spill] sm:$0xff] %v4902_v46  ;;  %1333 = vperm.xlu1 %3674, %v4902_v46  }
 0x26a   : > { %1784 = vst.msk [vmem:[#allocation2 + $0x38] sm:$0xff] %vm1744_vm3, %v4902_v46 }
 0x26b   : > { %v2319_v52 = vpop.permute.xlu0 %2318 }
 0x26c   : > { %2346 = vmatpush.bf16.msrb.mxu3 %v2319_v52 }
 0x26e   : > { %v1155_v20 = vpop.xlane.xlu2 %1154 }
 0x26f   : > { %v4912_v8 = vmax.f32 %v4909_v23, %v1155_v20  ;;  %v4958_v20 = vld [vmem:[#allocation2 + $0xf8] sm:$0xff] }
 0x270   : > { %5906 = vst [vmem:[#allocation66_spill] sm:$0xff] %v4958_v20 }
 0x271   : > { %5898 = vst [vmem:[#allocation58_spill] sm:$0xff] %v4912_v8  ;;  %1423 = vperm.xlu1 %3674, %v4912_v8  }
 0x272   : > { %1802 = vst.msk [vmem:[#allocation2 + $0xc8] sm:$0xff] %vm1744_vm3, %v4912_v8  ;;  %v986_v8 = vpop.f32.mrf.mxu0 }
 0x274   : > { %1308 = vperm.xlu2 %3675, %v4688_v59  }
 0x276   : > { %v1125_v46 = vpop.xlane.xlu2 %1124 }
 0x277   : > { %v4923_v52 = vmax.f32 %v4920_v34, %v1125_v46  ;;  %v4938_v46 = vsel %vm4518_vm15, %v986_v8, -1e+30  ;;  %v4970_v8 = vld [vmem:[#allocation2 + $0x40] sm:$0xff] }
 0x278   : > { %5903 = vst [vmem:[#allocation63_spill] sm:$0xff] %v4938_v46 }
 0x279   : > { %5900 = vst [vmem:[#allocation60_spill] sm:$0xff] %v4923_v52  ;;  %1348 = vperm.xlu1 %3674, %v4923_v52  }
 0x27a   : > { %1787 = vst.msk [vmem:[#allocation2 + $0x50] sm:$0xff] %vm1744_vm3, %v4923_v52  ;;  %v4947_v52 = vld [vmem:[#allocation2 + $0x68] sm:$0xff] }
 0x27b   : > { %5904 = vst [vmem:[#allocation64_spill] sm:$0xff] %v4947_v52 }
 0x27c   : > { %1403 = vperm.xlu2 %3675, %v4714_v56   ;;  %5908 = vst [vmem:[#allocation68_spill] sm:$0xff] %v4970_v8 }
 0x27e   : > { %v1161_v23 = vpop.xlane.xlu2 %1160 }
 0x27f   : > { %v4934_v40 = vmax.f32 %v4931_v58, %v1161_v23 }
 0x281   : > { %5902 = vst [vmem:[#allocation62_spill] sm:$0xff] %v4934_v40  ;;  %1138 = vmax.xlane.f32.xlu0 %v4938_v46  ;;  %1438 = vperm.xlu1 %3674, %v4934_v40  }
 0x282   : > { %1805 = vst.msk [vmem:[#allocation2 + $0xe0] sm:$0xff] %vm1744_vm3, %v4934_v40  ;;  %v3542_v40 = vld [vmem:[%s4214_s8 + $0x10] sm:$0xff] }
 0x284   : > { %1328 = vperm.xlu2 %3675, %v4735_v25  }
 0x286   : > { %v1131_v23 = vpop.xlane.xlu2 %1130 }
 0x287   : > { %v4950_v34 = vmax.f32 %v4947_v52, %v1131_v23 }
 0x289   : > { %5905 = vst [vmem:[#allocation65_spill] sm:$0xff] %v4950_v34  ;;  %1363 = vperm.xlu1 %3674, %v4950_v34  }
 0x28a   : > { %1790 = vst.msk [vmem:[#allocation2 + $0x68] sm:$0xff] %vm1744_vm3, %v4950_v34 }
 0x28c   : > { %1418 = vperm.xlu2 %3675, %v4748_v30  }
 0x28e   : > { %v1167_v58 = vpop.xlane.xlu2 %1166 }
 0x28f   : > { %v4962_v46 = vmax.f32 %v4958_v20, %v1167_v58  ;;  %v4993_v58 = vld [vmem:[#allocation2 + $0x58] sm:$0xff] }
 0x290   : > { %5912 = vst [vmem:[#allocation72_spill] sm:$0xff] %v4993_v58 }
 0x291   : > { %5907 = vst [vmem:[#allocation67_spill] sm:$0xff] %v4962_v46  ;;  %2526 = vrot.lane.b32.xlu1 %v3542_v40, %s4005_s22  ;;  %v4982_v40 = vld [vmem:[#allocation2 + $0xd0] sm:$0xff] }
 0x292   : > { %1808 = vst.msk [vmem:[#allocation2 + $0xf8] sm:$0xff] %vm1744_vm3, %v4962_v46 }
 0x293   : > { %5910 = vst [vmem:[#allocation70_spill] sm:$0xff] %v4982_v40 }
 0x294   : > { %1343 = vperm.xlu2 %3675, %v4784_v22  }
 0x295   : > { %1398 = vperm.xlu0 %3673, %v4778_v7  }
 0x296   : > { %v1121_v34 = vpop.xlane.xlu0 %1120 }
 0x297   : > { %v4974_v52 = vmax.f32 %v4970_v8, %v1121_v34  ;;  %v5004_v34 = vld [vmem:[#allocation2 + $0xe8] sm:$0xff]  ;;  %v3532_v8 = vld [vmem:[%s4214_s8] sm:$0xff] }
 0x298   : > { %5914 = vst [vmem:[#allocation74_spill] sm:$0xff] %v5004_v34 }
 0x299   : > { %5909 = vst [vmem:[#allocation69_spill] sm:$0xff] %v4974_v52  ;;  %1453 = vperm.xlu1 %3674, %v4962_v46  }
 0x29a   : > { %1785 = vst.msk [vmem:[#allocation2 + $0x40] sm:$0xff] %vm1744_vm3, %v4974_v52 }
 0x29c   : > { %1433 = vperm.xlu2 %3675, %v4796_v45  }
 0x29d   : > { %1313 = vperm.xlu0 %3673, %v4857_v1  }
 0x29e   : > { %v1157_v23 = vpop.xlane.xlu0 %1156 }
 0x29f   : > { %v4986_v20 = vmax.f32 %v4982_v40, %v1157_v23  ;;  %v5016_v23 = vld [vmem:[#allocation2 + $0x70] sm:$0xff] }
 0x2a0   : > { %5916 = vst [vmem:[#allocation76_spill] sm:$0xff] %v5016_v23 }
 0x2a1   : > { %5911 = vst [vmem:[#allocation71_spill] sm:$0xff] %v4986_v20 }
 0x2a2   : > { %1803 = vst.msk [vmem:[#allocation2 + $0xd0] sm:$0xff] %vm1744_vm3, %v4986_v20 }
 0x2a4   : > { %1358 = vperm.xlu2 %3675, %v4815_v62  }
 0x2a5   : > { %1323 = vperm.xlu0 %3673, %v4862_v38   ;;  %v5034_v38 = vld [vmem:[#allocation2 + $0x80] sm:$0xff] }
 0x2a6   : > { %v1127_v46 = vpop.xlane.xlu0 %1126  ;;  %5918 = vst [vmem:[#allocation78_spill] sm:$0xff] %v5034_v38 }
 0x2a7   : > { %v4997_v45 = vmax.f32 %v4993_v58, %v1127_v46  ;;  %v1304_v46 = vpop.permute.xlu1 %1303 }
 0x2a9   : > { %5913 = vst [vmem:[#allocation73_spill] sm:$0xff] %v4997_v45 }
 0x2aa   : > { %1788 = vst.msk [vmem:[#allocation2 + $0x58] sm:$0xff] %vm1744_vm3, %v4997_v45 }
 0x2ac   : > { %1448 = vperm.xlu2 %3675, %v4829_v2  }
 0x2ad   : > { %1413 = vperm.xlu0 %3673, %v4879_v33  }
 0x2ae   : > { %v1163_v40 = vpop.xlane.xlu0 %1162 }
 0x2af   : > { %v5008_v30 = vmax.f32 %v5004_v34, %v1163_v40  ;;  %v1394_v34 = vpop.permute.xlu1 %1393 }
 0x2b1   : > { %5915 = vst [vmem:[#allocation75_spill] sm:$0xff] %v5008_v30 }
 0x2b2   : > { %1806 = vst.msk [vmem:[#allocation2 + $0xe8] sm:$0xff] %vm1744_vm3, %v5008_v30 }
 0x2b4   : > { %2316 = vrot.lane.b32.xlu2 %v3532_v8, %s4004_s1  ;;  %v1457_v8 = vsub.f32 %v4529_v28, %v1304_v46 }
 0x2b5   : > { %1338 = vperm.xlu0 %3673, %v4974_v52   ;;  %v1389_v52 = vpop.permute.xlu2 %1388 }
 0x2b6   : > { %v1133_v2 = vpop.xlane.xlu0 %1132  ;;  %v1490_v58 = vmul.f32 1.442695, %v1457_v8 }
 0x2b7   : > { %v5020_v33 = vmax.f32 %v5016_v23, %v1133_v2 }
 0x2b8   : > { %3677 = vpow2.f32 %v1490_v58 }
 0x2b9   : > { %5917 = vst [vmem:[#allocation77_spill] sm:$0xff] %v5020_v33 }
 0x2ba   : > { %1791 = vst.msk [vmem:[#allocation2 + $0x70] sm:$0xff] %vm1744_vm3, %v5020_v33 }
 0x2bc   : > { %1373 = vperm.xlu2 %3675, %v4848_v48  }
 0x2bd   : > { %1428 = vperm.xlu0 %3673, %v4986_v20  }
 0x2be   : > { %v3678_v20 = vpop.eup %3677 }
 0x2bf   : > { %v1553_v58 = vsel %vm4518_vm15, %v3678_v20, 0.0 }
 0x2c5   : > { %1353 = vperm.xlu0 %3673, %v4997_v45  }
 0x2c9   : > { %v1299_v2 = vpop.permute.xlu0 %1298 }
 0x2ca   : > { %v1456_v1 = vsub.f32 %v4497_v16, %v1299_v2  ;;  %v1810_v2 = vpack.c.bf16 %v1553_v58, %v1553_v58 }
 0x2cb   : > { %v5031_v40 = vpop.permute.xlu1 %1318 }
 0x2cc   : > { %v1488_v23 = vmul.f32 1.442695, %v1456_v1  ;;  %v1866_v48 = vunpack.c.l.b16 %v1810_v2 }
 0x2cd   : > { %1443 = vperm.xlu0 %3673, %v5008_v30  }
 0x2ce   : > { %3679 = vpow2.f32 %v1488_v23 }
 0x2cf   : > { %v1137_v28 = vpop.xlane.xlu2 %1136 }
 0x2d0   : > { %v5037_v46 = vmax.f32 %v5034_v38, %v1137_v28  ;;  %v3540_v28 = vld [vmem:[%s4214_s8] sm:$0xff]  ;;  %v1475_v38 = vsub.f32 %v4599_v5, %v1394_v34  ;;  %v1474_v34 = vsub.f32 %v4524_v26, %v1389_v52 }
 0x2d2   : > { %5919 = vst [vmem:[#allocation79_spill] sm:$0xff] %v5037_v46  ;;  %1378 = vperm.xlu1 %3674, %v5037_v46   ;;  %v1526_v62 = vmul.f32 1.442695, %v1475_v38 }
 0x2d3   : > { %1793 = vst.msk [vmem:[#allocation2 + $0x80] sm:$0xff] %vm1744_vm3, %v5037_v46  ;;  %v5046_v1 = vpop.permute.xlu1 %1408 }
 0x2d4   : > { %v3680_v8 = vpop.eup %3679  ;;  %3681 = vpow2.f32 %v1526_v62 }
 0x2d5   : > { %1368 = vperm.xlu0 %3673, %v5020_v33   ;;  %v1552_v23 = vsel %vm4490_vm9, %v3680_v8, 0.0 }
 0x2d6   : > { %v1809_v30 = vpack.c.bf16 %v1552_v23, %v1552_v23 }
 0x2d7   : > { %v1309_v20 = vpop.permute.xlu2 %1308 }
 0x2d8   : > { %v1865_v45 = vunpack.c.l.b16 %v1809_v30 }
 0x2da   : > { %2522 = vrot.lane.b32.xlu1 %v3540_v28, %s4005_s22  ;;  %v1873_v16 = vpack.c.b16 %v1866_v48, %v1865_v45  ;;  %v3682_v7 = vpop.eup %3681  ;;  %v1458_v45 = vsub.f32 %v4539_v35, %v1309_v20  ;;  %v5070_v48 = vld [vmem:[#allocation2 + $0x88] sm:$0xff]  ;;  %v1524_v35 = vmul.f32 1.442695, %v1474_v34 }
 0x2db   : > { %v5054_v46 = vpop.permute.xlu1 %1333  ;;  %v5064_v30 = vsel %vm4480_vm7, %v3682_v7, 0.0  ;;  %5921 = vst [vmem:[#allocation81_spill] sm:$0xff] %v5070_v48 }
 0x2dc   : > { %1937 = vmatmul.bf16.vlgmr.msra.gmra.mxu1 %v1873_v16  ;;  %5920 = vst [vmem:[#allocation80_spill] sm:$0xff] %v5064_v30  ;;  %v1492_v16 = vmul.f32 1.442695, %v1458_v45 }
 0x2de   : > { %3683 = vpow2.f32 %v1492_v16 }
 0x2df   : > { %v1404_v22 = vpop.permute.xlu2 %1403  ;;  %3685 = vpow2.f32 %v1524_v35 }
 0x2e0   : > { %v1477_v28 = vsub.f32 %v4562_v50, %v1404_v22 }
 0x2e3   : > { %v5056_v33 = vpop.permute.xlu1 %1423 }
 0x2e4   : > { %v3684_v45 = vpop.eup %3683 }
 0x2e5   : > { %1650 = vadd.xlane.f32.xlu2 %v1553_v58  ;;  %v3686_v7 = vpop.eup %3685  ;;  %v5090_v56 = vsel %vm4511_vm14, %v3684_v45, 0.0 }
 0x2e6   : > { %v5095_v50 = vsel %vm4511_vm14, %v3686_v7, 0.0 }
 0x2e7   : > { %v5058_v8 = vpop.permute.xlu2 %1328 }
 0x2eb   : > { %v5060_v25 = vpop.permute.xlu1 %1348 }
 0x2ed   : > { %1686 = vadd.xlane.f32.xlu2 %v5064_v30  ;;  %v1530_v30 = vmul.f32 1.442695, %v1477_v28  ;;  %v1460_v28 = vsub.f32 %v4695_v41, %v5031_v40 }
 0x2ef   : > { %v5067_v5 = vpop.permute.xlu2 %1418  ;;  %3687 = vpow2.f32 %v1530_v30 }
 0x2f3   : > { %v5072_v62 = vpop.permute.xlu1 %1438 }
 0x2f4   : > { %v1139_v38 = vpop.xlane.xlu0 %1138 }
 0x2f5   : > { %v5076_v58 = vmax.f32 %v5070_v48, %v1139_v38 }
 0x2f7   : > { %5922 = vst [vmem:[#allocation82_spill] sm:$0xff] %v5076_v58  ;;  %v5082_v2 = vpop.permute.xlu2 %1343 }
 0x2f8   : > { %1794 = vst.msk [vmem:[#allocation2 + $0x88] sm:$0xff] %vm1744_vm3, %v5076_v58 }
 0x2fb   : > { %v1364_v20 = vpop.permute.xlu1 %1363 }
 0x2fc   : > { %v1469_v26 = vsub.f32 %v4773_v61, %v1364_v20 }
 0x2fe   : > { %v1514_v38 = vmul.f32 1.442695, %v1469_v26 }
 0x2ff   : > { %v5086_v52 = vpop.permute.xlu2 %1433  ;;  %1648 = vadd.xlane.f32.xlu0 %v1552_v23  ;;  %v3688_v23 = vpop.eup %3687 }
 0x300   : > { %3689 = vpow2.f32 %v1514_v38  ;;  %v1573_v20 = vsel %vm4552_vm1, %v3688_v23, 0.0  ;;  %v1496_v38 = vmul.f32 1.442695, %v1460_v28 }
 0x303   : > { %v2527_v48 = vpop.permute.xlu1 %2526 }
 0x304   : > { %1652 = vadd.xlane.f32.xlu1 %v5090_v56  ;;  %2551 = vmatpush.bf16.msrb.mxu1 %v2527_v48 }
 0x306   : > { %v3690_v7 = vpop.eup %3689 }
 0x307   : > { %v1359_v61 = vpop.permute.xlu2 %1358  ;;  %1684 = vadd.xlane.f32.xlu0 %v5095_v50  ;;  %v1399_v22 = vpop.permute.xlu0 %1398 }
 0x308   : > { %v1468_v30 = vsub.f32 %v4633_v27, %v1359_v61  ;;  %v1476_v34 = vsub.f32 %v4604_v6, %v1399_v22  ;;  %v5107_v6 = vsel %vm4552_vm1, %v3690_v7, 0.0 }
 0x30a   : > { %v1512_v16 = vmul.f32 1.442695, %v1468_v30  ;;  %v1528_v35 = vmul.f32 1.442695, %v1476_v34 }
 0x30b   : > { %v1454_v48 = vpop.permute.xlu1 %1453 }
 0x30c   : > { %3691 = vpow2.f32 %v1512_v16  ;;  %v1487_v26 = vsub.f32 %v4790_v31, %v1454_v48  ;;  %1690 = vadd.xlane.f32.xlu1 %v1573_v20  ;;  %v1822_v31 = vpack.c.bf16 %v5107_v6, %v5107_v6  ;;  %v1463_v16 = vsub.f32 %v4721_v9, %v5054_v46 }
 0x30d   : > { %3693 = vpow2.f32 %v1528_v35  ;;  %v1830_v35 = vpack.c.bf16 %v1573_v20, %v1573_v20 }
 0x30e   : > { %v1550_v45 = vmul.f32 1.442695, %v1487_v26  ;;  %v5123_v26 = vunpack.c.l.b16 %v1822_v31  ;;  %v1502_v9 = vmul.f32 1.442695, %v1463_v16 }
 0x30f   : > { %v1449_v27 = vpop.permute.xlu2 %1448  ;;  %v1314_v61 = vpop.permute.xlu0 %1313  ;;  %v5127_v46 = vunpack.c.l.b16 %v1830_v35  ;;  %v1478_v35 = vsub.f32 %v4710_v49, %v5046_v1  ;;  %v1465_v1 = vsub.f32 %v4611_v11, %v5082_v2  ;;  %v1466_v11 = vsub.f32 %v4742_v63, %v5060_v25 }
 0x310   : > { %3695 = vpow2.f32 %v1550_v45  ;;  %v1486_v41 = vsub.f32 %v4640_v32, %v1449_v27  ;;  %v1459_v40 = vsub.f32 %v4676_v51, %v1314_v61 }
 0x311   : > { %3697 = vpow2.f32 %v1496_v38 }
 0x312   : > { %v3692_v22 = vpop.eup %3691  ;;  %v1548_v23 = vmul.f32 1.442695, %v1486_v41  ;;  %v1494_v30 = vmul.f32 1.442695, %v1459_v40 }
 0x313   : > { %v3694_v34 = vpop.eup %3693  ;;  %v5117_v28 = vsel %vm4471_vm5, %v3692_v22, 0.0 }
 0x314   : > { %3699 = vpow2.f32 %v1548_v23  ;;  %v1572_v32 = vsel %vm4471_vm5, %v3694_v34, 0.0  ;;  %v1821_v51 = vpack.c.bf16 %v5117_v28, %v5117_v28 }
 0x315   : > { %3701 = vpow2.f32 %v1494_v30  ;;  %1688 = vadd.xlane.f32.xlu2 %v1572_v32  ;;  %v1829_v48 = vpack.c.bf16 %v1572_v32, %v1572_v32 }
 0x316   : > { %v3696_v7 = vpop.eup %3695  ;;  %v5125_v45 = vunpack.c.l.b16 %v1821_v51  ;;  %3703 = vpow2.f32 %v1502_v9 }
 0x317   : > { %v5129_v20 = vunpack.c.l.b16 %v1829_v48  ;;  %v2317_v38 = vpop.permute.xlu2 %2316  ;;  %v1324_v27 = vpop.permute.xlu0 %1323  ;;  %v5133_v61 = vsel %vm4501_vm11, %v3696_v7, 0.0 }
 0x318   : > { %v1461_v41 = vsub.f32 %v4684_v55, %v1324_v27  ;;  %2347 = vmatpush.bf16.msrb.mxu3 %v2317_v38  ;;  %v3698_v22 = vpop.eup %3697  ;;  %v1840_v34 = vpack.c.bf16 %v5133_v61, %v5133_v61  ;;  %v1811_v55 = vpack.c.bf16 %v5090_v56, %v5090_v56  ;;  %v1532_v38 = vmul.f32 1.442695, %v1478_v35 }
 0x319   : > { %v1556_v51 = vsel %vm4471_vm5, %v3698_v22, 0.0  ;;  %v1462_v35 = vsub.f32 %v4582_v60, %v5058_v8 }
 0x31a   : > { %v3700_v30 = vpop.eup %3699  ;;  %v1498_v31 = vmul.f32 1.442695, %v1461_v41  ;;  %v5163_v7 = vunpack.c.l.b16 %v1840_v34  ;;  %v1867_v27 = vunpack.c.l.b16 %v1811_v55  ;;  %v1508_v55 = vmul.f32 1.442695, %v1466_v11 }
 0x31b   : > { %v3702_v16 = vpop.eup %3701  ;;  %1383 = vperm.xlu0 %3673, %v5076_v58   ;;  %v5149_v32 = vsel %vm4576_vm6, %v3700_v30, 0.0  ;;  %v3541_v30 = vld [vmem:[%s4214_s8 + $0x8] sm:$0xff]  ;;  %v1506_v58 = vmul.f32 1.442695, %v1465_v1 }
 0x31c   : > { %3705 = vpow2.f32 %v1498_v31  ;;  %v5155_v48 = vsel %vm4480_vm7, %v3702_v16, 0.0  ;;  %v1839_v49 = vpack.c.bf16 %v5149_v32, %v5149_v32  ;;  %v3704_v16 = vpop.eup %3703 }
 0x31d   : > { %1656 = vadd.xlane.f32.xlu2 %v1556_v51  ;;  %v1812_v56 = vpack.c.bf16 %v5155_v48, %v5155_v48  ;;  %3707 = vpow2.f32 %v1532_v38  ;;  %v5179_v34 = vsel %vm4501_vm11, %v3704_v16, 0.0  ;;  %v1481_v38 = vsub.f32 %v4729_v53, %v5056_v33 }
 0x31e   : > { %v5165_v9 = vunpack.c.l.b16 %v1839_v49  ;;  %3709 = vpow2.f32 %v1506_v58 }
 0x31f   : > { %v5167_v41 = vpop.permute.xlu0 %1413  ;;  %v1868_v22 = vunpack.c.l.b16 %v1812_v56  ;;  %3711 = vpow2.f32 %v1508_v55  ;;  %v1374_v4 = vpop.permute.xlu2 %1373 }
 0x320   : > { %v2477_v31 = vpack.c.b16 %v5163_v7, %v5165_v9  ;;  %v1479_v10 = vsub.f32 %v4701_v54, %v5167_v41  ;;  %v5925_v54 = vpack.c.b16 %v5123_v26, %v5125_v45 }
 0x321   : > { %v1874_v23 = vpack.c.b16 %v1868_v22, %v1867_v27  ;;  %v1813_v27 = vpack.c.bf16 %v1556_v51, %v1556_v51  ;;  %v1538_v22 = vmul.f32 1.442695, %v1481_v38 }
 0x322   : > { %v3706_v40 = vpop.eup %3705 }
 0x323   : > { %1942 = vmatmul.bf16.gmra.mxu1 %v1874_v23  ;;  %2524 = vrot.lane.b32.xlu0 %v3541_v30, %s4005_s22  ;;  %v1557_v2 = vsel %vm4552_vm1, %v3706_v40, 0.0  ;;  %v3708_v63 = vpop.eup %3707  ;;  %v1500_v23 = vmul.f32 1.442695, %v1462_v35  ;;  %v1480_v40 = vsub.f32 %v4589_v0, %v5067_v5  ;;  %v1869_v30 = vunpack.c.l.b16 %v1813_v27 }
 0x324   : > { %1658 = vadd.xlane.f32.xlu1 %v1557_v2  ;;  %v1814_v56 = vpack.c.bf16 %v1557_v2, %v1557_v2  ;;  %v3710_v60 = vpop.eup %3709  ;;  %v5191_v8 = vsel %vm4576_vm6, %v3708_v63, 0.0  ;;  %v1484_v2 = vsub.f32 %v4755_v36, %v5072_v62 }
 0x325   : > { %1662 = vadd.xlane.f32.xlu2 %v5179_v34  ;;  %v1536_v58 = vmul.f32 1.442695, %v1480_v40  ;;  %v5198_v53 = vsel %vm4518_vm15, %v3710_v60, 0.0  ;;  %v3712_v33 = vpop.eup %3711  ;;  %v1483_v60 = vsub.f32 %v4618_v15, %v5086_v52 }
 0x326   : > { %v1818_v16 = vpack.c.bf16 %v5198_v53, %v5198_v53  ;;  %v1562_v55 = vsel %vm4511_vm14, %v3712_v33, 0.0 }
 0x327   : > { %v1339_v49 = vpop.permute.xlu0 %1338  ;;  %v1542_v52 = vmul.f32 1.442695, %v1483_v60 }
 0x328   : > { %v1464_v25 = vsub.f32 %v4803_v12, %v1339_v49  ;;  %v1870_v12 = vunpack.c.l.b16 %v1814_v56  ;;  %v2055_v63 = vunpack.c.l.b16 %v1818_v16  ;;  %v1544_v56 = vmul.f32 1.442695, %v1484_v2 }
 0x329   : > { %v1819_v16 = vpack.c.bf16 %v1562_v55, %v1562_v55 }
 0x32a   : > { %v1504_v1 = vmul.f32 1.442695, %v1464_v25  ;;  %v1875_v5 = vpack.c.b16 %v1870_v12, %v1869_v30 }
 0x32c   : > { %3713 = vpow2.f32 %v1504_v1 }
 0x32d   : > { %3715 = vpow2.f32 %v1500_v23  ;;  %1692 = vadd.xlane.f32.xlu2 %v5191_v8 }
 0x32e   : > { %3717 = vpow2.f32 %v1536_v58  ;;  %v1816_v58 = vpack.c.bf16 %v5179_v34, %v5179_v34 }
 0x32f   : > { %v5194_v0 = vpop.permute.xlu0 %1428  ;;  %3719 = vpow2.f32 %v1538_v22 }
 0x330   : > { %3721 = vpow2.f32 %v1544_v56  ;;  %v1872_v30 = vunpack.c.l.b16 %v1816_v58 }
 0x332   : > { %v3714_v51 = vpop.eup %3713 }
 0x333   : > { %v3716_v11 = vpop.eup %3715  ;;  %1947 = vmatmul.bf16.gmra.mxu1 %v1875_v5  ;;  %v1560_v35 = vsel %vm4490_vm9, %v3714_v51, 0.0 }
 0x334   : > { %1664 = vadd.xlane.f32.xlu1 %v1560_v35  ;;  %v1817_v49 = vpack.c.bf16 %v1560_v35, %v1560_v35  ;;  %v1558_v23 = vsel %vm4576_vm6, %v3716_v11, 0.0  ;;  %v3718_v1 = vpop.eup %3717 }
 0x335   : > { %1668 = vadd.xlane.f32.xlu2 %v1562_v55  ;;  %v3720_v38 = vpop.eup %3719  ;;  %v1815_v27 = vpack.c.bf16 %v1558_v23, %v1558_v23  ;;  %v5217_v22 = vsel %vm4490_vm9, %v3718_v1, 0.0  ;;  %v5923_v55 = vsub.f32 %v4659_v42, %v4665_v47  ;;  %v1471_v42 = vsub.f32 %v4654_v39, %v1374_v4  ;;  %v5930_v4 = vld [vmem:[#allocation42_spill] sm:$0xff] }
 0x336   : > { %v2054_v25 = vunpack.c.l.b16 %v1817_v49  ;;  %v3722_v5 = vpop.eup %3721  ;;  %v2056_v49 = vunpack.c.l.b16 %v1819_v16  ;;  %v1534_v39 = vmul.f32 1.442695, %v1479_v10  ;;  %v5934_v10 = vld [vmem:[#allocation28_spill] sm:$0xff] }
 0x337   : > { %v1354_v40 = vpop.permute.xlu0 %1353  ;;  %v1871_v15 = vunpack.c.l.b16 %v1815_v27  ;;  %v5231_v2 = vsel %vm4471_vm5, %v3722_v5, 0.0  ;;  %v1603_v5 = vld [vmem:[#allocation3 + $0x98] sm:$0xff] }
 0x338   : > { %v1467_v36 = vsub.f32 %v4822_v3, %v1354_v40  ;;  %v2062_v62 = vpack.c.b16 %v2055_v63, %v2054_v25  ;;  %v5221_v3 = vsel %vm4518_vm15, %v3720_v38, 0.0 }
 0x339   : > { %v1876_v34 = vpack.c.b16 %v1872_v30, %v1871_v15 }
 0x33a   : > { %v1510_v12 = vmul.f32 1.442695, %v1467_v36  ;;  %2142 = vmatmul.bf16.vlgmr.msrb.gmra.mxu2 %v2062_v62  ;;  %v1234_v36 = vmul.f32 1.442695, %v5923_v55 }
 0x33c   : > { %3723 = vpow2.f32 %v1510_v12  ;;  %1696 = vadd.xlane.f32.xlu1 %v5217_v22 }
 0x33d   : > { %1698 = vadd.xlane.f32.xlu2 %v5221_v3  ;;  %3725 = vpow2.f32 %v1542_v52 }
 0x33e   : > { %3727 = vpow2.f32 %v1234_v36 }
 0x33f   : > { %v5225_v33 = vpop.permute.xlu0 %1443 }
 0x342   : > { %v3724_v51 = vpop.eup %3723 }
 0x343   : > { %1952 = vmatmul.bf16.gmra.mxu1 %v1876_v34  ;;  %v1563_v11 = vsel %vm4480_vm7, %v3724_v51, 0.0  ;;  %v3726_v56 = vpop.eup %3725 }
 0x344   : > { %1670 = vadd.xlane.f32.xlu1 %v1563_v11  ;;  %v1820_v35 = vpack.c.bf16 %v1563_v11, %v1563_v11  ;;  %v1379_v40 = vpop.permute.xlu1 %1378  ;;  %v5241_v27 = vsel %vm4480_vm7, %v3726_v56, 0.0  ;;  %v5252_v58 = vpop.eup %3727  ;;  %v5928_v56 = vld [vmem:[#allocation24_spill] sm:$0xff] }
 0x345   : > { %1704 = vadd.xlane.f32.xlu2 %v5231_v2  ;;  %v1472_v38 = vsub.f32 %v4886_v18, %v1379_v40  ;;  %v1518_v18 = vmul.f32 1.442695, %v1471_v42  ;;  %v5929_v40 = vld [vmem:[#allocation23_spill] sm:$0xff] }
 0x346   : > { %v2057_v25 = vunpack.c.l.b16 %v1820_v35 }
 0x347   : > { %v1369_v63 = vpop.permute.xlu0 %1368  ;;  %v1520_v60 = vmul.f32 1.442695, %v1472_v38  ;;  %v1485_v38 = vsub.f32 %v5930_v4, %v5225_v33 }
 0x348   : > { %v2063_v1 = vpack.c.b16 %v2057_v25, %v2056_v49  ;;  %v1470_v62 = vsub.f32 %v4842_v21, %v1369_v63  ;;  %v5924_v21 = vsub.f32 %v4758_v13, %v4761_v43  ;;  %v5927_v25 = vld [vmem:[#allocation25_spill] sm:$0xff] }
 0x349   : > { %v1202_v63 = vsub.f32 %v5927_v25, %v4688_v59  ;;  %v5931_v59 = vld [vmem:[#allocation27_spill] sm:$0xff]  ;;  %v1546_v33 = vmul.f32 1.442695, %v1485_v38 }
 0x34a   : > { %2147 = vmatmul.bf16.vlgmr.msra.gmra.mxu3 %v2063_v1  ;;  %v1516_v47 = vmul.f32 1.442695, %v1470_v62  ;;  %v1270_v12 = vmul.f32 1.442695, %v5924_v21  ;;  %v1218_v1 = vsub.f32 %v5929_v40, %v5928_v56 }
 0x34b   : > { %v1236_v62 = vmul.f32 1.442695, %v1202_v63 }
 0x34c   : > { %1702 = vadd.xlane.f32.xlu1 %v5241_v27  ;;  %3729 = vpow2.f32 %v1516_v47  ;;  %v1268_v17 = vmul.f32 1.442695, %v1218_v1  ;;  %v5932_v47 = vld [vmem:[#allocation26_spill] sm:$0xff]  ;;  %v5301_v21 = vpop.permute.xlu1 %2522  ;;  %v5939_v1 = vld [vmem:[#allocation39_spill] sm:$0xff] }
 0x34d   : > { %1674 = vadd.xlane.f32.xlu2 %v5107_v6  ;;  %1654 = vadd.xlane.f32.xlu0 %v5155_v48  ;;  %3731 = vpow2.f32 %v1520_v60  ;;  %v1585_v6 = vld [vmem:[#allocation3 + $0x8] sm:$0xff]  ;;  %v1221_v60 = vsub.f32 %v5932_v47, %v5931_v59  ;;  %v5941_v59 = vld [vmem:[#allocation49_spill] sm:$0xff] }
 0x34e   : > { %3733 = vpow2.f32 %v1270_v12  ;;  %v1617_v13 = vmul.f32 %v5252_v58, %v1585_v6  ;;  %v5943_v47 = vsub.f32 %v5941_v59, %v5942_v44  ;;  %v1833_v59 = vpack.c.bf16 %v5217_v22, %v5217_v22  ;;  %v1589_v44 = vld [vmem:[#allocation3 + $0x28] sm:$0xff] }
 0x34f   : > { %3735 = vpow2.f32 %v1518_v18  ;;  %v5933_v18 = vld [vmem:[#allocation29_spill] sm:$0xff] }
 0x350   : > { %3737 = vpow2.f32 %v1534_v39  ;;  %v1206_v6 = vsub.f32 %v5934_v10, %v5933_v18  ;;  %v1584_v39 = vld [vmem:[#allocation3] sm:$0xff] }
 0x352   : > { %v3730_v43 = vpop.eup %3729 }
 0x353   : > { %v3732_v15 = vpop.eup %3731 }
 0x354   : > { %1708 = vadd.xlane.f32.xlu1 %v5149_v32  ;;  %v5260_v41 = vpop.eup %3733  ;;  %v1482_v32 = vsub.f32 %v4809_v29, %v5194_v0  ;;  %v5269_v30 = vsel %vm4490_vm9, %v3732_v15, 0.0  ;;  %v1200_v0 = vsub.f32 %v5926_v57, %v4648_v37 }
 0x355   : > { %1710 = vadd.xlane.f32.xlu2 %v5133_v61  ;;  %1660 = vadd.xlane.f32.xlu0 %v1558_v23  ;;  %v1566_v61 = vsel %vm4576_vm6, %v3730_v43, 0.0  ;;  %v3736_v23 = vpop.eup %3735  ;;  %v1635_v45 = vmul.f32 %v5260_v41, %v1603_v5  ;;  %v1244_v43 = vmul.f32 1.442695, %v1206_v6  ;;  %v5944_v6 = vld [vmem:[#allocation44_spill] sm:$0xff] }
 0x356   : > { %v1540_v26 = vmul.f32 1.442695, %v1482_v32  ;;  %v5276_v29 = vsel %vm4501_vm11, %v3736_v23, 0.0  ;;  %v1823_v34 = vpack.c.bf16 %v1566_v61, %v1566_v61  ;;  %v3738_v51 = vpop.eup %3737  ;;  %v5935_v32 = vld [vmem:[#allocation34_spill] sm:$0xff] }
 0x357   : > { %v1824_v11 = vpack.c.bf16 %v5276_v29, %v5276_v29  ;;  %v5285_v49 = vsel %vm4501_vm11, %v3738_v51, 0.0 }
 0x358   : > { %v1651_v48 = vpop.xlane.xlu2 %1650  ;;  %3739 = vpow2.f32 %v1540_v26  ;;  %v2060_v35 = vunpack.c.l.b16 %v1823_v34  ;;  %v5937_v26 = vld [vmem:[#allocation35_spill] sm:$0xff]  ;;  %v1602_v34 = vld [vmem:[#allocation3 + $0x90] sm:$0xff] }
 0x359   : > { %v1713_v52 = vadd.f32 %v1651_v48, %v1617_v13  ;;  %v2061_v37 = vunpack.c.l.b16 %v1824_v11  ;;  %v1274_v13 = vmul.f32 1.442695, %v1221_v60  ;;  %v1240_v60 = vmul.f32 1.442695, %v5943_v47 }
 0x35a   : > { %2152 = vmatmul.bf16.gmra.mxu3 %v5925_v54  ;;  %v1586_v54 = vld [vmem:[#allocation3 + $0x10] sm:$0xff] }
 0x35b   : > { %1746 = vst.msk [vmem:[#allocation3 + $0x8] sm:$0xff] %vm1744_vm3, %v1713_v52  ;;  %v2065_v55 = vpack.c.b16 %v2061_v37, %v2060_v35  ;;  %v1605_v37 = vld [vmem:[#allocation3 + $0xa8] sm:$0xff] }
 0x35c   : > { %1676 = vadd.xlane.f32.xlu1 %v1566_v61  ;;  %v5936_v61 = vld [vmem:[#allocation32_spill] sm:$0xff] }
 0x35d   : > { %1680 = vadd.xlane.f32.xlu2 %v5269_v30  ;;  %1666 = vadd.xlane.f32.xlu0 %v5198_v53  ;;  %v1232_v53 = vmul.f32 1.442695, %v1200_v0  ;;  %v1220_v23 = vsub.f32 %v5936_v61, %v5935_v32 }
 0x35e   : > { %v3740_v36 = vpop.eup %3739 }
 0x35f   : > { %3741 = vpow2.f32 %v1232_v53  ;;  %v5296_v42 = vsel %vm4511_vm14, %v3740_v36, 0.0  ;;  %v1272_v11 = vmul.f32 1.442695, %v1220_v23  ;;  %v5948_v23 = vld [vmem:[#allocation55_spill] sm:$0xff] }
 0x360   : > { %v1687_v14 = vpop.xlane.xlu2 %1686  ;;  %3743 = vpow2.f32 %v1236_v62 }
 0x361   : > { %v1731_v16 = vadd.f32 %v1687_v14, %v1635_v45  ;;  %3745 = vpow2.f32 %v1268_v17  ;;  %v5938_v45 = vld [vmem:[#allocation33_spill] sm:$0xff] }
 0x362   : > { %3747 = vpow2.f32 %v1546_v33  ;;  %v1209_v57 = vsub.f32 %v5938_v45, %v5937_v26  ;;  %v5949_v26 = vld [vmem:[#allocation56_spill] sm:$0xff] }
 0x363   : > { %1764 = vst.msk [vmem:[#allocation3 + $0x98] sm:$0xff] %vm1744_vm3, %v1731_v16  ;;  %3749 = vpow2.f32 %v1274_v13  ;;  %v1604_v13 = vld [vmem:[#allocation3 + $0xa0] sm:$0xff]  ;;  %v5950_v45 = vsub.f32 %v5948_v23, %v5949_v26 }
 0x364   : > { %3751 = vpow2.f32 %v1244_v43  ;;  %v1250_v35 = vmul.f32 1.442695, %v1209_v57  ;;  %v5947_v43 = vld [vmem:[#allocation46_spill] sm:$0xff] }
 0x365   : > { %1694 = vadd.xlane.f32.xlu0 %v5285_v49  ;;  %v5303_v12 = vpop.eup %3741  ;;  %3753 = vpow2.f32 %v1272_v11  ;;  %v1246_v57 = vmul.f32 1.442695, %v5950_v45 }
 0x366   : > { %v1616_v19 = vmul.f32 %v5303_v12, %v1584_v39  ;;  %v3744_v15 = vpop.eup %3743  ;;  %3755 = vpow2.f32 %v1250_v35  ;;  %v5945_v39 = vld [vmem:[#allocation43_spill] sm:$0xff] }
 0x367   : > { %v5312_v5 = vpop.eup %3745  ;;  %v1618_v0 = vmul.f32 %v3744_v15, %v1586_v54  ;;  %v1215_v33 = vsub.f32 %v5945_v39, %v5944_v6  ;;  %v1834_v6 = vpack.c.bf16 %v5221_v3, %v5221_v3  ;;  %v5958_v3 = vld [vmem:[#allocation69_spill] sm:$0xff] }
 0x368   : > { %v3748_v16 = vpop.eup %3747  ;;  %v1634_v53 = vmul.f32 %v5312_v5, %v1602_v34 }
 0x369   : > { %v5318_v63 = vpop.eup %3749  ;;  %v5324_v40 = vsel %vm4552_vm1, %v3748_v16, 0.0  ;;  %v2467_v26 = vunpack.c.l.b16 %v1834_v6 }
 0x36a   : > { %2157 = vmatmul.bf16.gmra.mxu3 %v2065_v55  ;;  %v5320_v56 = vpop.eup %3751  ;;  %v5940_v55 = vld [vmem:[#allocation38_spill] sm:$0xff]  ;;  %v1637_v62 = vmul.f32 %v5318_v63, %v1605_v37  ;;  %v5952_v37 = vld [vmem:[#allocation47_spill] sm:$0xff] }
 0x36b   : > { %v1212_v36 = vsub.f32 %v5940_v55, %v5939_v1  ;;  %v5336_v18 = vpop.eup %3753  ;;  %v5953_v1 = vld [vmem:[#allocation45_spill] sm:$0xff] }
 0x36c   : > { %v5338_v10 = vpop.eup %3755  ;;  %v1203_v55 = vsub.f32 %v5953_v1, %v5952_v37  ;;  %v5964_v37 = vld [vmem:[#allocation30_spill] sm:$0xff] }
 0x36d   : > { %1700 = vadd.xlane.f32.xlu0 %v5296_v42  ;;  %v1256_v17 = vmul.f32 1.442695, %v1212_v36  ;;  %v5954_v36 = vld [vmem:[#allocation53_spill] sm:$0xff] }
 0x36f   : > { %3757 = vpow2.f32 %v1256_v17 }
 0x370   : > { %3759 = vpow2.f32 %v1240_v60  ;;  %v1591_v60 = vld [vmem:[#allocation3 + $0x38] sm:$0xff] }
 0x372   : > { %v1649_v48 = vpop.xlane.xlu0 %1648 }
 0x373   : > { %v1712_v52 = vadd.f32 %v1649_v48, %v1616_v19  ;;  %v5946_v19 = vld [vmem:[#allocation48_spill] sm:$0xff] }
 0x374   : > { %v1205_v48 = vsub.f32 %v5947_v43, %v5946_v19  ;;  %v2466_v19 = vunpack.c.l.b16 %v1833_v59  ;;  %v5965_v59 = vld [vmem:[#allocation57_spill] sm:$0xff] }
 0x375   : > { %1745 = vst.msk [vmem:[#allocation3] sm:$0xff] %vm1744_vm3, %v1712_v52  ;;  %1978 = vperm.xlu2 %3675, %v3744_v15   ;;  %1672 = vadd.xlane.f32.xlu0 %v5117_v28  ;;  %v1636_v15 = vmul.f32 %v5336_v18, %v1604_v13  ;;  %v1262_v52 = vmul.f32 1.442695, %v1215_v33  ;;  %v1238_v33 = vmul.f32 1.442695, %v1203_v55 }
 0x376   : > { %v1242_v32 = vmul.f32 1.442695, %v1205_v48 }
 0x377   : > { %v1653_v14 = vpop.xlane.xlu1 %1652  ;;  %3761 = vpow2.f32 %v1262_v52 }
 0x378   : > { %v1714_v51 = vadd.f32 %v1653_v14, %v1618_v0  ;;  %v5350_v0 = vpop.eup %3757  ;;  %v1588_v14 = vld [vmem:[#allocation3 + $0x20] sm:$0xff]  ;;  %3763 = vpow2.f32 %v1242_v32  ;;  %v5957_v32 = vld [vmem:[#allocation68_spill] sm:$0xff] }
 0x379   : > { %v5353_v34 = vpop.eup %3759  ;;  %3765 = vpow2.f32 %v1246_v57 }
 0x37a   : > { %1747 = vst.msk [vmem:[#allocation3 + $0x10] sm:$0xff] %vm1744_vm3, %v1714_v51  ;;  %v1685_v25 = vpop.xlane.xlu0 %1684  ;;  %v5951_v51 = vld [vmem:[#allocation63_spill] sm:$0xff]  ;;  %v1620_v11 = vmul.f32 %v5353_v34, %v1588_v14 }
 0x37b   : > { %v1730_v28 = vadd.f32 %v1685_v25, %v1634_v53  ;;  %v5960_v14 = vld [vmem:[#allocation59_spill] sm:$0xff] }
 0x37d   : > { %1763 = vst.msk [vmem:[#allocation3 + $0x90] sm:$0xff] %vm1744_vm3, %v1730_v28  ;;  %1998 = vperm.xlu2 %3675, %v5320_v56   ;;  %1706 = vadd.xlane.f32.xlu0 %v5324_v40  ;;  %v5358_v28 = vpop.eup %3761 }
 0x37e   : > { %v5365_v17 = vpop.eup %3763 }
 0x37f   : > { %v1691_v4 = vpop.xlane.xlu1 %1690  ;;  %v5370_v47 = vpop.eup %3765  ;;  %v1621_v13 = vmul.f32 %v5365_v17, %v1589_v44  ;;  %v5966_v44 = vld [vmem:[#allocation58_spill] sm:$0xff] }
 0x380   : > { %v1733_v38 = vadd.f32 %v1691_v4, %v1637_v62  ;;  %v5955_v62 = vld [vmem:[#allocation54_spill] sm:$0xff]  ;;  %v1623_v22 = vmul.f32 %v5370_v47, %v1591_v60  ;;  %v5967_v60 = vsub.f32 %v5965_v59, %v5966_v44 }
 0x381   : > { %v5956_v4 = vsub.f32 %v5954_v36, %v5955_v62 }
 0x382   : > { %1766 = vst.msk [vmem:[#allocation3 + $0xa8] sm:$0xff] %vm1744_vm3, %v1733_v38  ;;  %v1282_v6 = vmul.f32 1.442695, %v5967_v60 }
 0x383   : > { %v1276_v38 = vmul.f32 1.442695, %v5956_v4 }
 0x385   : > { %2179 = vperm.xlu2 %3675, %v5338_v10   ;;  %1678 = vadd.xlane.f32.xlu0 %v5276_v29 }
 0x388   : > { %v1689_v54 = vpop.xlane.xlu2 %1688 }
 0x389   : > { %v1732_v61 = vadd.f32 %v1689_v54, %v1636_v15  ;;  %v1825_v15 = vpack.c.bf16 %v5269_v30, %v5269_v30 }
 0x38b   : > { %1765 = vst.msk [vmem:[#allocation3 + $0xa0] sm:$0xff] %vm1744_vm3, %v1732_v61  ;;  %v5959_v61 = vsub.f32 %v5957_v32, %v5958_v3 }
 0x38d   : > { %2194 = vperm.xlu2 %3675, %v5350_v0   ;;  %v1384_v29 = vpop.permute.xlu0 %1383  ;;  %v1248_v23 = vmul.f32 1.442695, %v5959_v61 }
 0x38e   : > { %v1473_v16 = vsub.f32 %v5951_v51, %v1384_v29  ;;  %v5961_v29 = vld [vmem:[#allocation60_spill] sm:$0xff] }
 0x38f   : > { %v5962_v51 = vsub.f32 %v5960_v14, %v5961_v29  ;;  %v5971_v14 = vld [vmem:[#allocation72_spill] sm:$0xff] }
 0x390   : > { %v1522_v53 = vmul.f32 1.442695, %v1473_v16  ;;  %v1657_v35 = vpop.xlane.xlu2 %1656 }
 0x391   : > { %v1716_v25 = vadd.f32 %v1657_v35, %v1620_v11  ;;  %v1252_v16 = vmul.f32 1.442695, %v5962_v51  ;;  %v2474_v11 = vpack.c.b16 %v2467_v26, %v2466_v19  ;;  %v5968_v19 = vld [vmem:[#allocation37_spill] sm:$0xff] }
 0x392   : > { %3767 = vpow2.f32 %v1522_v53 }
 0x393   : > { %1749 = vst.msk [vmem:[#allocation3 + $0x20] sm:$0xff] %vm1744_vm3, %v1716_v25  ;;  %3769 = vpow2.f32 %v1276_v38  ;;  %v5963_v25 = vld [vmem:[#allocation31_spill] sm:$0xff] }
 0x394   : > { %3771 = vpow2.f32 %v1238_v33  ;;  %v1224_v1 = vsub.f32 %v5964_v37, %v5963_v25  ;;  %v1592_v33 = vld [vmem:[#allocation3 + $0x40] sm:$0xff] }
 0x395   : > { %2209 = vperm.xlu2 %3675, %v5358_v28   ;;  %v2525_v39 = vpop.permute.xlu0 %2524  ;;  %3773 = vpow2.f32 %v1248_v23  ;;  %v5970_v23 = vld [vmem:[#allocation80_spill] sm:$0xff] }
 0x396   : > { %2552 = vmatpush.bf16.msrb.mxu1 %v2525_v39  ;;  %3775 = vpow2.f32 %v1252_v16  ;;  %v1280_v4 = vmul.f32 1.442695, %v1224_v1  ;;  %v1828_v26 = vpack.c.bf16 %v5970_v23, %v5970_v23  ;;  %v1608_v1 = vld [vmem:[#allocation3 + $0xc0] sm:$0xff] }
 0x397   : > { %v1659_v43 = vpop.xlane.xlu1 %1658  ;;  %v1612_v23 = vld [vmem:[#allocation3 + $0xe0] sm:$0xff] }
 0x398   : > { %v3768_v48 = vpop.eup %3767  ;;  %v1663_v52 = vpop.xlane.xlu2 %1662  ;;  %v1717_v54 = vadd.f32 %v1659_v43, %v1621_v13  ;;  %3777 = vpow2.f32 %v1280_v4  ;;  %v5977_v4 = vld [vmem:[#allocation41_spill] sm:$0xff] }
 0x399   : > { %v1719_v45 = vadd.f32 %v1663_v52, %v1623_v22  ;;  %1968 = vperm.xlu0 %3673, %v5303_v12   ;;  %v1569_v57 = vsel %vm4518_vm15, %v3768_v48, 0.0  ;;  %v5391_v53 = vpop.eup %3769  ;;  %v2260_v12 = vunpack.c.l.b16 %v1825_v15  ;;  %v5969_v22 = vld [vmem:[#allocation36_spill] sm:$0xff]  ;;  %v1836_v15 = vpack.c.bf16 %v5241_v27, %v5241_v27 }
 0x39a   : > { %1750 = vst.msk [vmem:[#allocation3 + $0x28] sm:$0xff] %vm1744_vm3, %v1717_v54  ;;  %1682 = vadd.xlane.f32.xlu1 %v1569_v57  ;;  %v1826_v30 = vpack.c.bf16 %v1569_v57, %v1569_v57  ;;  %2553 = vmatpush.bf16.msrb.mxu1 %v5301_v21  ;;  %v1638_v36 = vmul.f32 %v5391_v53, %v1606_v24  ;;  %v5397_v21 = vpop.eup %3771  ;;  %v1594_v48 = vld [vmem:[#allocation3 + $0x50] sm:$0xff]  ;;  %3779 = vpow2.f32 %v1282_v6 }
 0x39b   : > { %1752 = vst.msk [vmem:[#allocation3 + $0x38] sm:$0xff] %vm1744_vm3, %v1719_v45  ;;  %v5403_v39 = vpop.eup %3773  ;;  %v1227_v43 = vsub.f32 %v5969_v22, %v5968_v19  ;;  %v1827_v52 = vpack.c.bf16 %v5095_v50, %v5095_v50  ;;  %v5421_v45 = vpop.f32.mrf.mxu1  ;;  %v2469_v16 = vunpack.c.l.b16 %v1836_v15  ;;  %v5980_v15 = vld [vmem:[#allocation65_spill] sm:$0xff] }
 0x39c   : > { %v2261_v35 = vunpack.c.l.b16 %v1826_v30  ;;  %v5408_v13 = vpop.eup %3775  ;;  %v5974_v30 = vld [vmem:[#allocation61_spill] sm:$0xff] }
 0x39d   : > { %2390 = vperm.xlu2 %3675, %v5312_v5   ;;  %2554 = vmatmul.bf16.vlgmr.msrb.gmra.mxu1 %v2474_v11  ;;  %v1835_v5 = vpack.c.bf16 %v5296_v42, %v5296_v42  ;;  %v1624_v42 = vmul.f32 %v5403_v39, %v1592_v33  ;;  %v1626_v32 = vmul.f32 %v5408_v13, %v1594_v48  ;;  %v1286_v61 = vmul.f32 1.442695, %v1227_v43  ;;  %v5975_v11 = vld [vmem:[#allocation62_spill] sm:$0xff]  ;;  %v5979_v48 = vld [vmem:[#allocation64_spill] sm:$0xff] }
 0x39e   : > { %v2268_v55 = vpack.c.b16 %v2261_v35, %v2260_v12  ;;  %v5976_v12 = vsub.f32 %v5974_v30, %v5975_v11  ;;  %v2262_v24 = vunpack.c.l.b16 %v1827_v52  ;;  %v3778_v25 = vpop.eup %3777  ;;  %v5981_v52 = vsub.f32 %v5979_v48, %v5980_v15 }
 0x39f   : > { %v2468_v54 = vunpack.c.l.b16 %v1835_v5  ;;  %3781 = vpow2.f32 %v1286_v61  ;;  %v1640_v59 = vmul.f32 %v3778_v25, %v1608_v1  ;;  %v1595_v61 = vld [vmem:[#allocation3 + $0x58] sm:$0xff]  ;;  %v5985_v1 = vld [vmem:[#allocation78_spill] sm:$0xff] }
 0x3a0   : > { %v1693_v62 = vpop.xlane.xlu2 %1692  ;;  %2348 = vmatmul.bf16.vlgmr.msrb.gmra.mxu3 %v2268_v55  ;;  %v1288_v35 = vmul.f32 1.442695, %v5976_v12  ;;  %v5432_v55 = vpop.eup %3779 }
 0x3a1   : > { %v1734_v38 = vadd.f32 %v1693_v62, %v1638_v36  ;;  %1983 = vperm.xlu0 %3673, %v5397_v21   ;;  %v2475_v37 = vpack.c.b16 %v2469_v16, %v2468_v54  ;;  %v2263_v36 = vunpack.c.l.b16 %v1828_v26  ;;  %v1609_v62 = vld [vmem:[#allocation3 + $0xc8] sm:$0xff]  ;;  %v1837_v26 = vpack.c.bf16 %v5231_v2, %v5231_v2  ;;  %v5982_v16 = vld [vmem:[#allocation66_spill] sm:$0xff] }
 0x3a2   : > { %v1641_v60 = vmul.f32 %v5432_v55, %v1609_v62 }
 0x3a3   : > { %1767 = vst.msk [vmem:[#allocation3 + $0xb0] sm:$0xff] %vm1744_vm3, %v1734_v38  ;;  %v5978_v38 = vld [vmem:[#allocation40_spill] sm:$0xff]  ;;  %v2269_v44 = vpack.c.b16 %v2263_v36, %v2262_v24  ;;  %v5441_v54 = vpop.f32.mrf.mxu1  ;;  %v1611_v24 = vld [vmem:[#allocation3 + $0xd8] sm:$0xff]  ;;  %v5986_v36 = vld [vmem:[#allocation79_spill] sm:$0xff] }
 0x3a4   : > { %v5987_v62 = vsub.f32 %v5985_v1, %v5986_v36 }
 0x3a5   : > { %2405 = vperm.xlu2 %3675, %v5318_v63   ;;  %v5972_v63 = vld [vmem:[#allocation73_spill] sm:$0xff]  ;;  %v3782_v43 = vpop.eup %3781 }
 0x3a6   : > { %v5973_v29 = vsub.f32 %v5971_v14, %v5972_v63 }
 0x3a7   : > { %v1665_v3 = vpop.xlane.xlu1 %1664 }
 0x3a8   : > { %v1669_v57 = vpop.xlane.xlu2 %1668  ;;  %v1720_v27 = vadd.f32 %v1665_v3, %v1624_v42  ;;  %v1254_v51 = vmul.f32 1.442695, %v5973_v29  ;;  %v1258_v42 = vmul.f32 1.442695, %v5981_v52  ;;  %v1838_v3 = vpack.c.bf16 %v5324_v40, %v5324_v40  ;;  %v1614_v52 = vld [vmem:[#allocation3 + $0xf0] sm:$0xff] }
 0x3a9   : > { %v1722_v50 = vadd.f32 %v1669_v57, %v1626_v32  ;;  %1988 = vperm.xlu0 %3673, %v5353_v34   ;;  %v1230_v34 = vsub.f32 %v5978_v38, %v5977_v4  ;;  %v1264_v4 = vmul.f32 1.442695, %v5987_v62  ;;  %v1643_v38 = vmul.f32 %v3782_v43, %v1611_v24  ;;  %v5995_v62 = vld [vmem:[#allocation82_spill] sm:$0xff] }
 0x3aa   : > { %1753 = vst.msk [vmem:[#allocation3 + $0x40] sm:$0xff] %vm1744_vm3, %v1720_v27  ;;  %3783 = vpow2.f32 %v1254_v51  ;;  %v2471_v27 = vunpack.c.l.b16 %v1838_v3  ;;  %v2470_v51 = vunpack.c.l.b16 %v1837_v26  ;;  %v1832_v3 = vpack.c.bf16 %v5285_v49, %v5285_v49  ;;  %v5993_v26 = vld [vmem:[#allocation50_spill] sm:$0xff] }
 0x3ab   : > { %1755 = vst.msk [vmem:[#allocation3 + $0x50] sm:$0xff] %vm1744_vm3, %v1722_v50  ;;  %3785 = vpow2.f32 %v1288_v35  ;;  %v1292_v19 = vmul.f32 1.442695, %v1230_v34  ;;  %v5983_v50 = vld [vmem:[#allocation67_spill] sm:$0xff]  ;;  %v5460_v12 = vpop.f32.mrf.mxu1 }
 0x3ac   : > { %v5984_v30 = vsub.f32 %v5982_v16, %v5983_v50  ;;  %v2476_v35 = vpack.c.b16 %v2471_v27, %v2470_v51  ;;  %v2267_v50 = vunpack.c.l.b16 %v1832_v3 }
 0x3ad   : > { %2586 = vperm.xlu2 %3675, %v3778_v25   ;;  %2559 = vmatmul.bf16.gmra.mxu1 %v2475_v37  ;;  %3787 = vpow2.f32 %v1292_v19  ;;  %v1597_v37 = vld [vmem:[#allocation3 + $0x68] sm:$0xff] }
 0x3ae   : > { %3789 = vpow2.f32 %v1258_v42  ;;  %v1294_v11 = vmul.f32 1.442695, %v5984_v30  ;;  %v1590_v42 = vld [vmem:[#allocation3 + $0x30] sm:$0xff] }
 0x3af   : > { %v1697_v6 = vpop.xlane.xlu1 %1696  ;;  %v1622_v51 = vmul.f32 %v5320_v56, %v1590_v42  ;;  %v1593_v56 = vld [vmem:[#allocation3 + $0x48] sm:$0xff] }
 0x3b0   : > { %v1699_v5 = vpop.xlane.xlu2 %1698  ;;  %v1736_v33 = vadd.f32 %v1697_v6, %v1640_v59  ;;  %2353 = vmatmul.bf16.gmra.mxu3 %v2269_v44  ;;  %v5444_v32 = vpop.eup %3783  ;;  %3791 = vpow2.f32 %v1294_v11 }
 0x3b1   : > { %v1737_v22 = vadd.f32 %v1699_v5, %v1641_v60  ;;  %2003 = vperm.xlu0 %3673, %v5370_v47   ;;  %v5450_v47 = vpop.eup %3785  ;;  %v1627_v57 = vmul.f32 %v5444_v32, %v1595_v61  ;;  %v5989_v5 = vld [vmem:[#allocation76_spill] sm:$0xff]  ;;  %3793 = vpow2.f32 %v1264_v4 }
 0x3b2   : > { %1769 = vst.msk [vmem:[#allocation3 + $0xc0] sm:$0xff] %vm1744_vm3, %v1736_v33  ;;  %v1644_v14 = vmul.f32 %v5450_v47, %v1612_v23  ;;  %v5990_v33 = vld [vmem:[#allocation77_spill] sm:$0xff]  ;;  %v5992_v23 = vld [vmem:[#allocation52_spill] sm:$0xff] }
 0x3b3   : > { %1770 = vst.msk [vmem:[#allocation3 + $0xc8] sm:$0xff] %vm1744_vm3, %v1737_v22  ;;  %1973 = vperm.xlu1 %3674, %v5252_v58   ;;  %v3788_v2 = vpop.eup %3787  ;;  %v5991_v19 = vsub.f32 %v5989_v5, %v5990_v33 }
 0x3b4   : > { %v3790_v25 = vpop.eup %3789  ;;  %v1646_v61 = vmul.f32 %v3788_v2, %v1614_v52 }
 0x3b5   : > { %2601 = vperm.xlu2 %3675, %v3782_v43   ;;  %v1629_v34 = vmul.f32 %v3790_v25, %v1597_v37  ;;  %v1260_v22 = vmul.f32 1.442695, %v5991_v19 }
 0x3b7   : > { %v1671_v40 = vpop.xlane.xlu1 %1670  ;;  %3795 = vpow2.f32 %v1260_v22  ;;  %v1960_v22 = vld [vmem:[#allocation4 + $0x10] sm:$0xff] }
 0x3b8   : > { %v1705_v63 = vpop.xlane.xlu2 %1704  ;;  %v1723_v29 = vadd.f32 %v1671_v40, %v1627_v57  ;;  %v1223_v57 = vsub.f32 %v5993_v26, %v5992_v23  ;;  %v1831_v40 = vpack.c.bf16 %v5191_v8, %v5191_v8  ;;  %v1600_v8 = vld [vmem:[#allocation3 + $0x80] sm:$0xff]  ;;  %v1610_v26 = vld [vmem:[#allocation3 + $0xd0] sm:$0xff] }
 0x3b9   : > { %v1740_v58 = vadd.f32 %v1705_v63, %v1644_v14  ;;  %2184 = vperm.xlu0 %3673, %v5408_v13   ;;  %v1587_v13 = vld [vmem:[#allocation3 + $0x18] sm:$0xff] }
 0x3ba   : > { %1756 = vst.msk [vmem:[#allocation3 + $0x58] sm:$0xff] %vm1744_vm3, %v1723_v29  ;;  %v1619_v6 = vmul.f32 %v5397_v21, %v1587_v13  ;;  %v1615_v21 = vld [vmem:[#allocation3 + $0xf8] sm:$0xff]  ;;  %v1278_v11 = vmul.f32 1.442695, %v1223_v57  ;;  %v1964_v57 = vld [vmem:[#allocation4 + $0x30] sm:$0xff] }
 0x3bb   : > { %1773 = vst.msk [vmem:[#allocation3 + $0xe0] sm:$0xff] %vm1744_vm3, %v1740_v58  ;;  %1993 = vperm.xlu1 %3674, %v5365_v17   ;;  %v5988_v17 = vpack.c.b16 %v5127_v46, %v5129_v20  ;;  %v5478_v46 = vpop.eup %3791  ;;  %v5480_v20 = vpop.f32.mrf.mxu1 }
 0x3bc   : > { %v1647_v27 = vmul.f32 %v5478_v46, %v1615_v21  ;;  %v3794_v14 = vpop.eup %3793  ;;  %3797 = vpow2.f32 %v1278_v11  ;;  %v2165_v11 = vld [vmem:[#allocation4 + $0x48] sm:$0xff] }
 0x3bd   : > { %2616 = vperm.xlu2 %3675, %v3788_v2   ;;  %2564 = vmatmul.bf16.gmra.mxu1 %v2476_v35  ;;  %v3796_v30 = vpop.eup %3795  ;;  %v1598_v2 = vld [vmem:[#allocation3 + $0x70] sm:$0xff]  ;;  %v2266_v35 = vunpack.c.l.b16 %v1831_v40  ;;  %v1632_v1 = vmul.f32 %v3794_v14, %v1600_v8 }
 0x3be   : > { %v1630_v37 = vmul.f32 %v3796_v30, %v1598_v2 }
 0x3bf   : > { %v1703_v59 = vpop.xlane.xlu1 %1702  ;;  %v2271_v13 = vpack.c.b16 %v2267_v50, %v2266_v35 }
 0x3c0   : > { %v1675_v44 = vpop.xlane.xlu2 %1674  ;;  %v1739_v60 = vadd.f32 %v1703_v59, %v1643_v38  ;;  %2358 = vmatmul.bf16.gmra.mxu3 %v5988_v17  ;;  %v1655_v15 = vpop.xlane.xlu0 %1654  ;;  %v5998_v17 = vld [vmem:[#allocation71_spill] sm:$0xff] }
 0x3c1   : > { %v1725_v48 = vadd.f32 %v1675_v44, %v1629_v34  ;;  %2199 = vperm.xlu0 %3673, %v3790_v25   ;;  %v1715_v43 = vadd.f32 %v1655_v15, %v1619_v6  ;;  %v1625_v44 = vmul.f32 %v5338_v10, %v1593_v56  ;;  %v1607_v10 = vld [vmem:[#allocation3 + $0xb8] sm:$0xff] }
 0x3c2   : > { %1772 = vst.msk [vmem:[#allocation3 + $0xd8] sm:$0xff] %vm1744_vm3, %v1739_v60  ;;  %v3798_v33 = vpop.eup %3797 }
 0x3c3   : > { %1758 = vst.msk [vmem:[#allocation3 + $0x68] sm:$0xff] %vm1744_vm3, %v1725_v48  ;;  %2174 = vperm.xlu1 %3674, %v5403_v39   ;;  %v5500_v25 = vpop.f32.mrf.mxu1  ;;  %v1639_v15 = vmul.f32 %v3798_v33, %v1607_v10  ;;  %v1601_v10 = vld [vmem:[#allocation3 + $0x88] sm:$0xff] }
 0x3c4   : > { %1748 = vst.msk [vmem:[#allocation3 + $0x18] sm:$0xff] %vm1744_vm3, %v1715_v43 }
 0x3c7   : > { %v1709_v39 = vpop.xlane.xlu1 %1708 }
 0x3c8   : > { %v1711_v63 = vpop.xlane.xlu2 %1710  ;;  %v1742_v29 = vadd.f32 %v1709_v39, %v1646_v61  ;;  %v1661_v16 = vpop.xlane.xlu0 %1660 }
 0x3c9   : > { %v1743_v58 = vadd.f32 %v1711_v63, %v1647_v27  ;;  %2380 = vperm.xlu0 %3673, %v3794_v14   ;;  %v1718_v49 = vadd.f32 %v1661_v16, %v1622_v51  ;;  %v5524_v27 = vpop.f32.mrf.mxu2  ;;  %v6001_v51 = vld [vmem:[#allocation75_spill] sm:$0xff] }
 0x3ca   : > { %1775 = vst.msk [vmem:[#allocation3 + $0xf0] sm:$0xff] %vm1744_vm3, %v1742_v29  ;;  %v6000_v29 = vld [vmem:[#allocation74_spill] sm:$0xff] }
 0x3cb   : > { %1776 = vst.msk [vmem:[#allocation3 + $0xf8] sm:$0xff] %vm1744_vm3, %v1743_v58  ;;  %2189 = vperm.xlu1 %3674, %v5444_v32   ;;  %v5994_v32 = vld [vmem:[#allocation81_spill] sm:$0xff]  ;;  %v6002_v58 = vsub.f32 %v6000_v29, %v6001_v51 }
 0x3cc   : > { %1751 = vst.msk [vmem:[#allocation3 + $0x30] sm:$0xff] %vm1744_vm3, %v1718_v49  ;;  %v5996_v4 = vsub.f32 %v5994_v32, %v5995_v62  ;;  %v1596_v49 = vld [vmem:[#allocation3 + $0x60] sm:$0xff]  ;;  %v1965_v51 = vld [vmem:[#allocation4 + $0x38] sm:$0xff] }
 0x3cd   : > { %v5495_v24 = vpop.f32.mrf.mxu3  ;;  %2569 = vmatmul.bf16.gmra.mxu1 %v2477_v31  ;;  %v5997_v31 = vld [vmem:[#allocation70_spill] sm:$0xff]  ;;  %v1290_v16 = vmul.f32 1.442695, %v6002_v58 }
 0x3ce   : > { %v1266_v38 = vmul.f32 1.442695, %v5996_v4  ;;  %v5999_v6 = vsub.f32 %v5997_v31, %v5998_v17 }
 0x3cf   : > { %v1677_v36 = vpop.xlane.xlu1 %1676 }
 0x3d0   : > { %v1681_v34 = vpop.xlane.xlu2 %1680  ;;  %v1726_v59 = vadd.f32 %v1677_v36, %v1630_v37  ;;  %2363 = vmatmul.bf16.gmra.mxu3 %v2271_v13  ;;  %v1667_v7 = vpop.xlane.xlu0 %1666  ;;  %v1284_v5 = vmul.f32 1.442695, %v5999_v6  ;;  %3799 = vpow2.f32 %v1266_v38  ;;  %v2168_v36 = vld [vmem:[#allocation4 + $0x60] sm:$0xff] }
 0x3d1   : > { %v1728_v60 = vadd.f32 %v1681_v34, %v1632_v1  ;;  %2395 = vperm.xlu0 %3673, %v5260_v41   ;;  %v1721_v9 = vadd.f32 %v1667_v7, %v1625_v44  ;;  %v5515_v41 = vpop.f32.mrf.mxu1  ;;  %v2145_v56 = vpop.f32.mrf.mxu2  ;;  %v1613_v1 = vld [vmem:[#allocation3 + $0xe8] sm:$0xff]  ;;  %v2171_v44 = vld [vmem:[#allocation4 + $0x78] sm:$0xff] }
 0x3d2   : > { %1759 = vst.msk [vmem:[#allocation3 + $0x70] sm:$0xff] %vm1744_vm3, %v1726_v59  ;;  %3801 = vpow2.f32 %v1284_v5  ;;  %v1599_v59 = vld [vmem:[#allocation3 + $0x78] sm:$0xff] }
 0x3d3   : > { %1761 = vst.msk [vmem:[#allocation3 + $0x80] sm:$0xff] %vm1744_vm3, %v1728_v60  ;;  %2204 = vperm.xlu1 %3674, %v3796_v30   ;;  %3803 = vpow2.f32 %v1290_v16  ;;  %v1631_v7 = vmul.f32 %v5358_v28, %v1599_v59 }
 0x3d4   : > { %1754 = vst.msk [vmem:[#allocation3 + $0x48] sm:$0xff] %vm1744_vm3, %v1721_v9 }
 0x3d5   : > { %v5513_v19 = vpop.f32.mrf.mxu3 }
 0x3d6   : > { %v5518_v21 = vpop.eup %3799 }
 0x3d8   : > { %v1979_v48 = vpop.permute.xlu2 %1978  ;;  %v1695_v52 = vpop.xlane.xlu0 %1694 }
 0x3d9   : > { %v2008_v43 = vmul.f32 %v1979_v48, %v1960_v22  ;;  %2410 = vperm.xlu0 %3673, %v5391_v53   ;;  %v1735_v42 = vadd.f32 %v1695_v52, %v1639_v15  ;;  %v3802_v61 = vpop.eup %3801  ;;  %v1953_v63 = vpop.f32.mrf.mxu1 }
 0x3da   : > { %v1642_v14 = vmul.f32 %v3802_v61, %v1610_v26 }
 0x3db   : > { %v2016_v3 = vadd.f32 %v2008_v43, %v5460_v12  ;;  %2385 = vperm.xlu1 %3674, %v5518_v21   ;;  %1768 = vst.msk [vmem:[#allocation3 + $0xb8] sm:$0xff] %vm1744_vm3, %v1735_v42  ;;  %v1633_v43 = vmul.f32 %v5518_v21, %v1601_v10  ;;  %v1962_v21 = vld [vmem:[#allocation4 + $0x20] sm:$0xff] }
 0x3dd   : > { %2024 = vst.msk [vmem:[#allocation4 + $0x10] sm:$0xff] %vm886_vm2, %v2016_v3  ;;  %v2153_v23 = vpop.f32.mrf.mxu3  ;;  %v1961_v3 = vld [vmem:[#allocation4 + $0x18] sm:$0xff] }
 0x3e0   : > { %v1999_v39 = vpop.permute.xlu2 %1998  ;;  %v1701_v40 = vpop.xlane.xlu0 %1700 }
 0x3e1   : > { %v2012_v53 = vmul.f32 %v1999_v39, %v1964_v57  ;;  %2591 = vperm.xlu0 %3673, %v5432_v55   ;;  %v1738_v12 = vadd.f32 %v1701_v40, %v1642_v14  ;;  %v1628_v55 = vmul.f32 %v5350_v0, %v1596_v49  ;;  %v2576_v57 = vld [vmem:[#allocation4 + $0xc0] sm:$0xff] }
 0x3e3   : > { %v2020_v50 = vadd.f32 %v2012_v53, %v1953_v63  ;;  %2400 = vperm.xlu1 %3674, %v5336_v18   ;;  %1771 = vst.msk [vmem:[#allocation3 + $0xd0] sm:$0xff] %vm1744_vm3, %v1738_v12  ;;  %v3804_v18 = vpop.eup %3803 }
 0x3e4   : > { %v1645_v4 = vmul.f32 %v3804_v18, %v1613_v1 }
 0x3e5   : > { %2028 = vst.msk [vmem:[#allocation4 + $0x30] sm:$0xff] %vm886_vm2, %v2020_v50  ;;  %v5533_v30 = vpop.f32.mrf.mxu3 }
 0x3e8   : > { %v2180_v2 = vpop.permute.xlu2 %2179  ;;  %v1673_v8 = vpop.xlane.xlu0 %1672 }
 0x3e9   : > { %v2213_v35 = vmul.f32 %v2180_v2, %v2165_v11  ;;  %2606 = vperm.xlu0 %3673, %v5450_v47   ;;  %v1724_v37 = vadd.f32 %v1673_v8, %v1628_v55  ;;  %v2166_v8 = vld [vmem:[#allocation4 + $0x50] sm:$0xff] }
 0x3eb   : > { %v2221_v13 = vadd.f32 %v2213_v35, %v2145_v56  ;;  %2415 = vperm.xlu1 %3674, %v3798_v33   ;;  %1757 = vst.msk [vmem:[#allocation3 + $0x60] sm:$0xff] %vm1744_vm3, %v1724_v37  ;;  %v1958_v33 = vld [vmem:[#allocation4] sm:$0xff] }
 0x3ed   : > { %2229 = vst.msk [vmem:[#allocation4 + $0x48] sm:$0xff] %vm886_vm2, %v2221_v13  ;;  %v5539_v32 = vpop.f32.mrf.mxu3  ;;  %v1963_v13 = vld [vmem:[#allocation4 + $0x28] sm:$0xff] }
 0x3f0   : > { %v2195_v62 = vpop.permute.xlu2 %2194  ;;  %v1707_v38 = vpop.xlane.xlu0 %1706 }
 0x3f1   : > { %v2216_v0 = vmul.f32 %v2195_v62, %v2168_v36  ;;  %2621 = vperm.xlu0 %3673, %v5478_v46   ;;  %v1741_v47 = vadd.f32 %v1707_v38, %v1645_v4  ;;  %v2579_v36 = vld [vmem:[#allocation4 + $0xd8] sm:$0xff]  ;;  %v2372_v38 = vld [vmem:[#allocation4 + $0x90] sm:$0xff] }
 0x3f3   : > { %v2224_v34 = vadd.f32 %v2216_v0, %v2153_v23  ;;  %2596 = vperm.xlu1 %3674, %v3802_v61   ;;  %1774 = vst.msk [vmem:[#allocation3 + $0xe8] sm:$0xff] %vm1744_vm3, %v1741_v47  ;;  %v1955_v61 = vpop.f32.mrf.mxu1 }
 0x3f5   : > { %2232 = vst.msk [vmem:[#allocation4 + $0x60] sm:$0xff] %vm886_vm2, %v2224_v34  ;;  %v2160_v17 = vpop.f32.mrf.mxu3  ;;  %v2169_v34 = vld [vmem:[#allocation4 + $0x68] sm:$0xff] }
 0x3f8   : > { %v2210_v60 = vpop.permute.xlu2 %2209  ;;  %v1679_v31 = vpop.xlane.xlu0 %1678 }
 0x3f9   : > { %v2219_v9 = vmul.f32 %v2210_v60, %v2171_v44  ;;  %v1727_v6 = vadd.f32 %v1679_v31, %v1631_v7  ;;  %v2164_v31 = vld [vmem:[#allocation4 + $0x40] sm:$0xff] }
 0x3fb   : > { %v2227_v5 = vadd.f32 %v2219_v9, %v2160_v17  ;;  %2611 = vperm.xlu1 %3674, %v3804_v18   ;;  %1760 = vst.msk [vmem:[#allocation3 + $0x78] sm:$0xff] %vm1744_vm3, %v1727_v6 }
 0x3fd   : > { %2235 = vst.msk [vmem:[#allocation4 + $0x78] sm:$0xff] %vm886_vm2, %v2227_v5 }
 0x400   : > { %v2391_v46 = vpop.permute.xlu2 %2390 }
 0x401   : > { %v2420_v59 = vmul.f32 %v2391_v46, %v2372_v38 }
 0x408   : > { %v5547_v48 = vpop.permute.xlu2 %2405 }
 0x40b   : > { %v1969_v22 = vpop.permute.xlu0 %1968 }
 0x40c   : > { %v2006_v15 = vmul.f32 %v1969_v22, %v1958_v33  ;;  %v2370_v33 = vld [vmem:[#allocation4 + $0x80] sm:$0xff] }
 0x40d   : > { %v1683_v28 = vpop.xlane.xlu1 %1682 }
 0x40e   : > { %v2014_v52 = vadd.f32 %v2006_v15, %v5421_v45  ;;  %v1729_v42 = vadd.f32 %v1683_v28, %v1633_v43  ;;  %v2167_v43 = vld [vmem:[#allocation4 + $0x58] sm:$0xff] }
 0x410   : > { %2022 = vst.msk [vmem:[#allocation4] sm:$0xff] %vm886_vm2, %v2014_v52  ;;  %v2587_v39 = vpop.permute.xlu2 %2586 }
 0x411   : > { %1762 = vst.msk [vmem:[#allocation3 + $0x88] sm:$0xff] %vm1744_vm3, %v1729_v42  ;;  %v2624_v53 = vmul.f32 %v2587_v39, %v2576_v57  ;;  %v2170_v57 = vld [vmem:[#allocation4 + $0x70] sm:$0xff] }
 0x413   : > { %v1984_v23 = vpop.permute.xlu0 %1983 }
 0x414   : > { %v2009_v26 = vmul.f32 %v1984_v23, %v1961_v3 }
 0x416   : > { %v2017_v14 = vadd.f32 %v2009_v26, %v5480_v20  ;;  %v1959_v20 = vld [vmem:[#allocation4 + $0x8] sm:$0xff] }
 0x418   : > { %2025 = vst.msk [vmem:[#allocation4 + $0x18] sm:$0xff] %vm886_vm2, %v2017_v14  ;;  %v2602_v62 = vpop.permute.xlu2 %2601 }
 0x419   : > { %v2627_v47 = vmul.f32 %v2602_v62, %v2579_v36 }
 0x41a   : > { %v2555_v40 = vpop.f32.mrf.mxu1 }
 0x41b   : > { %v2632_v63 = vadd.f32 %v2624_v53, %v2555_v40  ;;  %v1989_v45 = vpop.permute.xlu0 %1988  ;;  %v2582_v53 = vld [vmem:[#allocation4 + $0xf0] sm:$0xff] }
 0x41c   : > { %v2010_v12 = vmul.f32 %v1989_v45, %v1962_v21  ;;  %v2375_v45 = vld [vmem:[#allocation4 + $0xa8] sm:$0xff] }
 0x41d   : > { %2640 = vst.msk [vmem:[#allocation4 + $0xc0] sm:$0xff] %vm886_vm2, %v2632_v63 }
 0x41e   : > { %v2018_v29 = vadd.f32 %v2010_v12, %v5500_v25 }
 0x420   : > { %2026 = vst.msk [vmem:[#allocation4 + $0x20] sm:$0xff] %vm886_vm2, %v2018_v29  ;;  %v2617_v21 = vpop.permute.xlu2 %2616  ;;  %v2423_v29 = vmul.f32 %v5547_v48, %v2375_v45 }
 0x422   : > { %v5558_v58 = vpop.f32.mrf.mxu1 }
 0x423   : > { %v2349_v16 = vpop.f32.mrf.mxu3  ;;  %v2004_v50 = vpop.permute.xlu0 %2003 }
 0x424   : > { %v2013_v49 = vmul.f32 %v2004_v50, %v1965_v51 }
 0x425   : > { %v1974_v11 = vpop.permute.xlu1 %1973 }
 0x426   : > { %v2021_v2 = vadd.f32 %v2013_v49, %v1955_v61  ;;  %v2007_v55 = vmul.f32 %v1974_v11, %v1959_v20  ;;  %v2373_v61 = vld [vmem:[#allocation4 + $0x98] sm:$0xff]  ;;  %v2371_v49 = vld [vmem:[#allocation4 + $0x88] sm:$0xff] }
 0x428   : > { %2029 = vst.msk [vmem:[#allocation4 + $0x38] sm:$0xff] %vm886_vm2, %v2021_v2  ;;  %v2015_v35 = vadd.f32 %v2007_v55, %v5441_v54 }
 0x42a   : > { %2023 = vst.msk [vmem:[#allocation4 + $0x8] sm:$0xff] %vm886_vm2, %v2015_v35  ;;  %v5563_v25 = vpop.f32.mrf.mxu1  ;;  %v2376_v35 = vld [vmem:[#allocation4 + $0xb0] sm:$0xff] }
 0x42b   : > { %v5565_v56 = vpop.f32.mrf.mxu3  ;;  %v2185_v37 = vpop.permute.xlu0 %2184 }
 0x42c   : > { %v2214_v18 = vmul.f32 %v2185_v37, %v2166_v8  ;;  %v2577_v8 = vld [vmem:[#allocation4 + $0xc8] sm:$0xff] }
 0x42d   : > { %v1994_v1 = vpop.permute.xlu1 %1993 }
 0x42e   : > { %v2222_v4 = vadd.f32 %v2214_v18, %v5495_v24  ;;  %v2011_v0 = vmul.f32 %v1994_v1, %v1963_v13  ;;  %v2374_v18 = vld [vmem:[#allocation4 + $0xa0] sm:$0xff] }
 0x430   : > { %2230 = vst.msk [vmem:[#allocation4 + $0x50] sm:$0xff] %vm886_vm2, %v2222_v4  ;;  %v2019_v54 = vadd.f32 %v2011_v0, %v5515_v41 }
 0x432   : > { %2027 = vst.msk [vmem:[#allocation4 + $0x28] sm:$0xff] %vm886_vm2, %v2019_v54  ;;  %v2562_v44 = vpop.f32.mrf.mxu1  ;;  %v2580_v54 = vld [vmem:[#allocation4 + $0xe0] sm:$0xff] }
 0x433   : > { %v2635_v60 = vadd.f32 %v2627_v47, %v2562_v44  ;;  %v2354_v7 = vpop.f32.mrf.mxu3  ;;  %v2200_v9 = vpop.permute.xlu0 %2199  ;;  %v2377_v47 = vld [vmem:[#allocation4 + $0xb8] sm:$0xff] }
 0x434   : > { %v2428_v17 = vadd.f32 %v2420_v59, %v2354_v7  ;;  %v2217_v6 = vmul.f32 %v2200_v9, %v2169_v34 }
 0x435   : > { %2643 = vst.msk [vmem:[#allocation4 + $0xd8] sm:$0xff] %vm886_vm2, %v2635_v60  ;;  %v2175_v24 = vpop.permute.xlu1 %2174 }
 0x436   : > { %2436 = vst.msk [vmem:[#allocation4 + $0x90] sm:$0xff] %vm886_vm2, %v2428_v17  ;;  %v2225_v5 = vadd.f32 %v2217_v6, %v5533_v30  ;;  %v2212_v41 = vmul.f32 %v2175_v24, %v2164_v31  ;;  %v2583_v31 = vld [vmem:[#allocation4 + $0xf8] sm:$0xff]  ;;  %v2578_v17 = vld [vmem:[#allocation4 + $0xd0] sm:$0xff] }
 0x438   : > { %2233 = vst.msk [vmem:[#allocation4 + $0x68] sm:$0xff] %vm886_vm2, %v2225_v5  ;;  %v2220_v46 = vadd.f32 %v2212_v41, %v5524_v27 }
 0x43a   : > { %2228 = vst.msk [vmem:[#allocation4 + $0x40] sm:$0xff] %vm886_vm2, %v2220_v46  ;;  %v2565_v10 = vpop.f32.mrf.mxu1 }
 0x43b   : > { %v2356_v22 = vpop.f32.mrf.mxu3  ;;  %v2381_v15 = vpop.permute.xlu0 %2380 }
 0x43c   : > { %v2418_v28 = vmul.f32 %v2381_v15, %v2370_v33 }
 0x43d   : > { %v2190_v52 = vpop.permute.xlu1 %2189 }
 0x43e   : > { %v2426_v42 = vadd.f32 %v2418_v28, %v2349_v16  ;;  %v2215_v3 = vmul.f32 %v2190_v52, %v2167_v43 }
 0x440   : > { %2434 = vst.msk [vmem:[#allocation4 + $0x80] sm:$0xff] %vm886_vm2, %v2426_v42  ;;  %v2223_v30 = vadd.f32 %v2215_v3, %v5513_v19  ;;  %v2630_v19 = vmul.f32 %v2617_v21, %v2582_v53 }
 0x442   : > { %2231 = vst.msk [vmem:[#allocation4 + $0x58] sm:$0xff] %vm886_vm2, %v2223_v30  ;;  %v5580_v23 = vpop.f32.mrf.mxu1 }
 0x443   : > { %v2359_v27 = vpop.f32.mrf.mxu3  ;;  %v2396_v26 = vpop.permute.xlu0 %2395 }
 0x444   : > { %v2421_v39 = vmul.f32 %v2396_v26, %v2373_v61 }
 0x445   : > { %v2205_v14 = vpop.permute.xlu1 %2204 }
 0x446   : > { %v2429_v40 = vadd.f32 %v2421_v39, %v2356_v22  ;;  %v2218_v63 = vmul.f32 %v2205_v14, %v2170_v57 }
 0x448   : > { %2437 = vst.msk [vmem:[#allocation4 + $0x98] sm:$0xff] %vm886_vm2, %v2429_v40  ;;  %v2226_v12 = vadd.f32 %v2218_v63, %v5539_v32 }
 0x44a   : > { %2234 = vst.msk [vmem:[#allocation4 + $0x70] sm:$0xff] %vm886_vm2, %v2226_v12  ;;  %v2570_v51 = vpop.f32.mrf.mxu1 }
 0x44b   : > { %v2638_v16 = vadd.f32 %v2630_v19, %v2570_v51  ;;  %v2361_v50 = vpop.f32.mrf.mxu3  ;;  %v2411_v20 = vpop.permute.xlu0 %2410 }
 0x44c   : > { %v2431_v11 = vadd.f32 %v2423_v29, %v2361_v50  ;;  %v2424_v37 = vmul.f32 %v2411_v20, %v2376_v35 }
 0x44d   : > { %2646 = vst.msk [vmem:[#allocation4 + $0xf0] sm:$0xff] %vm886_vm2, %v2638_v16  ;;  %v2386_v2 = vpop.permute.xlu1 %2385 }
 0x44e   : > { %2439 = vst.msk [vmem:[#allocation4 + $0xa8] sm:$0xff] %vm886_vm2, %v2431_v11  ;;  %v2419_v55 = vmul.f32 %v2386_v2, %v2371_v49 }
 0x450   : > { %v2427_v32 = vadd.f32 %v2419_v55, %v5565_v56 }
 0x452   : > { %2435 = vst.msk [vmem:[#allocation4 + $0x88] sm:$0xff] %vm886_vm2, %v2427_v32  ;;  %v2572_v24 = vpop.f32.mrf.mxu1 }
 0x453   : > { %v2364_v48 = vpop.f32.mrf.mxu3  ;;  %v2592_v13 = vpop.permute.xlu0 %2591 }
 0x454   : > { %v2432_v1 = vadd.f32 %v2424_v37, %v2364_v48  ;;  %v2625_v36 = vmul.f32 %v2592_v13, %v2577_v8 }
 0x455   : > { %v2401_v62 = vpop.permute.xlu1 %2400 }
 0x456   : > { %2440 = vst.msk [vmem:[#allocation4 + $0xb0] sm:$0xff] %vm886_vm2, %v2432_v1  ;;  %v2633_v4 = vadd.f32 %v2625_v36, %v5558_v58  ;;  %v2422_v0 = vmul.f32 %v2401_v62, %v2374_v18 }
 0x458   : > { %2641 = vst.msk [vmem:[#allocation4 + $0xc8] sm:$0xff] %vm886_vm2, %v2633_v4  ;;  %v2430_v38 = vadd.f32 %v2422_v0, %v2359_v27 }
 0x45a   : > { %2438 = vst.msk [vmem:[#allocation4 + $0xa0] sm:$0xff] %vm886_vm2, %v2430_v38 }
 0x45b   : > { %v2607_v56 = vpop.permute.xlu0 %2606  ;;  %v2366_v7 = vpop.f32.mrf.mxu3 }
 0x45c   : > { %v2628_v34 = vmul.f32 %v2607_v56, %v2580_v54 }
 0x45d   : > { %v2416_v59 = vpop.permute.xlu1 %2415 }
 0x45e   : > { %v2636_v44 = vadd.f32 %v2628_v34, %v2565_v10  ;;  %v2425_v60 = vmul.f32 %v2416_v59, %v2377_v47  ;;  %v2581_v10 = vld [vmem:[#allocation4 + $0xe8] sm:$0xff] }
 0x460   : > { %2644 = vst.msk [vmem:[#allocation4 + $0xe0] sm:$0xff] %vm886_vm2, %v2636_v44  ;;  %v2433_v9 = vadd.f32 %v2425_v60, %v2366_v7 }
 0x462   : > { %2441 = vst.msk [vmem:[#allocation4 + $0xb8] sm:$0xff] %vm886_vm2, %v2433_v9 }
 0x463   : > { %v2622_v58 = vpop.permute.xlu0 %2621 }
 0x464   : > { %v2631_v6 = vmul.f32 %v2622_v58, %v2583_v31 }
 0x465   : > { %v2597_v5 = vpop.permute.xlu1 %2596 }
 0x466   : > { %v2639_v41 = vadd.f32 %v2631_v6, %v2572_v24  ;;  %v2626_v46 = vmul.f32 %v2597_v5, %v2578_v17 }
 0x468   : > { %2647 = vst.msk [vmem:[#allocation4 + $0xf8] sm:$0xff] %vm886_vm2, %v2639_v41  ;;  %v2634_v33 = vadd.f32 %v2626_v46, %v5563_v25 }
 0x46a   : > { %2642 = vst.msk [vmem:[#allocation4 + $0xd0] sm:$0xff] %vm886_vm2, %v2634_v33 }
 0x46d   : > { %v2612_v22 = vpop.permute.xlu1 %2611 }
 0x46e   : > { %v2629_v15 = vmul.f32 %v2612_v22, %v2581_v10  ;;  %2651 = sbr.rel (%p3491_p10) target bundleno = 1470 (0x5be), region = 130 }
 0x470   : > { %v2637_v43 = vadd.f32 %v2629_v15, %v5580_v23 }
 0x472   : > { %2645 = vst.msk [vmem:[#allocation4 + $0xe8] sm:$0xff] %vm886_vm2, %v2637_v43 }
 0x473   : > { %v2656_v28 = vld [vmem:[#allocation3 + $0x20] sm:$0xff]  ;;  %v2654_v52 = vld [vmem:[#allocation3 + $0x10] sm:$0xff]  ;;  %v4006_v3 = vmov 0   ;;  %v2657_v25 = vld [vmem:[#allocation3 + $0x28] sm:$0xff]  ;;  %vm2965_vm5 = vcmask 785920   ;;  %vm3062_vm7 = vcmask 1048320  }
 0x474   : > { %v2652_v42 = vld [vmem:[#allocation3] sm:$0xff]  ;;  %3807 = vset.pattern.permute.xlu2 %v4006_v3  ;;  %3806 = vset.pattern.permute.xlu1 %v4006_v3  ;;  %3808 = vrcp.f32 %v2656_v28  ;;  %v2655_v30 = vld [vmem:[#allocation3 + $0x18] sm:$0xff]  ;;  %v2653_v61 = vld [vmem:[#allocation3 + $0x8] sm:$0xff] }
 0x475   : > { %3805 = vset.pattern.permute.xlu0 %v4006_v3  ;;  %3810 = vrcp.f32 %v2654_v52  ;;  %v2660_v57 = vld [vmem:[#allocation3 + $0x40] sm:$0xff]  ;;  %v2659_v14 = vld [vmem:[#allocation3 + $0x38] sm:$0xff]  ;;  %v2658_v21 = vld [vmem:[#allocation3 + $0x30] sm:$0xff] }
 0x476   : > { %3812 = vrcp.f32 %v2652_v42  ;;  %v2663_v63 = vld [vmem:[#allocation3 + $0x58] sm:$0xff]  ;;  %v2662_v12 = vld [vmem:[#allocation3 + $0x50] sm:$0xff]  ;;  %v2661_v29 = vld [vmem:[#allocation3 + $0x48] sm:$0xff] }
 0x477   : > { %3814 = vrcp.f32 %v2657_v25  ;;  %v2666_v16 = vld [vmem:[#allocation3 + $0x70] sm:$0xff]  ;;  %v2665_v20 = vld [vmem:[#allocation3 + $0x68] sm:$0xff]  ;;  %v2664_v11 = vld [vmem:[#allocation3 + $0x60] sm:$0xff] }
 0x478   : > { %3816 = vrcp.f32 %v2655_v30  ;;  %v2670_v55 = vld [vmem:[#allocation3 + $0x90] sm:$0xff]  ;;  %v2669_v32 = vld [vmem:[#allocation3 + $0x88] sm:$0xff]  ;;  %v2667_v37 = vld [vmem:[#allocation3 + $0x78] sm:$0xff] }
 0x479   : > { %3818 = vrcp.f32 %v2653_v61  ;;  %v2673_v13 = vld [vmem:[#allocation3 + $0xa8] sm:$0xff]  ;;  %v2672_v1 = vld [vmem:[#allocation3 + $0xa0] sm:$0xff]  ;;  %v2675_v54 = vld [vmem:[#allocation3 + $0xb8] sm:$0xff] }
 0x47a   : > { %v3809_v27 = vpop.eup %3808  ;;  %3820 = vrcp.f32 %v2660_v57  ;;  %v2668_v62 = vld [vmem:[#allocation3 + $0x80] sm:$0xff]  ;;  %v2671_v47 = vld [vmem:[#allocation3 + $0x98] sm:$0xff]  ;;  %v2678_v60 = vld [vmem:[#allocation3 + $0xd0] sm:$0xff] }
 0x47b   : > { %v3811_v23 = vpop.eup %3810  ;;  %2746 = vperm.xlu2 %3807, %v3809_v27   ;;  %3822 = vrcp.f32 %v2659_v14  ;;  %v2676_v0 = vld [vmem:[#allocation3 + $0xc0] sm:$0xff]  ;;  %v2679_v59 = vld [vmem:[#allocation3 + $0xd8] sm:$0xff]  ;;  %v2674_v9 = vld [vmem:[#allocation3 + $0xb0] sm:$0xff] }
 0x47c   : > { %v3813_v26 = vpop.eup %3812  ;;  %2736 = vperm.xlu1 %3806, %v3811_v23   ;;  %3824 = vrcp.f32 %v2658_v21  ;;  %v2682_v58 = vld [vmem:[#allocation3 + $0xf0] sm:$0xff]  ;;  %v2681_v6 = vld [vmem:[#allocation3 + $0xe8] sm:$0xff]  ;;  %v2680_v10 = vld [vmem:[#allocation3 + $0xe0] sm:$0xff] }
 0x47d   : > { %2726 = vperm.xlu0 %3805, %v3813_v26   ;;  %v3815_v39 = vpop.eup %3814  ;;  %3826 = vrcp.f32 %v2663_v63  ;;  %v2677_v5 = vld [vmem:[#allocation3 + $0xc8] sm:$0xff]  ;;  %v2683_v15 = vld [vmem:[#allocation3 + $0xf8] sm:$0xff]  ;;  %v2720_v52 = vld [vmem:[#allocation4 + $0x20] sm:$0xff] }
 0x47e   : > { %v3817_v53 = vpop.eup %3816  ;;  %3828 = vrcp.f32 %v2662_v12  ;;  %v2721_v25 = vld [vmem:[#allocation4 + $0x28] sm:$0xff]  ;;  %v2780_v27 = vld [vmem:[#allocation4 + $0x40] sm:$0xff]  ;;  %v2783_v57 = vld [vmem:[#allocation4 + $0x58] sm:$0xff] }
 0x47f   : > { %v3819_v40 = vpop.eup %3818  ;;  %3830 = vrcp.f32 %v2661_v29  ;;  %v2719_v29 = vld [vmem:[#allocation4 + $0x18] sm:$0xff] }
 0x480   : > { %v3821_v45 = vpop.eup %3820  ;;  %3832 = vrcp.f32 %v2666_v16  ;;  %v2717_v16 = vld [vmem:[#allocation4 + $0x8] sm:$0xff] }
 0x481   : > { %v3823_v19 = vpop.eup %3822  ;;  %3834 = vrcp.f32 %v2665_v20 }
 0x482   : > { %v3825_v51 = vpop.eup %3824  ;;  %3836 = vrcp.f32 %v2664_v11 }
 0x483   : > { %2751 = vperm.xlu2 %3807, %v3815_v39   ;;  %v3827_v50 = vpop.eup %3826  ;;  %3838 = vrcp.f32 %v2670_v55  ;;  %v2718_v39 = vld [vmem:[#allocation4 + $0x10] sm:$0xff] }
 0x484   : > { %2741 = vperm.xlu1 %3806, %v3817_v53   ;;  %v3829_v49 = vpop.eup %3828  ;;  %3840 = vrcp.f32 %v2669_v32  ;;  %v2716_v53 = vld [vmem:[#allocation4] sm:$0xff]  ;;  %v2879_v55 = vld [vmem:[#allocation4 + $0x90] sm:$0xff] }
 0x485   : > { %2731 = vperm.xlu0 %3805, %v3819_v40   ;;  %v3831_v2 = vpop.eup %3830  ;;  %3842 = vrcp.f32 %v2667_v37 }
 0x486   : > { %v3833_v35 = vpop.eup %3832  ;;  %3844 = vrcp.f32 %v2673_v13 }
 0x487   : > { %v3835_v8 = vpop.eup %3834  ;;  %3846 = vrcp.f32 %v2672_v1 }
 0x488   : > { %v3837_v48 = vpop.eup %3836  ;;  %3848 = vrcp.f32 %v2668_v62  ;;  %v2782_v62 = vld [vmem:[#allocation4 + $0x50] sm:$0xff] }
 0x489   : > { %v3839_v18 = vpop.eup %3838  ;;  %3850 = vrcp.f32 %v2676_v0  ;;  %v2781_v0 = vld [vmem:[#allocation4 + $0x48] sm:$0xff] }
 0x48a   : > { %v3841_v36 = vpop.eup %3840  ;;  %3852 = vrcp.f32 %v2675_v54 }
 0x48b   : > { %2790 = vperm.xlu2 %3807, %v3821_v45   ;;  %v3843_v4 = vpop.eup %3842  ;;  %3854 = vrcp.f32 %v2671_v47 }
 0x48c   : > { %2761 = vperm.xlu1 %3806, %v3823_v19   ;;  %v3845_v38 = vpop.eup %3844  ;;  %3856 = vrcp.f32 %v2679_v59  ;;  %v2786_v19 = vld [vmem:[#allocation4 + $0x70] sm:$0xff]  ;;  %v2785_v59 = vld [vmem:[#allocation4 + $0x68] sm:$0xff] }
 0x48d   : > { %2756 = vperm.xlu0 %3805, %v3825_v51   ;;  %v3847_v56 = vpop.eup %3846  ;;  %3858 = vrcp.f32 %v2678_v60 }
 0x48e   : > { %v3849_v34 = vpop.eup %3848  ;;  %3860 = vrcp.f32 %v2674_v9 }
 0x48f   : > { %v3851_v44 = vpop.eup %3850  ;;  %3862 = vrcp.f32 %v2682_v58  ;;  %v2878_v58 = vld [vmem:[#allocation4 + $0x88] sm:$0xff] }
 0x490   : > { %v3853_v7 = vpop.eup %3852  ;;  %3864 = vrcp.f32 %v2681_v6 }
 0x491   : > { %v3855_v31 = vpop.eup %3854  ;;  %3866 = vrcp.f32 %v2677_v5 }
 0x492   : > { %v3857_v17 = vpop.eup %3856  ;;  %3868 = vrcp.f32 %v2680_v10 }
 0x493   : > { %2805 = vperm.xlu2 %3807, %v3827_v50   ;;  %v3859_v24 = vpop.eup %3858  ;;  %3870 = vrcp.f32 %v2683_v15 }
 0x494   : > { %2800 = vperm.xlu1 %3806, %v3829_v49   ;;  %v3861_v41 = vpop.eup %3860 }
 0x495   : > { %2795 = vperm.xlu0 %3805, %v3831_v2   ;;  %v3863_v46 = vpop.eup %3862 }
 0x496   : > { %v3865_v33 = vpop.eup %3864 }
 0x497   : > { %v3867_v22 = vpop.eup %3866 }
 0x498   : > { %v3869_v43 = vpop.eup %3868 }
 0x499   : > { %v3871_v28 = vpop.eup %3870 }
 0x49b   : > { %2820 = vperm.xlu2 %3807, %v3833_v35   ;;  %v2723_v35 = vld [vmem:[#allocation4 + $0x38] sm:$0xff] }
 0x49c   : > { %2815 = vperm.xlu1 %3806, %v3835_v8   ;;  %v2722_v8 = vld [vmem:[#allocation4 + $0x30] sm:$0xff] }
 0x49d   : > { %2810 = vperm.xlu0 %3805, %v3837_v48  }
 0x4a3   : > { %2897 = vperm.xlu2 %3807, %v3839_v18  }
 0x4a4   : > { %2892 = vperm.xlu1 %3806, %v3841_v36   ;;  %v2882_v36 = vld [vmem:[#allocation4 + $0xa8] sm:$0xff] }
 0x4a5   : > { %2825 = vperm.xlu0 %3805, %v3843_v4  }
 0x4ab   : > { %2912 = vperm.xlu2 %3807, %v3845_v38  }
 0x4ac   : > { %2907 = vperm.xlu1 %3806, %v3847_v56  }
 0x4ad   : > { %2887 = vperm.xlu0 %3805, %v3849_v34  }
 0x4b3   : > { %2984 = vperm.xlu2 %3807, %v3851_v44   ;;  %v2784_v44 = vld [vmem:[#allocation4 + $0x60] sm:$0xff] }
 0x4b4   : > { %2922 = vperm.xlu1 %3806, %v3853_v7  }
 0x4b5   : > { %2902 = vperm.xlu0 %3805, %v3855_v31  }
 0x4bb   : > { %2999 = vperm.xlu2 %3807, %v3857_v17   ;;  %v2787_v17 = vld [vmem:[#allocation4 + $0x78] sm:$0xff] }
 0x4bc   : > { %2994 = vperm.xlu1 %3806, %v3859_v24  }
 0x4bd   : > { %2917 = vperm.xlu0 %3805, %v3861_v41  }
 0x4c3   : > { %3014 = vperm.xlu2 %3807, %v3863_v46   ;;  %v2881_v46 = vld [vmem:[#allocation4 + $0xa0] sm:$0xff] }
 0x4c4   : > { %3009 = vperm.xlu1 %3806, %v3865_v33   ;;  %v2877_v33 = vld [vmem:[#allocation4 + $0x80] sm:$0xff] }
 0x4c5   : > { %2989 = vperm.xlu0 %3805, %v3867_v22  }
 0x4cd   : > { %3004 = vperm.xlu0 %3805, %v3869_v43  }
 0x4d5   : > { %3019 = vperm.xlu0 %3805, %v3871_v28   ;;  %v2747_v42 = vpop.permute.xlu2 %2746 }
 0x4d6   : > { %v2768_v3 = vmul.f32 %v2747_v42, %v2720_v52  ;;  %v2974_v52 = vld [vmem:[#allocation4 + $0xc0] sm:$0xff]  ;;  %v2880_v42 = vld [vmem:[#allocation4 + $0x98] sm:$0xff] }
 0x4d8   : > { %2776 = vst.msk [vmem:[%s4232_s13 + $0x20] sm:$0xff] %vm886_vm2, %v2768_v3 }
 0x4dd   : > { %v2752_v30 = vpop.permute.xlu2 %2751 }
 0x4de   : > { %v2769_v61 = vmul.f32 %v2752_v30, %v2721_v25 }
 0x4e0   : > { %2777 = vst.msk [vmem:[%s4232_s13 + $0x28] sm:$0xff] %vm886_vm2, %v2769_v61 }
 0x4e5   : > { %v2791_v23 = vpop.permute.xlu2 %2790 }
 0x4e6   : > { %v2828_v26 = vmul.f32 %v2791_v23, %v2780_v27  ;;  %v2977_v23 = vld [vmem:[#allocation4 + $0xd8] sm:$0xff] }
 0x4e8   : > { %2844 = vrot.lane.b32.xlu1 %v2828_v26, %s4007_s20  ;;  %v2884_v26 = vld [vmem:[#allocation4 + $0xb8] sm:$0xff] }
 0x4ed   : > { %v2806_v14 = vpop.permute.xlu2 %2805 }
 0x4ee   : > { %v2831_v21 = vmul.f32 %v2806_v14, %v2783_v57  ;;  %v2737_v40 = vpop.permute.xlu1 %2736  ;;  %v2883_v57 = vld [vmem:[#allocation4 + $0xb0] sm:$0xff] }
 0x4ef   : > { %v2766_v63 = vmul.f32 %v2737_v40, %v2718_v39  ;;  %v2727_v45 = vpop.permute.xlu0 %2726 }
 0x4f0   : > { %v2764_v12 = vmul.f32 %v2727_v45, %v2716_v53  ;;  %2850 = vrot.lane.b32.xlu1 %v2831_v21, %s4007_s20 }
 0x4f1   : > { %2774 = vst.msk [vmem:[%s4232_s13 + $0x10] sm:$0xff] %vm886_vm2, %v2766_v63  ;;  %v2980_v63 = vld [vmem:[#allocation4 + $0xf0] sm:$0xff] }
 0x4f2   : > { %2772 = vst.msk [vmem:[%s4232_s13] sm:$0xff] %vm886_vm2, %v2764_v12  ;;  %v2976_v12 = vld [vmem:[#allocation4 + $0xd0] sm:$0xff] }
 0x4f5   : > { %v2821_v51 = vpop.permute.xlu2 %2820 }
 0x4f6   : > { %v2834_v50 = vmul.f32 %v2821_v51, %v2786_v19  ;;  %v2742_v20 = vpop.permute.xlu1 %2741  ;;  %v2975_v19 = vld [vmem:[#allocation4 + $0xc8] sm:$0xff] }
 0x4f7   : > { %v2767_v49 = vmul.f32 %v2742_v20, %v2719_v29  ;;  %v2732_v11 = vpop.permute.xlu0 %2731  ;;  %v2979_v20 = vld [vmem:[#allocation4 + $0xe8] sm:$0xff] }
 0x4f8   : > { %v2765_v2 = vmul.f32 %v2732_v11, %v2717_v16  ;;  %2856 = vrot.lane.b32.xlu1 %v2834_v50, %s4007_s20  ;;  %v2978_v11 = vld [vmem:[#allocation4 + $0xe0] sm:$0xff] }
 0x4f9   : > { %2775 = vst.msk [vmem:[%s4232_s13 + $0x18] sm:$0xff] %vm886_vm2, %v2767_v49 }
 0x4fa   : > { %2773 = vst.msk [vmem:[%s4232_s13 + $0x8] sm:$0xff] %vm886_vm2, %v2765_v2 }
 0x4fd   : > { %v2898_v32 = vpop.permute.xlu2 %2897 }
 0x4fe   : > { %v2927_v37 = vmul.f32 %v2898_v32, %v2879_v55  ;;  %v2762_v48 = vpop.permute.xlu1 %2761  ;;  %v2981_v32 = vld [vmem:[#allocation4 + $0xf8] sm:$0xff] }
 0x4ff   : > { %v2771_v13 = vmul.f32 %v2762_v48, %v2723_v35  ;;  %v2757_v18 = vpop.permute.xlu0 %2756 }
 0x500   : > { %v2770_v1 = vmul.f32 %v2757_v18, %v2722_v8  ;;  %2945 = vrot.lane.b32.xlu1 %v2927_v37, %s4008_s23 }
 0x501   : > { %2779 = vst.msk [vmem:[%s4232_s13 + $0x38] sm:$0xff] %vm886_vm2, %v2771_v13 }
 0x502   : > { %2778 = vst.msk [vmem:[%s4232_s13 + $0x30] sm:$0xff] %vm886_vm2, %v2770_v1  ;;  %vm2868_vm2 = vcmask 523520  }
 0x505   : > { %v2913_v4 = vpop.permute.xlu2 %2912 }
 0x506   : > { %v2930_v38 = vmul.f32 %v2913_v4, %v2882_v36  ;;  %v2801_v54 = vpop.permute.xlu1 %2800 }
 0x507   : > { %v2830_v56 = vmul.f32 %v2801_v54, %v2782_v62  ;;  %v2796_v47 = vpop.permute.xlu0 %2795 }
 0x508   : > { %v2829_v34 = vmul.f32 %v2796_v47, %v2781_v0  ;;  %2951 = vrot.lane.b32.xlu1 %v2930_v38, %s4008_s23 }
 0x509   : > { %2848 = vrot.lane.b32.xlu0 %v2830_v56, %s4007_s20 }
 0x50a   : > { %2846 = vrot.lane.b32.xlu2 %v2829_v34, %s4007_s20 }
 0x50d   : > { %v2985_v43 = vpop.permute.xlu2 %2984 }
 0x50e   : > { %v2816_v60 = vpop.permute.xlu1 %2815  ;;  %v3022_v3 = vmul.f32 %v2985_v43, %v2974_v52 }
 0x50f   : > { %v2833_v7 = vmul.f32 %v2816_v60, %v2785_v59  ;;  %v2811_v9 = vpop.permute.xlu0 %2810 }
 0x510   : > { %v2832_v31 = vmul.f32 %v2811_v9, %v2784_v44 }
 0x511   : > { %2854 = vrot.lane.b32.xlu0 %v2833_v7, %s4007_s20 }
 0x512   : > { %2852 = vrot.lane.b32.xlu2 %v2832_v31, %s4007_s20 }
 0x515   : > { %v3000_v27 = vpop.permute.xlu2 %2999 }
 0x516   : > { %v2893_v6 = vpop.permute.xlu1 %2892  ;;  %v3025_v39 = vmul.f32 %v3000_v27, %v2977_v23 }
 0x517   : > { %v2926_v24 = vmul.f32 %v2893_v6, %v2878_v58  ;;  %v2826_v5 = vpop.permute.xlu0 %2825 }
 0x518   : > { %v2835_v41 = vmul.f32 %v2826_v5, %v2787_v17 }
 0x519   : > { %2943 = vrot.lane.b32.xlu0 %v2926_v24, %s4008_s23 }
 0x51a   : > { %2858 = vrot.lane.b32.xlu2 %v2835_v41, %s4007_s20 }
 0x51d   : > { %v3015_v45 = vpop.permute.xlu2 %3014 }
 0x51e   : > { %v2908_v10 = vpop.permute.xlu1 %2907  ;;  %v3028_v29 = vmul.f32 %v3015_v45, %v2980_v63 }
 0x51f   : > { %v2929_v22 = vmul.f32 %v2908_v10, %v2881_v46  ;;  %v2888_v15 = vpop.permute.xlu0 %2887 }
 0x520   : > { %v2925_v28 = vmul.f32 %v2888_v15, %v2877_v33 }
 0x521   : > { %2949 = vrot.lane.b32.xlu0 %v2929_v22, %s4008_s23 }
 0x522   : > { %2941 = vrot.lane.b32.xlu2 %v2925_v28, %s4008_s23 }
 0x526   : > { %v2923_v61 = vpop.permute.xlu1 %2922 }
 0x527   : > { %v2903_v25 = vpop.permute.xlu0 %2902  ;;  %v2932_v53 = vmul.f32 %v2923_v61, %v2884_v26 }
 0x528   : > { %v2928_v30 = vmul.f32 %v2903_v25, %v2880_v42 }
 0x529   : > { %3038 = vrot.lane.b32.xlu0 %v3022_v3, %s4009_s26 }
 0x52a   : > { %2947 = vrot.lane.b32.xlu2 %v2928_v30, %s4008_s23 }
 0x52e   : > { %v2995_v40 = vpop.permute.xlu1 %2994 }
 0x52f   : > { %v2918_v14 = vpop.permute.xlu0 %2917  ;;  %v3024_v16 = vmul.f32 %v2995_v40, %v2976_v12 }
 0x530   : > { %v2931_v21 = vmul.f32 %v2918_v14, %v2883_v57 }
 0x531   : > { %3044 = vrot.lane.b32.xlu0 %v3025_v39, %s4009_s26 }
 0x532   : > { %2955 = vrot.lane.b32.xlu2 %v2932_v53, %s4008_s23  ;;  %2953 = vrot.lane.b32.xlu1 %v2931_v21, %s4008_s23 }
 0x536   : > { %v3010_v49 = vpop.permute.xlu1 %3009 }
 0x537   : > { %v2990_v51 = vpop.permute.xlu0 %2989  ;;  %v3027_v55 = vmul.f32 %v3010_v49, %v2979_v20 }
 0x538   : > { %v3023_v50 = vmul.f32 %v2990_v51, %v2975_v19 }
 0x539   : > { %3050 = vrot.lane.b32.xlu0 %v3028_v29, %s4009_s26 }
 0x53a   : > { %3042 = vrot.lane.b32.xlu2 %v3024_v16, %s4009_s26  ;;  %3040 = vrot.lane.b32.xlu1 %v3023_v50, %s4009_s26 }
 0x53f   : > { %v3005_v2 = vpop.permute.xlu0 %3004 }
 0x540   : > { %v3026_v35 = vmul.f32 %v3005_v2, %v2978_v11 }
 0x542   : > { %3048 = vrot.lane.b32.xlu2 %v3027_v55, %s4009_s26  ;;  %3046 = vrot.lane.b32.xlu1 %v3026_v35, %s4009_s26 }
 0x547   : > { %v3020_v8 = vpop.permute.xlu0 %3019 }
 0x548   : > { %v3029_v37 = vmul.f32 %v3020_v8, %v2981_v32 }
 0x54a   : > { %3052 = vrot.lane.b32.xlu1 %v3029_v37, %s4009_s26 }
 0x55a   : > { %v2845_v48 = vpop.permute.xlu1 %2844 }
 0x55b   : > { %2869 = vst.msk [vmem:[%s4232_s13] sm:$0xff] %vm2868_vm2, %v2845_v48 }
 0x562   : > { %v2851_v13 = vpop.permute.xlu1 %2850 }
 0x563   : > { %2872 = vst.msk [vmem:[%s4232_s13 + $0x18] sm:$0xff] %vm2868_vm2, %v2851_v13 }
 0x564   : > { %v2847_v18 = vpop.permute.xlu2 %2846 }
 0x565   : > { %2870 = vst.msk [vmem:[%s4232_s13 + $0x8] sm:$0xff] %vm2868_vm2, %v2847_v18 }
 0x56a   : > { %v2857_v1 = vpop.permute.xlu1 %2856 }
 0x56b   : > { %2875 = vst.msk [vmem:[%s4232_s13 + $0x30] sm:$0xff] %vm2868_vm2, %v2857_v1 }
 0x56c   : > { %v2853_v36 = vpop.permute.xlu2 %2852 }
 0x56d   : > { %2873 = vst.msk [vmem:[%s4232_s13 + $0x20] sm:$0xff] %vm2868_vm2, %v2853_v36 }
 0x572   : > { %v2946_v4 = vpop.permute.xlu1 %2945 }
 0x574   : > { %v2859_v62 = vpop.permute.xlu2 %2858 }
 0x575   : > { %2876 = vst.msk [vmem:[%s4232_s13 + $0x38] sm:$0xff] %vm2868_vm2, %v2859_v62 }
 0x57a   : > { %v2952_v47 = vpop.permute.xlu1 %2951 }
 0x57b   : > { %v2849_v0 = vpop.permute.xlu0 %2848 }
 0x57c   : > { %v2942_v38 = vpop.permute.xlu2 %2941  ;;  %2871 = vst.msk [vmem:[%s4232_s13 + $0x10] sm:$0xff] %vm2868_vm2, %v2849_v0 }
 0x57d   : > { %2966 = vst.msk [vmem:[%s4232_s13] sm:$0xff] %vm2965_vm5, %v2942_v38 }
 0x57e   : > { %2968 = vst.msk [vmem:[%s4232_s13 + $0x10] sm:$0xff] %vm2965_vm5, %v2946_v4 }
 0x583   : > { %v2855_v54 = vpop.permute.xlu0 %2854 }
 0x584   : > { %v2948_v56 = vpop.permute.xlu2 %2947  ;;  %2874 = vst.msk [vmem:[%s4232_s13 + $0x28] sm:$0xff] %vm2868_vm2, %v2855_v54 }
 0x585   : > { %2969 = vst.msk [vmem:[%s4232_s13 + $0x18] sm:$0xff] %vm2965_vm5, %v2948_v56 }
 0x586   : > { %2971 = vst.msk [vmem:[%s4232_s13 + $0x28] sm:$0xff] %vm2965_vm5, %v2952_v47 }
 0x58b   : > { %v2944_v34 = vpop.permute.xlu0 %2943 }
 0x58c   : > { %v2956_v59 = vpop.permute.xlu2 %2955  ;;  %2967 = vst.msk [vmem:[%s4232_s13 + $0x8] sm:$0xff] %vm2965_vm5, %v2944_v34 }
 0x58d   : > { %2973 = vst.msk [vmem:[%s4232_s13 + $0x38] sm:$0xff] %vm2965_vm5, %v2956_v59 }
 0x593   : > { %v2950_v44 = vpop.permute.xlu0 %2949 }
 0x594   : > { %v3043_v60 = vpop.permute.xlu2 %3042  ;;  %2970 = vst.msk [vmem:[%s4232_s13 + $0x20] sm:$0xff] %vm2965_vm5, %v2950_v44 }
 0x595   : > { %3065 = vst.msk [vmem:[%s4232_s13 + $0x10] sm:$0xff] %vm3062_vm7, %v3043_v60 }
 0x59b   : > { %v3039_v7 = vpop.permute.xlu0 %3038 }
 0x59c   : > { %v3049_v9 = vpop.permute.xlu2 %3048  ;;  %3063 = vst.msk [vmem:[%s4232_s13] sm:$0xff] %vm3062_vm7, %v3039_v7 }
 0x59d   : > { %3068 = vst.msk [vmem:[%s4232_s13 + $0x28] sm:$0xff] %vm3062_vm7, %v3049_v9 }
 0x5a3   : > { %v3045_v31 = vpop.permute.xlu0 %3044 }
 0x5a4   : > { %v2954_v58 = vpop.permute.xlu1 %2953  ;;  %3066 = vst.msk [vmem:[%s4232_s13 + $0x18] sm:$0xff] %vm3062_vm7, %v3045_v31 }
 0x5a5   : > { %2972 = vst.msk [vmem:[%s4232_s13 + $0x30] sm:$0xff] %vm2965_vm5, %v2954_v58 }
 0x5ab   : > { %v3051_v17 = vpop.permute.xlu0 %3050 }
 0x5ac   : > { %v3041_v6 = vpop.permute.xlu1 %3040  ;;  %3069 = vst.msk [vmem:[%s4232_s13 + $0x30] sm:$0xff] %vm3062_vm7, %v3051_v17 }
 0x5ad   : > { %3064 = vst.msk [vmem:[%s4232_s13 + $0x8] sm:$0xff] %vm3062_vm7, %v3041_v6 }
 0x5b4   : > { %v3047_v24 = vpop.permute.xlu1 %3046 }
 0x5b5   : > { %3067 = vst.msk [vmem:[%s4232_s13 + $0x20] sm:$0xff] %vm3062_vm7, %v3047_v24 }
 0x5bc   : > { %v3053_v5 = vpop.permute.xlu1 %3052 }
 0x5bd   : > { %3070 = vst.msk [vmem:[%s4232_s13 + $0x38] sm:$0xff] %vm3062_vm7, %v3053_v5 }
 0x5be PF: > { %s3494_s6 = sshll.u32 %s3982_s25, 5  ;;  %s3086_s18 = sshll.u32 %s4232_s13, 4  ;;  %s3087_s18 = int_to_ptr.vmem [resolvable:$true] %s3086_s18 }
 0x5bf   : > { %s3083_s9 = sadd.s32 %s3494_s6, %s4206_s17  ;;  %s6003_s8 = sld [smem:[#allocation85_spill]] }
 0x5c0   : > { %s3495_s12 = sshll.u32 %s3083_s9, 3  ;;  %s3072_s7 = scalar_lea.sflag [#allocation8], %s4196_s14 }
 0x5c5   : > { %s3085_s24 = scalar_lea.hbm %s6003_s8, %s3495_s12  ;;  %s3892_s17 = scalar_lea.hbm %s6003_s8, 512 }
 0x5c6   : > { %s3088_s16 = sshll.u32 %s3085_s24, 4  ;;  %s3089_s16 = int_to_ptr.hbm [resolvable:$true] %s3088_s16 }
 0x5c7   : > { %s3886_s5 = sshra.s32 %s3089_s16, 4  ;;  %s3887_s5 = int_to_ptr.hbm [resolvable:$true] %s3886_s5 }
 0x5c8   : > { %s3888_s19 = scalar_lea.hbm %s3887_s5, 64  ;;  %p3893_p1 = scmp.lt.s32.totalorder %s3887_s5, %s6003_s8 }
 0x5c9   : > { %p3889_p13 = scmp.ne.s32.totalorder %s3887_s5, %s3888_s19  ;;  %p3894_p3 = scmp.lt.s32.totalorder %s3892_s17, %s3888_s19 }
 0x5cb   : > { %p3890_p0 = pnand %p3889_p13, %p4141_p11  ;;  %p3895_p4 = por %p3894_p3, %p3893_p1 }
 0x5cd   : > { %p3891_p2 = pneg %p3890_p0 }
 0x5cf   : > { %p3896_p5 = pnand %p3895_p4, %p3891_p2 }
 0x5d1   : > { %3899 = shalt.err (!%p3896_p5)
}
 0x5d2   : > { %s4010_s14 = smov 128   ;;  %s4011_s22 = smov 8  }
 0x5d3   : > { %3558 = dma.vmem_to_hbm [thread:$0]  (%p4141_p11), %s3087_s18, 1024, %s3089_s16, %s3072_s7, %s4010_s14, %s4010_s14, %s4011_s22  }
 0x5d4 PF: > { %s6004_s27 = sld [smem:[#allocation10_spill]]  ;;  %p3564_p6 = scmp.ge.s32.totalorder %s3998_s29, 2 }
 0x5d6   : > { %p3561_p7 = pnand %p3564_p6, %p4145_p12 }
 0x5d8   : > { %p3562_p8 = pneg %p3561_p7 }
 0x5da   : > { %s3103_s30 = sand.u32 1, %s6004_s27  }
 0x5db   : > { %s3104_s20 = scalar_lea.sflag [#allocation8], %s3103_s30 }
 0x5dc   : > { %3949 = dma.done.wait (%p3562_p8), %s3104_s20, 1024  }
 0x5dd   : > { %3951 = vsyncadd (%p3562_p8), %s3104_s20, 4294966272  ;;  %s18_s29 = sadd.s32 1, %s3998_s29   ;;  %s6006_s19 = sld [smem:[#allocation11_spill]] }
 0x5de   : > { %p15_p9 = scmp.ge.s32.totalorder %s18_s29, 18   ;;  %s6007_s20 = sld [smem:[#allocation21_spill]] }
 0x5df   : > { %s6008_s15 = sld [smem:[#allocation12_spill]]  ;;  %s6016_s18 = smov %s3966_s21 }
 0x5e0   : > { %s6009_s22 = sld [smem:[#allocation20_spill]] }
 0x5e1   : > { %s6010_s23 = sld [smem:[#allocation13_spill]] }
 0x5e2   : > { %s6011_s24 = sld [smem:[#allocation14_spill]]  ;;  %17 = sbr.rel (!%p15_p9) target bundleno = 11 (0xb), region = 190 }
 0x5e3   : > { %s6012_s25 = sld [smem:[#allocation15_spill]] }
 0x5e4   : > { %s6013_s26 = sld [smem:[#allocation16_spill]] }
 0x5e5   : > { %s6014_s27 = sld [smem:[#allocation17_spill]]  ;;  %s6017_s21 = smov %s6008_s15 }
 0x5e6   : > { %s6015_s28 = sld [smem:[#allocation18_spill]] }
 0x5e7   :  { %3110 = vsyncpa [#allocation8], 1 }
 0x5e8   :  { %3112 = vsyncpa [#allocation8 + $0x1], 1 }

</bundles_post_ra>
